<compile_context>
chip_gen: v7x
topology: tpu7x:2x2x1
jax: 0.10.0
libtpu: 0.0.40
codegen_flags: <defaults>
</compile_context>

<pallas_src>
import functools
import math

import jax
import jax.numpy as jnp
from jax import lax
from jax.experimental import pallas as pl
from jax.experimental.pallas import tpu as pltpu


def _round_up(x, m):
    return ((x + m - 1) // m) * m


# =========================================================================
# Tiled matmul + bias kernel: pre_gates = x @ W_in + b for all timesteps and
# both directions in one MXU-bound pass.
# =========================================================================

def _matmul_bias_kernel(x_ref, w_ref, b_ref, o_ref, acc_ref):
    k = pl.program_id(2)

    @pl.when(k == 0)
    def _():
        acc_ref[...] = jnp.zeros_like(acc_ref)

    acc_ref[...] += jnp.dot(x_ref[...].astype(jnp.bfloat16), w_ref[...],
                            preferred_element_type=jnp.float32)

    @pl.when(k == pl.num_programs(2) - 1)
    def _():
        o_ref[...] = (acc_ref[...] + b_ref[...]).astype(o_ref.dtype)


def _plan_rows(m):
    """Tile / padded-size plan for the row (sublane) dimension."""
    if m <= 1024:
        return m, m                      # full-extent block, no padding
    for t in (1024, 512, 256):
        if m % t == 0:
            return t, m
    return 512, _round_up(m, 512)        # rare: zero-pad rows


def _plan_cols(n):
    """Tile / padded-size plan for a 128-lane dimension (N or K)."""
    if n <= 512:
        return n, n                      # full-extent block, no padding
    for t in (512, 256, 128):
        if n % t == 0:
            return t, n
    return 512, _round_up(n, 512)        # rare: zero-pad columns


def linear(x2d, w, b, out_dtype=jnp.bfloat16):
    """y = x2d @ w + b with bf16 MXU operands and f32 accumulation.

    x2d: (M, K) f32/bf16, w: (K, N) bf16, b: (1, N) f32  ->  (M, N) out_dtype.
    """
    M, K = x2d.shape
    K2, N = w.shape
    assert K == K2 and b.shape == (1, N)

    # Small-shape fallback: below ~one tile of rows the pallas_call fixed
    # overhead exceeds the matmul; let XLA's fused dot handle it.
    if M < 128:
        acc = jnp.dot(x2d.astype(jnp.bfloat16), w,
                      preferred_element_type=jnp.float32)
        return (acc + b).astype(out_dtype)

    tm, Mp = _plan_rows(M)
    tn, Np = _plan_cols(N)
    tk, Kp = _plan_cols(K)

    # Padding is only materialized in the (rare) non-aligned large-dim case.
    if Mp != M or Kp != K:
        x2d = jnp.pad(x2d, ((0, Mp - M), (0, Kp - K)))
    if Kp != K or Np != N:
        w = jnp.pad(w, ((0, Kp - K), (0, Np - N)))
    if Np != N:
        b = jnp.pad(b, ((0, 0), (0, Np - N)))

    grid = (Mp // tm, Np // tn, Kp // tk)
    cost = pl.CostEstimate(
        flops=2 * Mp * Np * Kp,
        transcendentals=0,
        bytes_accessed=(Mp * Kp * x2d.dtype.itemsize + Kp * Np * 2
                        + Np * 4 + Mp * Np * 2))

    out = pl.pallas_call(
        _matmul_bias_kernel,
        out_shape=jax.ShapeDtypeStruct((Mp, Np), out_dtype),
        grid=grid,
        in_specs=[
            pl.BlockSpec((tm, tk), lambda i, j, k: (i, k)),
            pl.BlockSpec((tk, tn), lambda i, j, k: (k, j)),
            pl.BlockSpec((1, tn), lambda i, j, k: (0, j)),
        ],
        out_specs=pl.BlockSpec((tm, tn), lambda i, j, k: (i, j)),
        scratch_shapes=[pltpu.VMEM((tm, tn), jnp.float32)],
        compiler_params=pltpu.CompilerParams(
            dimension_semantics=("parallel", "parallel", "arbitrary"),
            vmem_limit_bytes=32 * 1024 * 1024),
        cost_estimate=cost,
    )(x2d, w, b)

    if Mp != M or Np != N:
        out = out[:M, :N]
    return out


# =========================================================================
# Time-chunked LSTM recurrence kernel.
#   grid = (direction, num_chunks); each step runs `t_chunk` LSTM steps.
#   h/c live in VMEM scratch across chunks; W_hh stays VMEM-resident per dir.
# =========================================================================

def _lstm_chunk_kernel(xg_ref, whh_ref, o_ref, h_ref, c_ref, *,
                       hid_pad, t_chunk, seq_len, t_total):
    d = pl.program_id(0)                     # direction (0 fwd, 1 bwd)
    c = pl.program_id(1)                     # chunk counter (processing order)
    nc = pl.num_programs(1)

    @pl.when(c == 0)
    def _():
        h_ref[...] = jnp.zeros_like(h_ref)
        c_ref[...] = jnp.zeros_like(c_ref)

    Hp = hid_pad
    w = whh_ref[0]                           # (Hp, 4*Hp) bf16, loop-invariant

    # Global time base of this chunk (reverse direction walks chunks backwards).
    chunk_blk = c + d * (nc - 1 - 2 * c)
    chunk_base = chunk_blk * t_chunk
    need_mask = seq_len < t_total            # static: only if time was padded

    def step(tt, carry):
        h_prev, c_prev = carry
        # Local step index inside the chunk (reversed for the backward dir).
        local = tt + d * (t_chunk - 1 - 2 * tt)
        xg = xg_ref[local].astype(jnp.float32)          # (B, 4*Hp)
        gates = xg + jnp.dot(h_prev.astype(w.dtype), w,
                             preferred_element_type=jnp.float32)
        # PyTorch gate order: i, f, g, o (each Hp lanes, 128-aligned slices).
        i_g = jax.nn.sigmoid(gates[:, 0:Hp])
        f_g = jax.nn.sigmoid(gates[:, Hp:2 * Hp])
        g_g = jnp.tanh(gates[:, 2 * Hp:3 * Hp])
        o_g = jax.nn.sigmoid(gates[:, 3 * Hp:4 * Hp])
        c_new = f_g * c_prev + i_g * g_g
        h_new = o_g * jnp.tanh(c_new)
        if need_mask:
            # Skip the artificial time padding (t >= seq_len): keep the state
            # unchanged so the valid steps are unaffected (critical for the
            # reverse direction, which sees the padding first).
            valid = (chunk_base + local) < seq_len
            h_new = jnp.where(valid, h_new, h_prev)
            c_new = jnp.where(valid, c_new, c_prev)
        o_ref[local] = h_new.astype(o_ref.dtype)
        return (h_new, c_new)

    h_fin, c_fin = lax.fori_loop(0, t_chunk, step, (h_ref[...], c_ref[...]))
    h_ref[...] = h_fin
    c_ref[...] = c_fin


def lstm_recurrence(pre_gates, w_hh, *, seq_len, t_chunk, out_dtype):
    """Run the sequential LSTM recurrence for all directions.

    pre_gates: (T_pad, B, D*4*Hp) bf16 -- x_t @ W_ih^T + b, time-major layout
    w_hh:      (D, Hp, 4*Hp)      bf16
    returns hidden states (T_pad, B, D*Hp) in `out_dtype`
    (columns [fwd Hp | bwd Hp], the next layer's matmul input layout).
    """
    T_pad, B, DG = pre_gates.shape
    D, Hp, G4 = w_hh.shape
    assert G4 == 4 * Hp and DG == D * 4 * Hp
    assert T_pad % t_chunk == 0
    NC = T_pad // t_chunk

    def blk_idx(d, c):
        # Forward direction: chunks 0..NC-1; backward: NC-1..0.
        return (c + d * (NC - 1 - 2 * c), 0, d)

    kernel = functools.partial(_lstm_chunk_kernel, hid_pad=Hp,
                               t_chunk=t_chunk, seq_len=seq_len,
                               t_total=T_pad)

    return pl.pallas_call(
        kernel,
        out_shape=jax.ShapeDtypeStruct((T_pad, B, D * Hp), out_dtype),
        grid=(D, NC),
        in_specs=[
            pl.BlockSpec((t_chunk, B, 4 * Hp), blk_idx),
            pl.BlockSpec((1, Hp, 4 * Hp), lambda d, c: (d, 0, 0)),
        ],
        out_specs=pl.BlockSpec((t_chunk, B, Hp), blk_idx),
        scratch_shapes=[pltpu.VMEM((B, Hp), jnp.float32),
                        pltpu.VMEM((B, Hp), jnp.float32)],
        compiler_params=pltpu.CompilerParams(
            # Direction axis is parallel (2x on v7x's 2 TensorCores); the time
            # axis is the sequential carry.
            dimension_semantics=("parallel", "arbitrary"),
            vmem_limit_bytes=32 * 1024 * 1024),
    )(pre_gates, w_hh)


# =========================================================================
# Full encoder forward (matches RNNEncoder.forward semantics).
# =========================================================================

def lstm_encoder_forward(feat, feat_len, params, hid_dim, *, t_chunk=32):
    """feat: (B, T, F) float32; feat_len: (B,) int.

    Returns (out, out_len) with out: (B, T, hid_dim * num_directions) f32 and
    out_len == feat_len (the reference module passes lengths straight through).
    """
    B, T, F = feat.shape
    layers = params["layers"]
    D, Hp, _ = layers[0]["w_hh"].shape
    H = hid_dim

    tc = t_chunk if T >= t_chunk else T
    T_pad = _round_up(T, tc)

    # The only input-side transpose: batch-first -> time-major.
    x = jnp.swapaxes(feat, 0, 1)                         # (T, B, F)
    if T_pad != T:
        x = jnp.pad(x, ((0, T_pad - T), (0, 0), (0, 0)))
    x2d = x.reshape(T_pad * B, F)

    hid = None
    n_layers = len(layers)
    for li, p in enumerate(layers):
        last = li == n_layers - 1
        # 1) Input projection for every timestep and both directions in one
        #    tiled MXU matmul; output already in the recurrence's layout.
        pre = linear(x2d, p["w_in"], p["b"], out_dtype=jnp.bfloat16)
        pre = pre.reshape(T_pad, B, D * 4 * Hp)          # leading-dim split: free
        # 2) Sequential recurrence, time-chunked, h/c resident in VMEM.
        hid = lstm_recurrence(pre, p["w_hh"], seq_len=T, t_chunk=tc,
                              out_dtype=jnp.float32 if last else jnp.bfloat16)
        # TODO(synk): training-mode inter-layer dropout is not modeled.
        x2d = hid.reshape(T_pad * B, D * Hp)             # next layer input: free

    # Strip the lane padding (Hp -> H per direction) and go back to batch-first.
    if D == 2:
        out = jnp.concatenate([hid[:, :, :H], hid[:, :, Hp:Hp + H]], axis=-1)
    else:
        out = hid[:, :, :H]
    out = jnp.swapaxes(out, 0, 1)                        # (B, T_pad, D*H)
    if T_pad != T:
        out = out[:, :T, :]
    return out, feat_len


# =========================================================================
# Deterministic synthetic parameters (PyTorch nn.LSTM-style init), pre-packed
# into the kernel layout:
#   w_in : (K, D*4*Hp)   bf16  -- [W_ih^T dir0 | dir1], gates i,f,g,o, each
#                                 gate's H columns zero-padded to Hp
#   w_hh : (D, Hp, 4*Hp) bf16  -- W_hh^T per direction, zero-padded likewise
#   b    : (1, D*4*Hp)   f32   -- b_ih + b_hh, zero in padded gate columns
# The zero padding keeps the padded hidden lanes exactly 0 through time, so
# the valid lanes compute exactly the unpadded LSTM.
# =========================================================================

def init_params(key, in_dim, hid_dim, n_layers, bidirectional=True):
    D = 2 if bidirectional else 1
    H = hid_dim
    Hp = _round_up(H, 128)
    scale = 1.0 / math.sqrt(H)
    counter = [0]

    def uni(shape):
        counter[0] += 1
        return jax.random.uniform(jax.random.fold_in(key, counter[0]),
                                  shape, jnp.float32, -scale, scale)

    layers = []
    for layer in range(n_layers):
        if layer == 0:
            k_in = in_dim
            w_in = jnp.zeros((k_in, D, 4, Hp), jnp.float32)
            w_in = w_in.at[:, :, :, :H].set(uni((k_in, D, 4, H)))
        else:
            k_in = D * Hp
            w_in = jnp.zeros((D, Hp, D, 4, Hp), jnp.float32)
            w_in = w_in.at[:, :H, :, :, :H].set(uni((D, H, D, 4, H)))
            w_in = w_in.reshape(k_in, D, 4, Hp)
        w_in = w_in.reshape(k_in, D * 4 * Hp).astype(jnp.bfloat16)

        w_hh = jnp.zeros((D, Hp, 4, Hp), jnp.float32)
        w_hh = w_hh.at[:, :H, :, :H].set(uni((D, H, 4, H)))
        w_hh = w_hh.reshape(D, Hp, 4 * Hp).astype(jnp.bfloat16)

        b = jnp.zeros((D, 4, Hp), jnp.float32)
        b = b.at[:, :, :H].set(uni((D, 4, H)) + uni((D, 4, H)))  # b_ih + b_hh
        b = b.reshape(1, D * 4 * Hp)

        layers.append(dict(w_in=w_in, w_hh=w_hh, b=b))
    return dict(layers=layers)


# =========================================================================

if __name__ == "__main__":
    B, T, in_dim = 2, 64, 16
    hid_dim, n_layers = 32, 2
    bidirectional = True

    key = jax.random.PRNGKey(0)
    k_feat, k_param = jax.random.split(key)
    feat = jax.random.normal(k_feat, (B, T, in_dim), dtype=jnp.float32)
    feat_len = jnp.array([T, T - 5], dtype=jnp.int32)

    params = init_params(k_param, in_dim, hid_dim, n_layers,
                         bidirectional=bidirectional)

    fwd = jax.jit(lstm_encoder_forward, static_argnames=("hid_dim", "t_chunk"))
    out, out_len = fwd(feat, feat_len, params, hid_dim=hid_dim)
    out = jax.block_until_ready(out)
    out_len = jax.block_until_ready(out_len)

    n_dir = 2 if bidirectional else 1
    assert out.shape == (B, T, n_dir * hid_dim), out.shape
    assert out.dtype == jnp.float32, out.dtype
    assert out_len.shape == (B,), out_len.shape
    assert bool(jnp.all(out_len == feat_len))
    assert bool(jnp.all(jnp.isfinite(out)))
    print("KERNEL_OK")
</pallas_src>

<mosaic_0001>
module attributes {stable_mosaic.version = 11 : i64} {
  func.func @_matmul_bias_kernel(%arg0: i32, %arg1: i32, %arg2: i32, %arg3: memref<128x16xf32, #tpu.memory_space<vmem>>, %arg4: memref<16x512xbf16, #tpu.memory_space<vmem>>, %arg5: memref<1x512xf32, #tpu.memory_space<vmem>>, %arg6: memref<128x512xbf16, #tpu.memory_space<vmem>>, %arg7: memref<128x512xf32, #tpu.memory_space<vmem>>) attributes {dimension_semantics = [#tpu.dimension_semantics<parallel>, #tpu.dimension_semantics<parallel>, #tpu.dimension_semantics<arbitrary>], iteration_bounds = array<i64: 1, 2, 1>, scalar_prefetch = 0 : i64, scratch_operands = 1 : i64, tpu.core_type = #tpu.core_type<tc>, window_params = [{transform_indices = @transform_0, window_bounds = array<i64: 128, 16>}, {transform_indices = @transform_1, window_bounds = array<i64: 16, 512>}, {transform_indices = @transform_2, window_bounds = array<i64: 1, 512>}, {transform_indices = @transform_3, window_bounds = array<i64: 128, 512>}]} {
    %c0_i32 = arith.constant 0 : i32
    %0 = arith.cmpi eq, %arg2, %c0_i32 : i32
    %1 = arith.extui %0 : i1 to i32
    %c0_i32_0 = arith.constant 0 : i32
    %2 = arith.cmpi ne, %1, %c0_i32_0 : i32
    scf.if %2 {
      %cst_10 = arith.constant 0.000000e+00 : f32
      %13 = vector.broadcast %cst_10 : f32 to vector<128x512xf32>
      %c0_11 = arith.constant 0 : index
      %c0_12 = arith.constant 0 : index
      %14 = vector.load %arg7[%c0_11, %c0_12] : memref<128x512xf32, #tpu.memory_space<vmem>>, vector<128x512xf32>
      tpu.vector_store %arg7[%c0_11, %c0_12], %13 {strides = array<i32>} : memref<128x512xf32, #tpu.memory_space<vmem>>, vector<128x512xf32>,
    } else {
    }
    %c0 = arith.constant 0 : index
    %c0_1 = arith.constant 0 : index
    %3 = vector.load %arg7[%c0, %c0_1] : memref<128x512xf32, #tpu.memory_space<vmem>>, vector<128x512xf32>
    %c0_2 = arith.constant 0 : index
    %c0_3 = arith.constant 0 : index
    %4 = vector.load %arg3[%c0_2, %c0_3] : memref<128x16xf32, #tpu.memory_space<vmem>>, vector<128x16xf32>
    %5 = arith.truncf %4 : vector<128x16xf32> to vector<128x16xbf16>
    %c0_4 = arith.constant 0 : index
    %c0_5 = arith.constant 0 : index
    %6 = vector.load %arg4[%c0_4, %c0_5] : memref<16x512xbf16, #tpu.memory_space<vmem>>, vector<16x512xbf16>
    %cst = arith.constant dense<0.000000e+00> : vector<128x512xf32>
    %7 = tpu.matmul %5, %6, %cst {dimension_numbers = #tpu.dot_dimension_numbers<[1], [0], [0], [1], [0, 0, 1, 1], [], []>} : vector<128x16xbf16>, vector<16x512xbf16>, vector<128x512xf32> -> vector<128x512xf32>
    %8 = arith.addf %3, %7 : vector<128x512xf32>
    %c0_6 = arith.constant 0 : index
    %c0_7 = arith.constant 0 : index
    %9 = vector.load %arg7[%c0_6, %c0_7] : memref<128x512xf32, #tpu.memory_space<vmem>>, vector<128x512xf32>
    tpu.vector_store %arg7[%c0_6, %c0_7], %8 {strides = array<i32>} : memref<128x512xf32, #tpu.memory_space<vmem>>, vector<128x512xf32>,
    %c0_i32_8 = arith.constant 0 : i32
    %10 = arith.cmpi eq, %arg2, %c0_i32_8 : i32
    %11 = arith.extui %10 : i1 to i32
    %c0_i32_9 = arith.constant 0 : i32
    %12 = arith.cmpi ne, %11, %c0_i32_9 : i32
    scf.if %12 {
      %c0_10 = arith.constant 0 : index
      %c0_11 = arith.constant 0 : index
      %13 = vector.load %arg7[%c0_10, %c0_11] : memref<128x512xf32, #tpu.memory_space<vmem>>, vector<128x512xf32>
      %c0_12 = arith.constant 0 : index
      %c0_13 = arith.constant 0 : index
      %14 = vector.load %arg5[%c0_12, %c0_13] : memref<1x512xf32, #tpu.memory_space<vmem>>, vector<1x512xf32>
      %15 = vector.broadcast %14 : vector<1x512xf32> to vector<128x512xf32>
      %16 = arith.addf %13, %15 : vector<128x512xf32>
      %17 = arith.truncf %16 : vector<128x512xf32> to vector<128x512xbf16>
      %c0_14 = arith.constant 0 : index
      %c0_15 = arith.constant 0 : index
      %18 = vector.load %arg6[%c0_14, %c0_15] : memref<128x512xbf16, #tpu.memory_space<vmem>>, vector<128x512xbf16>
      tpu.vector_store %arg6[%c0_14, %c0_15], %17 {strides = array<i32>} : memref<128x512xbf16, #tpu.memory_space<vmem>>, vector<128x512xbf16>,
    } else {
    }
    return
  }
  func.func @transform_0(%arg0: i32, %arg1: i32, %arg2: i32) -> (i32, i32) {
    %c0_i32 = arith.constant 0 : i32
    return %arg0, %arg2 : i32, i32
  }
  func.func @transform_1(%arg0: i32, %arg1: i32, %arg2: i32) -> (i32, i32) {
    %c0_i32 = arith.constant 0 : i32
    return %arg2, %arg1 : i32, i32
  }
  func.func @transform_2(%arg0: i32, %arg1: i32, %arg2: i32) -> (i32, i32) {
    %c0_i32 = arith.constant 0 : i32
    %c0_i32_0 = arith.constant 0 : i32
    return %c0_i32, %arg1 : i32, i32
  }
  func.func @transform_3(%arg0: i32, %arg1: i32, %arg2: i32) -> (i32, i32) {
    %c0_i32 = arith.constant 0 : i32
    return %arg0, %arg1 : i32, i32
  }
}

module attributes {stable_mosaic.version = 11 : i64} {
  func.func @_lstm_chunk_kernel(%arg0: i32, %arg1: i32, %arg2: memref<32x2x512xbf16, #tpu.memory_space<vmem>>, %arg3: memref<1x128x512xbf16, #tpu.memory_space<vmem>>, %arg4: memref<32x2x128xbf16, #tpu.memory_space<vmem>>, %arg5: memref<2x128xf32, #tpu.memory_space<vmem>>, %arg6: memref<2x128xf32, #tpu.memory_space<vmem>>) attributes {dimension_semantics = [#tpu.dimension_semantics<parallel>, #tpu.dimension_semantics<arbitrary>], iteration_bounds = array<i64: 2, 2>, scalar_prefetch = 0 : i64, scratch_operands = 2 : i64, tpu.core_type = #tpu.core_type<tc>, window_params = [{transform_indices = @transform_0, window_bounds = array<i64: 32, 2, 512>}, {transform_indices = @transform_1, window_bounds = array<i64: 1, 128, 512>}, {transform_indices = @transform_2, window_bounds = array<i64: 32, 2, 128>}]} {
    %c0_i32 = arith.constant 0 : i32
    %0 = arith.cmpi eq, %arg1, %c0_i32 : i32
    %1 = arith.extui %0 : i1 to i32
    %c0_i32_0 = arith.constant 0 : i32
    %2 = arith.cmpi ne, %1, %c0_i32_0 : i32
    scf.if %2 {
      %cst = arith.constant 0.000000e+00 : f32
      %11 = vector.broadcast %cst : f32 to vector<2x128xf32>
      %c0_13 = arith.constant 0 : index
      %c0_14 = arith.constant 0 : index
      %12 = vector.load %arg5[%c0_13, %c0_14] : memref<2x128xf32, #tpu.memory_space<vmem>>, vector<2x128xf32>
      tpu.vector_store %arg5[%c0_13, %c0_14], %11 {strides = array<i32>} : memref<2x128xf32, #tpu.memory_space<vmem>>, vector<2x128xf32>,
      %cst_15 = arith.constant 0.000000e+00 : f32
      %13 = vector.broadcast %cst_15 : f32 to vector<2x128xf32>
      %c0_16 = arith.constant 0 : index
      %c0_17 = arith.constant 0 : index
      %14 = vector.load %arg6[%c0_16, %c0_17] : memref<2x128xf32, #tpu.memory_space<vmem>>, vector<2x128xf32>
      tpu.vector_store %arg6[%c0_16, %c0_17], %13 {strides = array<i32>} : memref<2x128xf32, #tpu.memory_space<vmem>>, vector<2x128xf32>,
    } else {
    }
    %c0 = arith.constant 0 : index
    %c0_1 = arith.constant 0 : index
    %c0_2 = arith.constant 0 : index
    %3 = vector.load %arg3[%c0, %c0_1, %c0_2] : memref<1x128x512xbf16, #tpu.memory_space<vmem>>, vector<1x128x512xbf16>
    %4 = vector.shape_cast %3 : vector<1x128x512xbf16> to vector<128x512xbf16>
    %c0_3 = arith.constant 0 : index
    %c0_4 = arith.constant 0 : index
    %5 = vector.load %arg5[%c0_3, %c0_4] : memref<2x128xf32, #tpu.memory_space<vmem>>, vector<2x128xf32>
    %c0_5 = arith.constant 0 : index
    %c0_6 = arith.constant 0 : index
    %6 = vector.load %arg6[%c0_5, %c0_6] : memref<2x128xf32, #tpu.memory_space<vmem>>, vector<2x128xf32>
    %c0_i32_7 = arith.constant 0 : i32
    %c32_i32 = arith.constant 32 : i32
    %7 = arith.addi %c0_i32_7, %c32_i32 : i32
    %c1_i32 = arith.constant 1 : i32
    %8:2 = scf.for %arg7 = %c0_i32_7 to %7 step %c1_i32 iter_args(%arg8 = %5, %arg9 = %6) -> (vector<2x128xf32>, vector<2x128xf32>)  : i32 {
      %c2_i32 = arith.constant 2 : i32
      %11 = arith.muli %c2_i32, %arg7 : i32
      %c31_i32 = arith.constant 31 : i32
      %12 = arith.subi %c31_i32, %11 : i32
      %13 = arith.muli %arg0, %12 : i32
      %14 = arith.addi %arg7, %13 : i32
      %15 = arith.index_cast %14 : i32 to index
      %c0_13 = arith.constant 0 : index
      %c0_14 = arith.constant 0 : index
      %16 = vector.load %arg2[%15, %c0_13, %c0_14] : memref<32x2x512xbf16, #tpu.memory_space<vmem>>, vector<1x2x512xbf16>
      %17 = vector.shape_cast %16 : vector<1x2x512xbf16> to vector<2x512xbf16>
      %18 = arith.extf %17 : vector<2x512xbf16> to vector<2x512xf32>
      %19 = arith.truncf %arg8 : vector<2x128xf32> to vector<2x128xbf16>
      %cst = arith.constant dense<0.000000e+00> : vector<2x512xf32>
      %20 = tpu.matmul %19, %4, %cst {dimension_numbers = #tpu.dot_dimension_numbers<[1], [0], [0], [1], [0, 0, 1, 1], [], []>} : vector<2x128xbf16>, vector<128x512xbf16>, vector<2x512xf32> -> vector<2x512xf32>
      %21 = arith.addf %18, %20 : vector<2x512xf32>
      %22 = vector.extract_strided_slice %21 {offsets = [0, 0], sizes = [2, 128], strides = [1, 1]} : vector<2x512xf32> to vector<2x128xf32>
      %23 = arith.negf %22 : vector<2x128xf32>
      %24 = math.exp %23 : vector<2x128xf32>
      %cst_15 = arith.constant 1.000000e+00 : f32
      %25 = vector.broadcast %cst_15 : f32 to vector<2x128xf32>
      %26 = arith.addf %25, %24 : vector<2x128xf32>
      %27 = arith.divf %25, %26 : vector<2x128xf32>
      %28 = vector.extract_strided_slice %21 {offsets = [0, 128], sizes = [2, 128], strides = [1, 1]} : vector<2x512xf32> to vector<2x128xf32>
      %29 = arith.negf %28 : vector<2x128xf32>
      %30 = math.exp %29 : vector<2x128xf32>
      %cst_16 = arith.constant 1.000000e+00 : f32
      %31 = vector.broadcast %cst_16 : f32 to vector<2x128xf32>
      %32 = arith.addf %31, %30 : vector<2x128xf32>
      %33 = arith.divf %31, %32 : vector<2x128xf32>
      %34 = vector.extract_strided_slice %21 {offsets = [0, 256], sizes = [2, 128], strides = [1, 1]} : vector<2x512xf32> to vector<2x128xf32>
      %35 = math.tanh %34 : vector<2x128xf32>
      %36 = vector.extract_strided_slice %21 {offsets = [0, 384], sizes = [2, 128], strides = [1, 1]} : vector<2x512xf32> to vector<2x128xf32>
      %37 = arith.negf %36 : vector<2x128xf32>
      %38 = math.exp %37 : vector<2x128xf32>
      %cst_17 = arith.constant 1.000000e+00 : f32
      %39 = vector.broadcast %cst_17 : f32 to vector<2x128xf32>
      %40 = arith.addf %39, %38 : vector<2x128xf32>
      %41 = arith.divf %39, %40 : vector<2x128xf32>
      %42 = arith.mulf %33, %arg9 : vector<2x128xf32>
      %43 = arith.mulf %27, %35 : vector<2x128xf32>
      %44 = arith.addf %42, %43 : vector<2x128xf32>
      %45 = math.tanh %44 : vector<2x128xf32>
      %46 = arith.mulf %41, %45 : vector<2x128xf32>
      %47 = arith.truncf %46 : vector<2x128xf32> to vector<2x128xbf16>
      %48 = arith.index_cast %14 : i32 to index
      %c0_18 = arith.constant 0 : index
      %c0_19 = arith.constant 0 : index
      %49 = vector.load %arg4[%48, %c0_18, %c0_19] : memref<32x2x128xbf16, #tpu.memory_space<vmem>>, vector<1x2x128xbf16>
      %50 = vector.shape_cast %49 : vector<1x2x128xbf16> to vector<2x128xbf16>
      %51 = vector.shape_cast %47 : vector<2x128xbf16> to vector<1x2x128xbf16>
      tpu.vector_store %arg4[%48, %c0_18, %c0_19], %51 {strides = array<i32>} : memref<32x2x128xbf16, #tpu.memory_space<vmem>>, vector<1x2x128xbf16>,
      scf.yield %46, %44 : vector<2x128xf32>, vector<2x128xf32>
    }
    %c32_i32_8 = arith.constant 32 : i32
    %c0_9 = arith.constant 0 : index
    %c0_10 = arith.constant 0 : index
    %9 = vector.load %arg5[%c0_9, %c0_10] : memref<2x128xf32, #tpu.memory_space<vmem>>, vector<2x128xf32>
    tpu.vector_store %arg5[%c0_9, %c0_10], %8#0 {strides = array<i32>} : memref<2x128xf32, #tpu.memory_space<vmem>>, vector<2x128xf32>,
    %c0_11 = arith.constant 0 : index
    %c0_12 = arith.constant 0 : index
    %10 = vector.load %arg6[%c0_11, %c0_12] : memref<2x128xf32, #tpu.memory_space<vmem>>, vector<2x128xf32>
    tpu.vector_store %arg6[%c0_11, %c0_12], %8#1 {strides = array<i32>} : memref<2x128xf32, #tpu.memory_space<vmem>>, vector<2x128xf32>,
    return
  }
  func.func @transform_0(%arg0: i32, %arg1: i32) -> (i32, i32, i32) {
    %c2_i32 = arith.constant 2 : i32
    %0 = arith.muli %c2_i32, %arg1 : i32
    %c1_i32 = arith.constant 1 : i32
    %1 = arith.subi %c1_i32, %0 : i32
    %2 = arith.muli %arg0, %1 : i32
    %3 = arith.addi %arg1, %2 : i32
    %c0_i32 = arith.constant 0 : i32
    %c0_i32_0 = arith.constant 0 : i32
    return %3, %c0_i32, %arg0 : i32, i32, i32
  }
  func.func @transform_1(%arg0: i32, %arg1: i32) -> (i32, i32, i32) {
    %c0_i32 = arith.constant 0 : i32
    %c0_i32_0 = arith.constant 0 : i32
    %c0_i32_1 = arith.constant 0 : i32
    return %arg0, %c0_i32, %c0_i32_0 : i32, i32, i32
  }
  func.func @transform_2(%arg0: i32, %arg1: i32) -> (i32, i32, i32) {
    %c2_i32 = arith.constant 2 : i32
    %0 = arith.muli %c2_i32, %arg1 : i32
    %c1_i32 = arith.constant 1 : i32
    %1 = arith.subi %c1_i32, %0 : i32
    %2 = arith.muli %arg0, %1 : i32
    %3 = arith.addi %arg1, %2 : i32
    %c0_i32 = arith.constant 0 : i32
    %c0_i32_0 = arith.constant 0 : i32
    return %3, %c0_i32, %arg0 : i32, i32, i32
  }
}

module attributes {stable_mosaic.version = 11 : i64} {
  func.func @_matmul_bias_kernel(%arg0: i32, %arg1: i32, %arg2: i32, %arg3: memref<128x256xbf16, #tpu.memory_space<vmem>>, %arg4: memref<256x512xbf16, #tpu.memory_space<vmem>>, %arg5: memref<1x512xf32, #tpu.memory_space<vmem>>, %arg6: memref<128x512xbf16, #tpu.memory_space<vmem>>, %arg7: memref<128x512xf32, #tpu.memory_space<vmem>>) attributes {dimension_semantics = [#tpu.dimension_semantics<parallel>, #tpu.dimension_semantics<parallel>, #tpu.dimension_semantics<arbitrary>], iteration_bounds = array<i64: 1, 2, 1>, scalar_prefetch = 0 : i64, scratch_operands = 1 : i64, tpu.core_type = #tpu.core_type<tc>, window_params = [{transform_indices = @transform_0, window_bounds = array<i64: 128, 256>}, {transform_indices = @transform_1, window_bounds = array<i64: 256, 512>}, {transform_indices = @transform_2, window_bounds = array<i64: 1, 512>}, {transform_indices = @transform_3, window_bounds = array<i64: 128, 512>}]} {
    %c0_i32 = arith.constant 0 : i32
    %0 = arith.cmpi eq, %arg2, %c0_i32 : i32
    %1 = arith.extui %0 : i1 to i32
    %c0_i32_0 = arith.constant 0 : i32
    %2 = arith.cmpi ne, %1, %c0_i32_0 : i32
    scf.if %2 {
      %cst_10 = arith.constant 0.000000e+00 : f32
      %12 = vector.broadcast %cst_10 : f32 to vector<128x512xf32>
      %c0_11 = arith.constant 0 : index
      %c0_12 = arith.constant 0 : index
      %13 = vector.load %arg7[%c0_11, %c0_12] : memref<128x512xf32, #tpu.memory_space<vmem>>, vector<128x512xf32>
      tpu.vector_store %arg7[%c0_11, %c0_12], %12 {strides = array<i32>} : memref<128x512xf32, #tpu.memory_space<vmem>>, vector<128x512xf32>,
    } else {
    }
    %c0 = arith.constant 0 : index
    %c0_1 = arith.constant 0 : index
    %3 = vector.load %arg7[%c0, %c0_1] : memref<128x512xf32, #tpu.memory_space<vmem>>, vector<128x512xf32>
    %c0_2 = arith.constant 0 : index
    %c0_3 = arith.constant 0 : index
    %4 = vector.load %arg3[%c0_2, %c0_3] : memref<128x256xbf16, #tpu.memory_space<vmem>>, vector<128x256xbf16>
    %c0_4 = arith.constant 0 : index
    %c0_5 = arith.constant 0 : index
    %5 = vector.load %arg4[%c0_4, %c0_5] : memref<256x512xbf16, #tpu.memory_space<vmem>>, vector<256x512xbf16>
    %cst = arith.constant dense<0.000000e+00> : vector<128x512xf32>
    %6 = tpu.matmul %4, %5, %cst {dimension_numbers = #tpu.dot_dimension_numbers<[1], [0], [0], [1], [0, 0, 1, 1], [], []>} : vector<128x256xbf16>, vector<256x512xbf16>, vector<128x512xf32> -> vector<128x512xf32>
    %7 = arith.addf %3, %6 : vector<128x512xf32>
    %c0_6 = arith.constant 0 : index
    %c0_7 = arith.constant 0 : index
    %8 = vector.load %arg7[%c0_6, %c0_7] : memref<128x512xf32, #tpu.memory_space<vmem>>, vector<128x512xf32>
    tpu.vector_store %arg7[%c0_6, %c0_7], %7 {strides = array<i32>} : memref<128x512xf32, #tpu.memory_space<vmem>>, vector<128x512xf32>,
    %c0_i32_8 = arith.constant 0 : i32
    %9 = arith.cmpi eq, %arg2, %c0_i32_8 : i32
    %10 = arith.extui %9 : i1 to i32
    %c0_i32_9 = arith.constant 0 : i32
    %11 = arith.cmpi ne, %10, %c0_i32_9 : i32
    scf.if %11 {
      %c0_10 = arith.constant 0 : index
      %c0_11 = arith.constant 0 : index
      %12 = vector.load %arg7[%c0_10, %c0_11] : memref<128x512xf32, #tpu.memory_space<vmem>>, vector<128x512xf32>
      %c0_12 = arith.constant 0 : index
      %c0_13 = arith.constant 0 : index
      %13 = vector.load %arg5[%c0_12, %c0_13] : memref<1x512xf32, #tpu.memory_space<vmem>>, vector<1x512xf32>
      %14 = vector.broadcast %13 : vector<1x512xf32> to vector<128x512xf32>
      %15 = arith.addf %12, %14 : vector<128x512xf32>
      %16 = arith.truncf %15 : vector<128x512xf32> to vector<128x512xbf16>
      %c0_14 = arith.constant 0 : index
      %c0_15 = arith.constant 0 : index
      %17 = vector.load %arg6[%c0_14, %c0_15] : memref<128x512xbf16, #tpu.memory_space<vmem>>, vector<128x512xbf16>
      tpu.vector_store %arg6[%c0_14, %c0_15], %16 {strides = array<i32>} : memref<128x512xbf16, #tpu.memory_space<vmem>>, vector<128x512xbf16>,
    } else {
    }
    return
  }
  func.func @transform_0(%arg0: i32, %arg1: i32, %arg2: i32) -> (i32, i32) {
    %c0_i32 = arith.constant 0 : i32
    return %arg0, %arg2 : i32, i32
  }
  func.func @transform_1(%arg0: i32, %arg1: i32, %arg2: i32) -> (i32, i32) {
    %c0_i32 = arith.constant 0 : i32
    return %arg2, %arg1 : i32, i32
  }
  func.func @transform_2(%arg0: i32, %arg1: i32, %arg2: i32) -> (i32, i32) {
    %c0_i32 = arith.constant 0 : i32
    %c0_i32_0 = arith.constant 0 : i32
    return %c0_i32, %arg1 : i32, i32
  }
  func.func @transform_3(%arg0: i32, %arg1: i32, %arg2: i32) -> (i32, i32) {
    %c0_i32 = arith.constant 0 : i32
    return %arg0, %arg1 : i32, i32
  }
}

module attributes {stable_mosaic.version = 11 : i64} {
  func.func @_lstm_chunk_kernel(%arg0: i32, %arg1: i32, %arg2: memref<32x2x512xbf16, #tpu.memory_space<vmem>>, %arg3: memref<1x128x512xbf16, #tpu.memory_space<vmem>>, %arg4: memref<32x2x128xf32, #tpu.memory_space<vmem>>, %arg5: memref<2x128xf32, #tpu.memory_space<vmem>>, %arg6: memref<2x128xf32, #tpu.memory_space<vmem>>) attributes {dimension_semantics = [#tpu.dimension_semantics<parallel>, #tpu.dimension_semantics<arbitrary>], iteration_bounds = array<i64: 2, 2>, scalar_prefetch = 0 : i64, scratch_operands = 2 : i64, tpu.core_type = #tpu.core_type<tc>, window_params = [{transform_indices = @transform_0, window_bounds = array<i64: 32, 2, 512>}, {transform_indices = @transform_1, window_bounds = array<i64: 1, 128, 512>}, {transform_indices = @transform_2, window_bounds = array<i64: 32, 2, 128>}]} {
    %c0_i32 = arith.constant 0 : i32
    %0 = arith.cmpi eq, %arg1, %c0_i32 : i32
    %1 = arith.extui %0 : i1 to i32
    %c0_i32_0 = arith.constant 0 : i32
    %2 = arith.cmpi ne, %1, %c0_i32_0 : i32
    scf.if %2 {
      %cst = arith.constant 0.000000e+00 : f32
      %11 = vector.broadcast %cst : f32 to vector<2x128xf32>
      %c0_13 = arith.constant 0 : index
      %c0_14 = arith.constant 0 : index
      %12 = vector.load %arg5[%c0_13, %c0_14] : memref<2x128xf32, #tpu.memory_space<vmem>>, vector<2x128xf32>
      tpu.vector_store %arg5[%c0_13, %c0_14], %11 {strides = array<i32>} : memref<2x128xf32, #tpu.memory_space<vmem>>, vector<2x128xf32>,
      %cst_15 = arith.constant 0.000000e+00 : f32
      %13 = vector.broadcast %cst_15 : f32 to vector<2x128xf32>
      %c0_16 = arith.constant 0 : index
      %c0_17 = arith.constant 0 : index
      %14 = vector.load %arg6[%c0_16, %c0_17] : memref<2x128xf32, #tpu.memory_space<vmem>>, vector<2x128xf32>
      tpu.vector_store %arg6[%c0_16, %c0_17], %13 {strides = array<i32>} : memref<2x128xf32, #tpu.memory_space<vmem>>, vector<2x128xf32>,
    } else {
    }
    %c0 = arith.constant 0 : index
    %c0_1 = arith.constant 0 : index
    %c0_2 = arith.constant 0 : index
    %3 = vector.load %arg3[%c0, %c0_1, %c0_2] : memref<1x128x512xbf16, #tpu.memory_space<vmem>>, vector<1x128x512xbf16>
    %4 = vector.shape_cast %3 : vector<1x128x512xbf16> to vector<128x512xbf16>
    %c0_3 = arith.constant 0 : index
    %c0_4 = arith.constant 0 : index
    %5 = vector.load %arg5[%c0_3, %c0_4] : memref<2x128xf32, #tpu.memory_space<vmem>>, vector<2x128xf32>
    %c0_5 = arith.constant 0 : index
    %c0_6 = arith.constant 0 : index
    %6 = vector.load %arg6[%c0_5, %c0_6] : memref<2x128xf32, #tpu.memory_space<vmem>>, vector<2x128xf32>
    %c0_i32_7 = arith.constant 0 : i32
    %c32_i32 = arith.constant 32 : i32
    %7 = arith.addi %c0_i32_7, %c32_i32 : i32
    %c1_i32 = arith.constant 1 : i32
    %8:2 = scf.for %arg7 = %c0_i32_7 to %7 step %c1_i32 iter_args(%arg8 = %5, %arg9 = %6) -> (vector<2x128xf32>, vector<2x128xf32>)  : i32 {
      %c2_i32 = arith.constant 2 : i32
      %11 = arith.muli %c2_i32, %arg7 : i32
      %c31_i32 = arith.constant 31 : i32
      %12 = arith.subi %c31_i32, %11 : i32
      %13 = arith.muli %arg0, %12 : i32
      %14 = arith.addi %arg7, %13 : i32
      %15 = arith.index_cast %14 : i32 to index
      %c0_13 = arith.constant 0 : index
      %c0_14 = arith.constant 0 : index
      %16 = vector.load %arg2[%15, %c0_13, %c0_14] : memref<32x2x512xbf16, #tpu.memory_space<vmem>>, vector<1x2x512xbf16>
      %17 = vector.shape_cast %16 : vector<1x2x512xbf16> to vector<2x512xbf16>
      %18 = arith.extf %17 : vector<2x512xbf16> to vector<2x512xf32>
      %19 = arith.truncf %arg8 : vector<2x128xf32> to vector<2x128xbf16>
      %cst = arith.constant dense<0.000000e+00> : vector<2x512xf32>
      %20 = tpu.matmul %19, %4, %cst {dimension_numbers = #tpu.dot_dimension_numbers<[1], [0], [0], [1], [0, 0, 1, 1], [], []>} : vector<2x128xbf16>, vector<128x512xbf16>, vector<2x512xf32> -> vector<2x512xf32>
      %21 = arith.addf %18, %20 : vector<2x512xf32>
      %22 = vector.extract_strided_slice %21 {offsets = [0, 0], sizes = [2, 128], strides = [1, 1]} : vector<2x512xf32> to vector<2x128xf32>
      %23 = arith.negf %22 : vector<2x128xf32>
      %24 = math.exp %23 : vector<2x128xf32>
      %cst_15 = arith.constant 1.000000e+00 : f32
      %25 = vector.broadcast %cst_15 : f32 to vector<2x128xf32>
      %26 = arith.addf %25, %24 : vector<2x128xf32>
      %27 = arith.divf %25, %26 : vector<2x128xf32>
      %28 = vector.extract_strided_slice %21 {offsets = [0, 128], sizes = [2, 128], strides = [1, 1]} : vector<2x512xf32> to vector<2x128xf32>
      %29 = arith.negf %28 : vector<2x128xf32>
      %30 = math.exp %29 : vector<2x128xf32>
      %cst_16 = arith.constant 1.000000e+00 : f32
      %31 = vector.broadcast %cst_16 : f32 to vector<2x128xf32>
      %32 = arith.addf %31, %30 : vector<2x128xf32>
      %33 = arith.divf %31, %32 : vector<2x128xf32>
      %34 = vector.extract_strided_slice %21 {offsets = [0, 256], sizes = [2, 128], strides = [1, 1]} : vector<2x512xf32> to vector<2x128xf32>
      %35 = math.tanh %34 : vector<2x128xf32>
      %36 = vector.extract_strided_slice %21 {offsets = [0, 384], sizes = [2, 128], strides = [1, 1]} : vector<2x512xf32> to vector<2x128xf32>
      %37 = arith.negf %36 : vector<2x128xf32>
      %38 = math.exp %37 : vector<2x128xf32>
      %cst_17 = arith.constant 1.000000e+00 : f32
      %39 = vector.broadcast %cst_17 : f32 to vector<2x128xf32>
      %40 = arith.addf %39, %38 : vector<2x128xf32>
      %41 = arith.divf %39, %40 : vector<2x128xf32>
      %42 = arith.mulf %33, %arg9 : vector<2x128xf32>
      %43 = arith.mulf %27, %35 : vector<2x128xf32>
      %44 = arith.addf %42, %43 : vector<2x128xf32>
      %45 = math.tanh %44 : vector<2x128xf32>
      %46 = arith.mulf %41, %45 : vector<2x128xf32>
      %47 = arith.index_cast %14 : i32 to index
      %c0_18 = arith.constant 0 : index
      %c0_19 = arith.constant 0 : index
      %48 = vector.load %arg4[%47, %c0_18, %c0_19] : memref<32x2x128xf32, #tpu.memory_space<vmem>>, vector<1x2x128xf32>
      %49 = vector.shape_cast %48 : vector<1x2x128xf32> to vector<2x128xf32>
      %50 = vector.shape_cast %46 : vector<2x128xf32> to vector<1x2x128xf32>
      tpu.vector_store %arg4[%47, %c0_18, %c0_19], %50 {strides = array<i32>} : memref<32x2x128xf32, #tpu.memory_space<vmem>>, vector<1x2x128xf32>,
      scf.yield %46, %44 : vector<2x128xf32>, vector<2x128xf32>
    }
    %c32_i32_8 = arith.constant 32 : i32
    %c0_9 = arith.constant 0 : index
    %c0_10 = arith.constant 0 : index
    %9 = vector.load %arg5[%c0_9, %c0_10] : memref<2x128xf32, #tpu.memory_space<vmem>>, vector<2x128xf32>
    tpu.vector_store %arg5[%c0_9, %c0_10], %8#0 {strides = array<i32>} : memref<2x128xf32, #tpu.memory_space<vmem>>, vector<2x128xf32>,
    %c0_11 = arith.constant 0 : index
    %c0_12 = arith.constant 0 : index
    %10 = vector.load %arg6[%c0_11, %c0_12] : memref<2x128xf32, #tpu.memory_space<vmem>>, vector<2x128xf32>
    tpu.vector_store %arg6[%c0_11, %c0_12], %8#1 {strides = array<i32>} : memref<2x128xf32, #tpu.memory_space<vmem>>, vector<2x128xf32>,
    return
  }
  func.func @transform_0(%arg0: i32, %arg1: i32) -> (i32, i32, i32) {
    %c2_i32 = arith.constant 2 : i32
    %0 = arith.muli %c2_i32, %arg1 : i32
    %c1_i32 = arith.constant 1 : i32
    %1 = arith.subi %c1_i32, %0 : i32
    %2 = arith.muli %arg0, %1 : i32
    %3 = arith.addi %arg1, %2 : i32
    %c0_i32 = arith.constant 0 : i32
    %c0_i32_0 = arith.constant 0 : i32
    return %3, %c0_i32, %arg0 : i32, i32, i32
  }
  func.func @transform_1(%arg0: i32, %arg1: i32) -> (i32, i32, i32) {
    %c0_i32 = arith.constant 0 : i32
    %c0_i32_0 = arith.constant 0 : i32
    %c0_i32_1 = arith.constant 0 : i32
    return %arg0, %c0_i32, %c0_i32_0 : i32, i32, i32
  }
  func.func @transform_2(%arg0: i32, %arg1: i32) -> (i32, i32, i32) {
    %c2_i32 = arith.constant 2 : i32
    %0 = arith.muli %c2_i32, %arg1 : i32
    %c1_i32 = arith.constant 1 : i32
    %1 = arith.subi %c1_i32, %0 : i32
    %2 = arith.muli %arg0, %1 : i32
    %3 = arith.addi %arg1, %2 : i32
    %c0_i32 = arith.constant 0 : i32
    %c0_i32_0 = arith.constant 0 : i32
    return %3, %c0_i32, %arg0 : i32, i32, i32
  }
}

</mosaic_0001>

<bundles_post_ra>
// kernel: lstm_encoder_forward.5
= control target key start
LH: loop header
LB: loop body
LE: loop exit
PB: predicated region body
PF: predicated region fallthrough
CT: control target
= control target key end

     0   :  { %s1273_s9 = smov 0   ;;  %s1275_s10 = smov 0   ;;  %s1716_s0 = inlined_call_operand.vmem [shape: bf16[64,2,1024], index: 0, kind: input, shape index: {}]   ;;  %s1717_s1 = inlined_call_operand.vmem [shape: bf16[2,128,512], index: 1, kind: input, shape index: {}]   ;;  %s1718_s2 = inlined_call_operand.vmem [shape: bf16[64,2,256], index: 2, kind: output, shape index: {}]  }
   0x1   :  { %s1277_s11 = smov 0   ;;  %s1279_s12 = smov 0  }
   0x2   :  { %s1281_s13 = smov 0   ;;  %s1283_s14 = smov 0  }
   0x3   :  { %s1285_s15 = smov 0  }
   0x4 LB: > { %s21_s16 = sadd.s32 1, %s1233_s13  ;;  %s24_s17 = sadd.s32 1, %s1237_s14  ;;  %s1241_s15 = sphi %s1285_s15, %s12_s15   ;;  %s1237_s14 = sphi %s1283_s14, %s1727_s14   ;;  %s1233_s13 = sphi %s1281_s13, %s1726_s13   ;;  %s1229_s12 = sphi %s1279_s12, %s1725_s12   ;;  %s1225_s11 = sphi %s1277_s11, %s1724_s11   ;;  %s1221_s10 = sphi %s1275_s10, %s1723_s10   ;;  %s1217_s9 = sphi %s1273_s9, %s1722_s9  }
   0x5   : > { %p22_p0 = scmp.ge.s32.totalorder %s21_s16, 2  ;;  %s1011_s18 = sadd.s32 4294967295, %s1241_s15  }
   0x6   : > { %s1013_s19 = sshll.u32 %s1233_s13, 1  ;;  %p48_p2 = scmp.ne.s32.totalorder %s1221_s10, %s1217_s9 }
   0x7   : > { %s1729_s16 = smov (%p22_p0, %s21_s16), 0  ;;  %s1731_s17 = smov (!%p22_p0, %s24_s17), %s1237_s14 }
   0x8   : > { %s29_s20 = ssub.s32 1, %s1013_s19  ;;  %s1014_s21 = sshll.u32 %s1729_s16, 1 }
   0x9   : > { %p26_p1 = scmp.ge.s32.totalorder %s1731_s17, 2  ;;  %s30_s22 = smul.u32 %s1237_s14, %s29_s20 }
   0xa   : > { %s33_s23 = ssub.s32 1, %s1014_s21  ;;  %p49_p3 = scmp.eq.s32.totalorder %s1241_s15, 0 }
   0xb   : > { %s1733_s17 = smov (%p26_p1, %s1731_s17), 0  ;;  %s31_s24 = sadd.s32 %s1233_s13, %s30_s22 }
   0xc   : > { %s34_s25 = smul.u32 %s33_s23, %s1733_s17  ;;  %s37_s26 = ssub.s32 %s1237_s14, %s1733_s17 }
   0xd   : > { %p50_p4 = por %p49_p3, %p48_p2  ;;  %p114_p5 = scmp.eq.s32.totalorder %s1011_s18, 3 }
   0xe   : > { %s35_s27 = sadd.s32 %s34_s25, %s1729_s16  ;;  %s41_s3 = sadd.s32 1, %s1221_s10 }
   0xf   : > { %s36_s28 = ssub.s32 %s31_s24, %s35_s27  ;;  %p1327_p6 = por %p114_p5, %p48_p2 }
  0x10   : > { %s38_s30 = sor.u32 %s37_s26, %s36_s28  ;;  %p1018_p8 = scmp.ge.s32.totalorder %s1241_s15, 4 }
  0x11   : > { %p39_p7 = scmp.eq.s32.totalorder %s38_s30, 0 }
  0x12   : > { %136 = sbr.rel (%p1018_p8) target bundleno = 52 (0x34), region = 16 }
  0x13   : > { %s1333_s4 = scalar_select %p39_p7, %s1221_s10, %s41_s3  }
  0x19   : > { %139 = sbr.rel (!%p50_p4) target bundleno = 52 (0x34), region = 20  ;;  %s141_s5 = sand.u32 (%p50_p4), 1, %s1221_s10  }
  0x1a   : > { %s1022_s6 = sshll.u32 (%p50_p4), %s1237_s14, 2  ;;  %s1019_s7 = sshll.u32 (%p50_p4), %s141_s5, 7 }
  0x1b   : > { %s1073_s8 = sshll.u32 (%p50_p4), %s31_s24, 8  ;;  %s1346_s22 = scalar_lea.vmem (%p50_p4), [#allocation4], %s1019_s7 }
  0x1c   : > { %s151_s18 = sadd.s32 (%p50_p4), %s1073_s8, %s1022_s6 }
  0x1d   : > { %s1341_s21 = scalar_lea.vmem (%p50_p4), %s1716_s0, %s151_s18 }
  0x1e   : > { %v168_v0 = vld [vmem:[%s1341_s21] sm:$0xf] (%p50_p4)  ;;  %v170_v1 = vld [vmem:[%s1341_s21 + $0x8] sm:$0xf] (%p50_p4)  ;;  %v172_v2 = vld [vmem:[%s1341_s21 + $0x10] sm:$0xf] (%p50_p4) }
  0x1f   : > { %169 = vst [vmem:[%s1346_s22] sm:$0xf] (%p50_p4), %v168_v0  ;;  %171 = vst [vmem:[%s1346_s22 + $0x4] sm:$0xf] (%p50_p4), %v170_v1  ;;  %v174_v3 = vld [vmem:[%s1341_s21 + $0x18] sm:$0xf] (%p50_p4) }
  0x20   : > { %173 = vst [vmem:[%s1346_s22 + $0x8] sm:$0xf] %v172_v2  ;;  %v176_v4 = vld [vmem:[%s1341_s21 + $0x20] sm:$0xf]  ;;  %v178_v5 = vld [vmem:[%s1341_s21 + $0x28] sm:$0xf] }
  0x21   : > { %175 = vst [vmem:[%s1346_s22 + $0xc] sm:$0xf] %v174_v3  ;;  %177 = vst [vmem:[%s1346_s22 + $0x10] sm:$0xf] %v176_v4  ;;  %v180_v6 = vld [vmem:[%s1341_s21 + $0x30] sm:$0xf] }
  0x22   : > { %179 = vst [vmem:[%s1346_s22 + $0x14] sm:$0xf] %v178_v5  ;;  %v182_v7 = vld [vmem:[%s1341_s21 + $0x38] sm:$0xf]  ;;  %v184_v8 = vld [vmem:[%s1341_s21 + $0x40] sm:$0xf] }
  0x23   : > { %181 = vst [vmem:[%s1346_s22 + $0x18] sm:$0xf] %v180_v6  ;;  %183 = vst [vmem:[%s1346_s22 + $0x1c] sm:$0xf] %v182_v7  ;;  %v186_v9 = vld [vmem:[%s1341_s21 + $0x48] sm:$0xf] }
  0x24   : > { %185 = vst [vmem:[%s1346_s22 + $0x20] sm:$0xf] %v184_v8  ;;  %v188_v10 = vld [vmem:[%s1341_s21 + $0x50] sm:$0xf]  ;;  %v190_v11 = vld [vmem:[%s1341_s21 + $0x58] sm:$0xf] }
  0x25   : > { %187 = vst [vmem:[%s1346_s22 + $0x24] sm:$0xf] %v186_v9  ;;  %189 = vst [vmem:[%s1346_s22 + $0x28] sm:$0xf] %v188_v10  ;;  %v192_v12 = vld [vmem:[%s1341_s21 + $0x60] sm:$0xf] }
  0x26   : > { %191 = vst [vmem:[%s1346_s22 + $0x2c] sm:$0xf] %v190_v11  ;;  %v194_v13 = vld [vmem:[%s1341_s21 + $0x68] sm:$0xf]  ;;  %v196_v14 = vld [vmem:[%s1341_s21 + $0x70] sm:$0xf] }
  0x27   : > { %193 = vst [vmem:[%s1346_s22 + $0x30] sm:$0xf] %v192_v12  ;;  %195 = vst [vmem:[%s1346_s22 + $0x34] sm:$0xf] %v194_v13  ;;  %v198_v15 = vld [vmem:[%s1341_s21 + $0x78] sm:$0xf] }
  0x28   : > { %197 = vst [vmem:[%s1346_s22 + $0x38] sm:$0xf] %v196_v14  ;;  %v200_v16 = vld [vmem:[%s1341_s21 + $0x80] sm:$0xf]  ;;  %v202_v17 = vld [vmem:[%s1341_s21 + $0x88] sm:$0xf] }
  0x29   : > { %199 = vst [vmem:[%s1346_s22 + $0x3c] sm:$0xf] %v198_v15  ;;  %201 = vst [vmem:[%s1346_s22 + $0x40] sm:$0xf] %v200_v16  ;;  %v204_v18 = vld [vmem:[%s1341_s21 + $0x90] sm:$0xf] }
  0x2a   : > { %203 = vst [vmem:[%s1346_s22 + $0x44] sm:$0xf] %v202_v17  ;;  %v206_v19 = vld [vmem:[%s1341_s21 + $0x98] sm:$0xf]  ;;  %v208_v20 = vld [vmem:[%s1341_s21 + $0xa0] sm:$0xf] }
  0x2b   : > { %205 = vst [vmem:[%s1346_s22 + $0x48] sm:$0xf] %v204_v18  ;;  %207 = vst [vmem:[%s1346_s22 + $0x4c] sm:$0xf] %v206_v19  ;;  %v210_v21 = vld [vmem:[%s1341_s21 + $0xa8] sm:$0xf] }
  0x2c   : > { %209 = vst [vmem:[%s1346_s22 + $0x50] sm:$0xf] %v208_v20  ;;  %v212_v22 = vld [vmem:[%s1341_s21 + $0xb0] sm:$0xf]  ;;  %v214_v23 = vld [vmem:[%s1341_s21 + $0xb8] sm:$0xf] }
  0x2d   : > { %211 = vst [vmem:[%s1346_s22 + $0x54] sm:$0xf] %v210_v21  ;;  %213 = vst [vmem:[%s1346_s22 + $0x58] sm:$0xf] %v212_v22  ;;  %v216_v24 = vld [vmem:[%s1341_s21 + $0xc0] sm:$0xf] }
  0x2e   : > { %215 = vst [vmem:[%s1346_s22 + $0x5c] sm:$0xf] %v214_v23  ;;  %v218_v25 = vld [vmem:[%s1341_s21 + $0xc8] sm:$0xf]  ;;  %v220_v26 = vld [vmem:[%s1341_s21 + $0xd0] sm:$0xf] }
  0x2f   : > { %217 = vst [vmem:[%s1346_s22 + $0x60] sm:$0xf] %v216_v24  ;;  %219 = vst [vmem:[%s1346_s22 + $0x64] sm:$0xf] %v218_v25  ;;  %v222_v27 = vld [vmem:[%s1341_s21 + $0xd8] sm:$0xf] }
  0x30   : > { %221 = vst [vmem:[%s1346_s22 + $0x68] sm:$0xf] %v220_v26  ;;  %v224_v28 = vld [vmem:[%s1341_s21 + $0xe0] sm:$0xf]  ;;  %v226_v29 = vld [vmem:[%s1341_s21 + $0xe8] sm:$0xf] }
  0x31   : > { %223 = vst [vmem:[%s1346_s22 + $0x6c] sm:$0xf] %v222_v27  ;;  %225 = vst [vmem:[%s1346_s22 + $0x70] sm:$0xf] %v224_v28  ;;  %v228_v30 = vld [vmem:[%s1341_s21 + $0xf0] sm:$0xf] }
  0x32   : > { %227 = vst [vmem:[%s1346_s22 + $0x74] sm:$0xf] %v226_v29  ;;  %v230_v31 = vld [vmem:[%s1341_s21 + $0xf8] sm:$0xf]  ;;  %229 = vst [vmem:[%s1346_s22 + $0x78] sm:$0xf] %v228_v30 }
  0x33   : > { %231 = vst [vmem:[%s1346_s22 + $0x7c] sm:$0xf] %v230_v31 }
  0x34 PF: > { %p1024_p9 = scmp.ge.s32.totalorder %s1241_s15, 1  ;;  %p325_p10 = scmp.lt.s32.totalorder %s1241_s15, 5 }
  0x36   : > { %p326_p11 = pnand %p1024_p9, %p325_p10 }
  0x37   : > { %s332_s23 = sand.u32 (!%p326_p11), 1, %s1217_s9   ;;  %p363_p12 = scmp.lt.s32.totalorder (!%p326_p11), %s1229_s12, 1 }
  0x38   : > { %329 = sbr.rel (%p326_p11) target bundleno = 415 (0x19f), region = 65  ;;  %s1413_s24 = sshll.u32 (!%p326_p11), %s332_s23, 7 }
  0x39   : > { %s1026_s25 = sshll.u32 (!%p326_p11), %s332_s23, 5  ;;  %s334_s5 = scalar_lea.vmem (!%p326_p11), [#allocation4], %s1413_s24 }
  0x3a   : > { %s1422_s6 = scalar_lea.vmem (!%p326_p11), [#allocation5], %s1026_s25  ;;  %p1029_p13 = scmp.ne.s32.totalorder (!%p326_p11), %s1225_s11, 0 }
  0x3f   : > { %s364_s26 = scalar_select %p363_p12, %s1229_s12, 1 }
  0x40   : > { %377 = sbr.rel (%p1029_p13) target bundleno = 71 (0x47), region = 73  ;;  %v1255_v32 = vmov (!%p1029_p13), 0.0  }
  0x41   : > { %s1074_s27 = sshll.u32 %s364_s26, 8  ;;  %378 = vst [vmem:[#allocation2] sm:$0x3] (!%p1029_p13), %v1255_v32  ;;  %379 = vst [vmem:[#allocation3] sm:$0x3] (!%p1029_p13), %v1255_v32 }
  0x42   : > { %s1419_s3 = scalar_lea.vmem %s1717_s1, %s1074_s27 }
  0x47 PF: > { %v1426_v33 = vld [vmem:[%s1419_s3] sm:$0xff]  ;;  %v1429_v34 = vld [vmem:[%s1419_s3 + $0x8] sm:$0xff]  ;;  %v1432_v35 = vld [vmem:[%s1419_s3 + $0x10] sm:$0xff]  ;;  %s1525_s9 = smov 0  }
  0x48   : > { %v1435_v36 = vld [vmem:[%s1419_s3 + $0x18] sm:$0xff]  ;;  %v1438_v37 = vld [vmem:[%s1419_s3 + $0x20] sm:$0xff]  ;;  %v1441_v38 = vld [vmem:[%s1419_s3 + $0x28] sm:$0xff] }
  0x49   : > { %v1444_v39 = vld [vmem:[%s1419_s3 + $0x30] sm:$0xff]  ;;  %v1447_v40 = vld [vmem:[%s1419_s3 + $0x38] sm:$0xff]  ;;  %v1450_v41 = vld [vmem:[%s1419_s3 + $0x40] sm:$0xff] }
  0x4a   : > { %v1453_v42 = vld [vmem:[%s1419_s3 + $0x48] sm:$0xff]  ;;  %v1456_v43 = vld [vmem:[%s1419_s3 + $0x50] sm:$0xff]  ;;  %v1459_v44 = vld [vmem:[%s1419_s3 + $0x58] sm:$0xff] }
  0x4b   : > { %v1462_v45 = vld [vmem:[%s1419_s3 + $0x60] sm:$0xff]  ;;  %v1465_v46 = vld [vmem:[%s1419_s3 + $0x68] sm:$0xff]  ;;  %v1468_v47 = vld [vmem:[%s1419_s3 + $0x70] sm:$0xff] }
  0x4c   : > { %v1471_v48 = vld [vmem:[%s1419_s3 + $0x78] sm:$0xff]  ;;  %v1474_v49 = vld [vmem:[%s1419_s3 + $0x80] sm:$0xff]  ;;  %v1477_v50 = vld [vmem:[%s1419_s3 + $0x88] sm:$0xff] }
  0x4d   : > { %v1480_v51 = vld [vmem:[%s1419_s3 + $0x90] sm:$0xff]  ;;  %v1483_v52 = vld [vmem:[%s1419_s3 + $0x98] sm:$0xff]  ;;  %v1486_v53 = vld [vmem:[%s1419_s3 + $0xa0] sm:$0xff] }
  0x4e   : > { %v1489_v54 = vld [vmem:[%s1419_s3 + $0xa8] sm:$0xff]  ;;  %v1492_v55 = vld [vmem:[%s1419_s3 + $0xb0] sm:$0xff]  ;;  %v1495_v56 = vld [vmem:[%s1419_s3 + $0xb8] sm:$0xff] }
  0x4f   : > { %v1498_v57 = vld [vmem:[%s1419_s3 + $0xc0] sm:$0xff]  ;;  %v1501_v58 = vld [vmem:[%s1419_s3 + $0xc8] sm:$0xff]  ;;  %v1504_v59 = vld [vmem:[%s1419_s3 + $0xd0] sm:$0xff] }
  0x50   : > { %v1507_v60 = vld [vmem:[%s1419_s3 + $0xd8] sm:$0xff]  ;;  %v1510_v61 = vld [vmem:[%s1419_s3 + $0xe0] sm:$0xff]  ;;  %v1513_v62 = vld [vmem:[%s1419_s3 + $0xe8] sm:$0xff] }
  0x51   : > { %v1516_v63 = vld [vmem:[%s1419_s3 + $0xf0] sm:$0xff]  ;;  %v1519_v0 = vld [vmem:[%s1419_s3 + $0xf8] sm:$0xff]  ;;  %v412_v1 = vld [vmem:[#allocation2] sm:$0x3]  }
  0x52   : > { %v413_v2 = vld [vmem:[#allocation3] sm:$0x3]  }
  0x53 LB: >> { %v1033_v3 = vcombine.high %v1426_v33, %v1432_v35  ;;  %v1035_v4 = vcombine.high %v1429_v34, %v1435_v36  ;;  %v1032_v5 = vcombine.low %v1426_v33, %v1432_v35  ;;  %v1034_v6 = vcombine.low %v1429_v34, %v1435_v36  ;;  %s1030_s7 = sshll.u32 %s1253_s9, 1  ;;  %s1253_s9 = sphi %s1525_s9, %s419_s9   ;;  %v1249_v1 = vphi %v412_v1, %v1721_v1   ;;  %v1245_v2 = vphi %v413_v2, %v1720_v2  }
  0x54   : >> { %v1037_v7 = vcombine.high %v1438_v37, %v1444_v39  ;;  %v1039_v8 = vcombine.high %v1441_v38, %v1447_v40  ;;  %v1036_v9 = vcombine.low %v1438_v37, %v1444_v39  ;;  %v1038_v10 = vcombine.low %v1441_v38, %v1447_v40  ;;  %s423_s8 = ssub.s32 31, %s1030_s7 }
  0x55   : >> { %591 = vmatprep.subr.bf16.mxu0 %v1033_v3  ;;  %632 = vmatprep.subr.bf16.mxu1 %v1035_v4  ;;  %v1041_v11 = vcombine.high %v1450_v41, %v1456_v43  ;;  %v1043_v12 = vcombine.high %v1453_v42, %v1459_v44  ;;  %v1256_v13 = vmov 0   ;;  %v1040_v14 = vcombine.low %v1450_v41, %v1456_v43  ;;  %s424_s18 = smul.u32 %s1229_s12, %s423_s8 }
  0x56   : >> { %592 = vmatpush1.bf16.msra.mxu0 %v1032_v5  ;;  %633 = vmatpush1.bf16.msra.mxu1 %v1034_v6  ;;  %v1042_v15 = vcombine.low %v1453_v42, %v1459_v44  ;;  %v1045_v16 = vcombine.high %v1462_v45, %v1468_v47  ;;  %v1047_v17 = vcombine.high %v1465_v46, %v1471_v48 }
  0x57   : >> { %593 = vmatprep.subr.bf16.mxu0 %v1037_v7  ;;  %634 = vmatprep.subr.bf16.mxu1 %v1039_v8  ;;  %v1044_v18 = vcombine.low %v1462_v45, %v1468_v47  ;;  %v1046_v19 = vcombine.low %v1465_v46, %v1471_v48  ;;  %v1049_v20 = vcombine.high %v1474_v49, %v1480_v51  ;;  %v1257_v7 = vmov 1983009808   ;;  %s1605_s19 = sadd.s32 %s1253_s9, %s424_s18  ;;  %s419_s9 = sadd.s32 1, %s1253_s9  }
  0x58   : >> { %623 = vmatprep.mubr.bf16.mxu0 %v1256_v13  ;;  %664 = vmatprep.mubr.bf16.mxu1 %v1256_v13  ;;  %v1051_v21 = vcombine.high %v1477_v50, %v1483_v52  ;;  %v1048_v22 = vcombine.low %v1474_v49, %v1480_v51  ;;  %v1050_v23 = vcombine.low %v1477_v50, %v1483_v52  ;;  %v680_v8 = vunpack.c.l.s4 %v1257_v7  ;;  %s1031_s20 = sshll.u32 %s1605_s19, 2  ;;  %s728_s22 = scalar_lea.vmem %s1422_s6, %s1605_s19 [#allocation5] }
  0x59   : >> { %v1053_v24 = vcombine.high %v1486_v53, %v1492_v55  ;;  %v1055_v25 = vcombine.high %v1489_v54, %v1495_v56  ;;  %v1052_v26 = vcombine.low %v1486_v53, %v1492_v55  ;;  %v1054_v27 = vcombine.low %v1489_v54, %v1495_v56  ;;  %s427_s21 = scalar_lea.vmem %s334_s5, %s1031_s20 [#allocation4]  ;;  %p416_p0 = scmp.ge.s32.totalorder %s419_s9, 32  }
  0x5a   : >> { %594 = vmatpush1.bf16.msra.mxu0 %v1036_v9  ;;  %635 = vmatpush1.bf16.msra.mxu1 %v1038_v10  ;;  %v1057_v28 = vcombine.high %v1498_v57, %v1504_v59  ;;  %v1059_v29 = vcombine.high %v1501_v58, %v1507_v60  ;;  %v1056_v30 = vcombine.low %v1498_v57, %v1504_v59  ;;  %v682_v9 = vlaneseq }
  0x5b   : >> { %595 = vmatprep.subr.bf16.mxu0 %v1041_v11  ;;  %636 = vmatprep.subr.bf16.mxu1 %v1043_v12  ;;  %v1058_v31 = vcombine.low %v1501_v58, %v1507_v60  ;;  %v1061_v32 = vcombine.high %v1510_v61, %v1516_v63  ;;  %v1063_v3 = vcombine.high %v1513_v62, %v1519_v0  ;;  %v681_v10 = vunpack.c.0.s8 %v680_v8 }
  0x5c   : >> { %v1060_v4 = vcombine.low %v1510_v61, %v1516_v63  ;;  %v1062_v5 = vcombine.low %v1513_v62, %v1519_v0  ;;  %v430_v6 = vpack.c.bf16 %v1249_v1, %v1249_v1  ;;  %v683_v11 = vshrl.u32 %v682_v9, 7 }
  0x5e   : >> { %596 = vmatpush1.bf16.msra.mxu0 %v1040_v14  ;;  %637 = vmatpush1.bf16.msra.mxu1 %v1042_v15  ;;  %v684_v13 = vsub.s32 %v681_v10, %v683_v11  ;;  %v428_v15 = vld [vmem:[%s427_s21] sm:$0xf] }
  0x5f   : >> { %597 = vmatprep.subr.bf16.mxu0 %v1045_v16  ;;  %638 = vmatprep.subr.bf16.mxu1 %v1047_v17 }
  0x62   : >> { %598 = vmatpush1.bf16.msra.mxu0 %v1044_v18  ;;  %639 = vmatpush1.bf16.msra.mxu1 %v1046_v19 }
  0x63   : >> { %599 = vmatprep.subr.bf16.mxu0 %v1049_v20  ;;  %640 = vmatprep.subr.bf16.mxu1 %v1051_v21 }
  0x66   : >> { %600 = vmatpush1.bf16.msra.mxu0 %v1048_v22  ;;  %641 = vmatpush1.bf16.msra.mxu1 %v1050_v23 }
  0x67   : >> { %601 = vmatprep.subr.bf16.mxu0 %v1053_v24  ;;  %642 = vmatprep.subr.bf16.mxu1 %v1055_v25  ;;  %v429_v24 = vunpack.c.l.bf16 %v428_v15 }
  0x6a   : >> { %602 = vmatpush1.bf16.msra.mxu0 %v1052_v26  ;;  %643 = vmatpush1.bf16.msra.mxu1 %v1054_v27 }
  0x6b   : >> { %603 = vmatprep.subr.bf16.mxu0 %v1057_v28  ;;  %644 = vmatprep.subr.bf16.mxu1 %v1059_v29 }
  0x6e   : >> { %604 = vmatpush1.bf16.msra.mxu0 %v1056_v30  ;;  %645 = vmatpush1.bf16.msra.mxu1 %v1058_v31 }
  0x6f   : >> { %605 = vmatprep.subr.bf16.mxu0 %v1061_v32  ;;  %646 = vmatprep.subr.bf16.mxu1 %v1063_v3 }
  0x72   : >> { %606 = vmatpush1.bf16.msra.mxu0 %v1060_v4  ;;  %647 = vmatpush1.bf16.msra.mxu1 %v1062_v5 }
  0x75   : >> { %624 = vmatmul.mubr.bf16.vlgmr.msra.gmra.mrb[0].mxu0 %v430_v6  ;;  %665 = vmatmul.mubr.bf16.vlgmr.msra.gmra.mrb[0].mxu1 %v430_v6 }
 0x148   : >> { %v625_v12 = vpop.f32.mrb[0].mxu0  ;;  %v666_v1 = vpop.f32.mrb[0].mxu1 }
 0x149   : >> { %v627_v14 = vpop.f32.mrb[1].mxu0  ;;  %v668_v16 = vpop.f32.mrb[1].mxu1 }
 0x14a   : >> { %v677_v17 = vcombine.low %v625_v12, %v627_v14  ;;  %v678_v18 = vcombine.low %v666_v1, %v668_v16  ;;  %v629_v19 = vpop.f32.mrb[2].mxu0  ;;  %v670_v20 = vpop.f32.mrb[2].mxu1 }
 0x14b   : >> { %v630_v21 = vpop.f32.mrb[3].mxu0  ;;  %v671_v22 = vpop.f32.mrb[3].mxu1 }
 0x14c   : >> { %v685_v23 = vrot.slane %v677_v17, %v684_v13  ;;  %v692_v25 = vrot.slane %v678_v18, %v684_v13 }
 0x14e   : >> { %v693_v26 = vcombine.low %v685_v23, %v692_v25 }
 0x150   : >> { %v695_v27 = vadd.f32 %v693_v26, %v429_v24 }
 0x152   : >> { %v1064_v28 = vmul.f32 -1.442695, %v695_v27  ;;  %v703_v29 = vrot.slane %v695_v27, 2  ;;  %v714_v31 = vrot.slane %v695_v27, 6  ;;  %v711_v4 = vrot.slane %v695_v27, 4 }
 0x154   : >> { %1159 = vpow2.f32 %v1064_v28  ;;  %v1065_v30 = vmul.f32 -1.442695, %v703_v29  ;;  %v1066_v32 = vmul.f32 -1.442695, %v714_v31 }
 0x156   : >> { %1161 = vpow2.f32 %v1065_v30 }
 0x157   : >> { %1163 = vpow2.f32 %v1066_v32 }
 0x15e   : >> { %v1160_v3 = vpop.eup %1159 }
 0x15f   : >> { %v699_v5 = vadd.f32 1.0, %v1160_v3 }
 0x160   : >> { %v1162_v6 = vpop.eup %1161 }
 0x161   : >> { %1165 = vrcp.f32 %v699_v5  ;;  %v708_v7 = vadd.f32 1.0, %v1162_v6  ;;  %v1164_v8 = vpop.eup %1163 }
 0x162   : >> { %1167 = vtanh.f32 %v711_v4  ;;  %v719_v12 = vadd.f32 1.0, %v1164_v8 }
 0x163   : >> { %1169 = vrcp.f32 %v708_v7 }
 0x164   : >> { %1171 = vrcp.f32 %v719_v12 }
 0x16b   : >> { %v1166_v9 = vpop.eup %1165 }
 0x16c   : >> { %v1168_v10 = vpop.eup %1167 }
 0x16d   : >> { %v1170_v11 = vpop.eup %1169  ;;  %v723_v13 = vmul.f32 %v1168_v10, %v1166_v9 }
 0x16e   : >> { %v722_v1 = vmul.f32 %v1245_v2, %v1170_v11  ;;  %v1172_v15 = vpop.eup %1171 }
 0x170   : >> { %v724_v14 = vadd.f32 %v723_v13, %v722_v1  }
 0x172   : >> { %1173 = vtanh.f32 %v724_v14  ;;  %v1720_v2 = vmov %v724_v14  ;;  %731 = vst [vmem:[#allocation3] sm:$0x3] (%p416_p0), %v724_v14 }
 0x17b   : > { %418 = sbr.rel (!%p416_p0) target bundleno = 83 (0x53), region = 161 }
 0x17c   : >> { %v1174_v16 = vpop.eup %1173 }
 0x17d   : >> { %v726_v17 = vmul.f32 %v1174_v16, %v1172_v15  }
 0x17f   : >> { %v727_v18 = vpack.c.bf16 %v726_v17, %v726_v17  ;;  %v1721_v1 = vmov %v726_v17  ;;  %730 = vst [vmem:[#allocation2] sm:$0x3] (%p416_p0), %v726_v17 }
 0x181   : >> { %729 = vst [vmem:[%s728_s22] sm:$0x1] %v727_v18 }
 0x182   : > { %738 = sbr.rel (!%p1327_p6) target bundleno = 415 (0x19f), region = 84  ;;  %s1068_s23 = sshll.u32 (%p1327_p6), %s1225_s11, 1 }
 0x183   : > { %s740_s24 = ssub.s32 (%p1327_p6), 1, %s1068_s23 }
 0x184   : > { %s741_s29 = smul.u32 (%p1327_p6), %s1229_s12, %s740_s24 }
 0x186   : > { %s742_s25 = sadd.s32 (%p1327_p6), %s1225_s11, %s741_s29 }
 0x187   : > { %s1075_s26 = sshll.u32 (%p1327_p6), %s742_s25, 6 }
 0x188   : > { %v762_v33 = vld [vmem:[%s1422_s6] sm:$0x1] (%p1327_p6)  ;;  %v764_v34 = vld [vmem:[%s1422_s6 + $0x1] sm:$0x1] (%p1327_p6)  ;;  %v766_v35 = vld [vmem:[%s1422_s6 + $0x2] sm:$0x1] (%p1327_p6)  ;;  %s745_s27 = sadd.s32 (%p1327_p6), %s1229_s12, %s1075_s26 }
 0x189   : > { %v768_v36 = vld [vmem:[%s1422_s6 + $0x3] sm:$0x1]  ;;  %v770_v37 = vld [vmem:[%s1422_s6 + $0x4] sm:$0x1]  ;;  %v772_v38 = vld [vmem:[%s1422_s6 + $0x5] sm:$0x1]  ;;  %s1647_s3 = scalar_lea.vmem %s1718_s2, %s745_s27 }
 0x18a   : > { %v774_v39 = vld [vmem:[%s1422_s6 + $0x6] sm:$0x1]  ;;  %v776_v40 = vld [vmem:[%s1422_s6 + $0x7] sm:$0x1]  ;;  %v778_v41 = vld [vmem:[%s1422_s6 + $0x8] sm:$0x1] }
 0x18b   : > { %v780_v42 = vld [vmem:[%s1422_s6 + $0x9] sm:$0x1]  ;;  %v782_v43 = vld [vmem:[%s1422_s6 + $0xa] sm:$0x1]  ;;  %v784_v44 = vld [vmem:[%s1422_s6 + $0xb] sm:$0x1] }
 0x18c   : > { %v786_v45 = vld [vmem:[%s1422_s6 + $0xc] sm:$0x1]  ;;  %v788_v46 = vld [vmem:[%s1422_s6 + $0xd] sm:$0x1]  ;;  %v790_v47 = vld [vmem:[%s1422_s6 + $0xe] sm:$0x1] }
 0x18d   : > { %v792_v48 = vld [vmem:[%s1422_s6 + $0xf] sm:$0x1]  ;;  %v794_v49 = vld [vmem:[%s1422_s6 + $0x10] sm:$0x1]  ;;  %v796_v50 = vld [vmem:[%s1422_s6 + $0x11] sm:$0x1] }
 0x18e   : > { %v798_v51 = vld [vmem:[%s1422_s6 + $0x12] sm:$0x1]  ;;  %v800_v52 = vld [vmem:[%s1422_s6 + $0x13] sm:$0x1]  ;;  %v802_v53 = vld [vmem:[%s1422_s6 + $0x14] sm:$0x1] }
 0x18f   : > { %763 = vst [vmem:[%s1647_s3] sm:$0x1] %v762_v33  ;;  %765 = vst [vmem:[%s1647_s3 + $0x2] sm:$0x1] %v764_v34  ;;  %v804_v54 = vld [vmem:[%s1422_s6 + $0x15] sm:$0x1] }
 0x190   : > { %767 = vst [vmem:[%s1647_s3 + $0x4] sm:$0x1] %v766_v35  ;;  %769 = vst [vmem:[%s1647_s3 + $0x6] sm:$0x1] %v768_v36  ;;  %v806_v55 = vld [vmem:[%s1422_s6 + $0x16] sm:$0x1] }
 0x191   : > { %771 = vst [vmem:[%s1647_s3 + $0x8] sm:$0x1] %v770_v37  ;;  %773 = vst [vmem:[%s1647_s3 + $0xa] sm:$0x1] %v772_v38  ;;  %v808_v56 = vld [vmem:[%s1422_s6 + $0x17] sm:$0x1] }
 0x192   : > { %775 = vst [vmem:[%s1647_s3 + $0xc] sm:$0x1] %v774_v39  ;;  %777 = vst [vmem:[%s1647_s3 + $0xe] sm:$0x1] %v776_v40  ;;  %v810_v57 = vld [vmem:[%s1422_s6 + $0x18] sm:$0x1] }
 0x193   : > { %779 = vst [vmem:[%s1647_s3 + $0x10] sm:$0x1] %v778_v41  ;;  %781 = vst [vmem:[%s1647_s3 + $0x12] sm:$0x1] %v780_v42  ;;  %v812_v58 = vld [vmem:[%s1422_s6 + $0x19] sm:$0x1] }
 0x194   : > { %783 = vst [vmem:[%s1647_s3 + $0x14] sm:$0x1] %v782_v43  ;;  %785 = vst [vmem:[%s1647_s3 + $0x16] sm:$0x1] %v784_v44  ;;  %v814_v59 = vld [vmem:[%s1422_s6 + $0x1a] sm:$0x1] }
 0x195   : > { %787 = vst [vmem:[%s1647_s3 + $0x18] sm:$0x1] %v786_v45  ;;  %789 = vst [vmem:[%s1647_s3 + $0x1a] sm:$0x1] %v788_v46  ;;  %v816_v60 = vld [vmem:[%s1422_s6 + $0x1b] sm:$0x1] }
 0x196   : > { %791 = vst [vmem:[%s1647_s3 + $0x1c] sm:$0x1] %v790_v47  ;;  %793 = vst [vmem:[%s1647_s3 + $0x1e] sm:$0x1] %v792_v48  ;;  %v818_v61 = vld [vmem:[%s1422_s6 + $0x1c] sm:$0x1] }
 0x197   : > { %795 = vst [vmem:[%s1647_s3 + $0x20] sm:$0x1] %v794_v49  ;;  %797 = vst [vmem:[%s1647_s3 + $0x22] sm:$0x1] %v796_v50  ;;  %v820_v62 = vld [vmem:[%s1422_s6 + $0x1d] sm:$0x1] }
 0x198   : > { %799 = vst [vmem:[%s1647_s3 + $0x24] sm:$0x1] %v798_v51  ;;  %801 = vst [vmem:[%s1647_s3 + $0x26] sm:$0x1] %v800_v52  ;;  %v822_v63 = vld [vmem:[%s1422_s6 + $0x1e] sm:$0x1] }
 0x199   : > { %803 = vst [vmem:[%s1647_s3 + $0x28] sm:$0x1] %v802_v53  ;;  %805 = vst [vmem:[%s1647_s3 + $0x2a] sm:$0x1] %v804_v54  ;;  %v824_v0 = vld [vmem:[%s1422_s6 + $0x1f] sm:$0x1] }
 0x19a   : > { %807 = vst [vmem:[%s1647_s3 + $0x2c] sm:$0x1] %v806_v55  ;;  %809 = vst [vmem:[%s1647_s3 + $0x2e] sm:$0x1] %v808_v56 }
 0x19b   : > { %811 = vst [vmem:[%s1647_s3 + $0x30] sm:$0x1] %v810_v57  ;;  %813 = vst [vmem:[%s1647_s3 + $0x32] sm:$0x1] %v812_v58 }
 0x19c   : > { %815 = vst [vmem:[%s1647_s3 + $0x34] sm:$0x1] %v814_v59  ;;  %817 = vst [vmem:[%s1647_s3 + $0x36] sm:$0x1] %v816_v60 }
 0x19d   : > { %819 = vst [vmem:[%s1647_s3 + $0x38] sm:$0x1] %v818_v61  ;;  %821 = vst [vmem:[%s1647_s3 + $0x3a] sm:$0x1] %v820_v62 }
 0x19e   : > { %823 = vst [vmem:[%s1647_s3 + $0x3c] sm:$0x1] %v822_v63  ;;  %825 = vst [vmem:[%s1647_s3 + $0x3e] sm:$0x1] %v824_v0 }
 0x19f PF: > { %s12_s15 = sadd.s32 1, %s1241_s15   ;;  %s1722_s9 = smov %s1221_s10 }
 0x1a0   : > { %p9_p1 = scmp.ge.s32.totalorder %s12_s15, 6   ;;  %s1723_s10 = smov %s1333_s4 }
 0x1a1   : > { %s1724_s11 = smov %s1233_s13  ;;  %s1725_s12 = smov %s1237_s14 }
 0x1a2   : > { %s1726_s13 = smov %s1729_s16  ;;  %s1727_s14 = smov %s1733_s17 }
 0x1a3   :  { %11 = sbr.rel (!%p9_p1) target bundleno = 4 (0x4), region = 172 }

// kernel: lstm_encoder_forward.4
= control target key start
LH: loop header
LB: loop body
LE: loop exit
PB: predicated region body
PF: predicated region fallthrough
CT: control target
= control target key end

     0   :  { %s1614_s12 = smov 0   ;;  %s1616_s13 = smov 0   ;;  %s1930_s0 = inlined_call_operand.vmem [shape: f32[128,16], index: 0, kind: input, shape index: {}]   ;;  %s1931_s1 = inlined_call_operand.vmem [shape: bf16[16,1024], index: 1, kind: input, shape index: {}]   ;;  %s1932_s2 = inlined_call_operand.vmem [shape: f32[1,1024], index: 2, kind: input, shape index: {}]   ;;  %s1933_s3 = inlined_call_operand.vmem [shape: bf16[128,1024], index: 3, kind: output, shape index: {}]  }
   0x1   :  { %s1618_s14 = smov 0   ;;  %s1620_s15 = smov 0  }
   0x2   :  { %s1622_s16 = smov 0  }
   0x3 LB: > { %s28_s17 = sadd.s32 1, %s1587_s15  ;;  %s1403_s18 = sadd.s32 4294967295, %s1591_s16   ;;  %s1591_s16 = sphi %s1622_s16, %s13_s16   ;;  %s1587_s15 = sphi %s1620_s15, %s1938_s15   ;;  %s1583_s14 = sphi %s1618_s14, %s1937_s14   ;;  %s1579_s13 = sphi %s1616_s13, %s1936_s13   ;;  %s1575_s12 = sphi %s1614_s12, %s1935_s12  }
   0x4   : > { %p30_p0 = scmp.ge.s32.totalorder %s28_s17, 2  ;;  %p76_p1 = scmp.ne.s32.totalorder %s1579_s13, %s1575_s12 }
   0x5   : > { %p77_p2 = scmp.eq.s32.totalorder %s1591_s16, 0  ;;  %p134_p4 = scmp.eq.s32.totalorder %s1403_s18, 1 }
   0x6   : > { %s1940_s17 = smov (%p30_p0, %s28_s17), 0  ;;  %s69_s20 = sadd.s32 1, %s1579_s13 }
   0x7   : > { %p78_p3 = por %p77_p2, %p76_p1  ;;  %s65_s19 = ssub.s32 %s1587_s15, %s1940_s17 }
   0x8   : > { %p67_p5 = scmp.eq.s32.totalorder %s65_s19, 0  ;;  %p1649_p6 = por %p134_p4, %p76_p1 }
   0x9   : > { %p1407_p7 = scmp.ge.s32.totalorder %s1591_s16, 2 }
   0xa   : > { %s1654_s22 = scalar_select %p67_p5, %s1579_s13, %s69_s20  }
   0xb   : > { %168 = sbr.rel (%p1407_p7) target bundleno = 25 (0x19), region = 20 }
  0x12   : > { %171 = sbr.rel (!%p78_p3) target bundleno = 25 (0x19), region = 24  ;;  %s173_s23 = sand.u32 (%p78_p3), 1, %s1579_s13  }
  0x13   : > { %s1472_s24 = sshll.u32 (%p78_p3), %s1587_s15, 4  ;;  %s1408_s25 = sshll.u32 (%p78_p3), %s173_s23, 5 }
  0x14   : > { %s181_s28 = scalar_lea.vmem (%p78_p3), %s1931_s1, %s1472_s24  ;;  %s175_s29 = scalar_lea.vmem (%p78_p3), [#allocation3], %s1408_s25 }
  0x15   : > { %v194_v0 = vld [vmem:[%s181_s28] sm:$0xff] (%p78_p3)  ;;  %v196_v1 = vld [vmem:[%s181_s28 + $0x8] sm:$0xff] (%p78_p3) }
  0x16   : > { %v198_v2 = vld [vmem:[%s181_s28 + $0x20] sm:$0xff] (%p78_p3)  ;;  %195 = vst [vmem:[%s175_s29] sm:$0xff] (%p78_p3), %v194_v0  ;;  %197 = vst [vmem:[%s175_s29 + $0x8] sm:$0xff] (%p78_p3), %v196_v1  ;;  %v200_v3 = vld [vmem:[%s181_s28 + $0x28] sm:$0xff] (%p78_p3) }
  0x17   : > { %199 = vst [vmem:[%s175_s29 + $0x10] sm:$0xff] (%p78_p3), %v198_v2  ;;  %201 = vst [vmem:[%s175_s29 + $0x18] sm:$0xff] (%p78_p3), %v200_v3 }
  0x19 PF: > { %p1411_p8 = scmp.ge.s32.totalorder %s1591_s16, 1  ;;  %p214_p9 = scmp.lt.s32.totalorder %s1591_s16, 3 }
  0x1b   : > { %p215_p10 = pnand %p1411_p8, %p214_p9 }
  0x1c   : > { %s221_s30 = sand.u32 (!%p215_p10), 1, %s1575_s12   ;;  %v1593_v4 = vmov (!%p215_p10), 0   ;;  %v406_v5 = vld [vmem:[%s1930_s0] sm:$0xff] (!%p215_p10)  ;;  %v407_v6 = vld [vmem:[%s1930_s0 + $0x8] sm:$0xff] (!%p215_p10)  ;;  %vm454_vm0 = vcmask (!%p215_p10), 130048   ;;  %v408_v12 = vld [vmem:[%s1930_s0 + $0x10] sm:$0xff] (!%p215_p10)  ;;  %v902_v33 = vlaneseq (!%p215_p10) }
  0x1d   : > { %218 = sbr.rel (%p215_p10) target bundleno = 320 (0x140), region = 51  ;;  %s1412_s4 = sshll.u32 (!%p215_p10), %s221_s30, 5  ;;  %511 = vmatprep.mubr.bf16.mxu0 (!%p215_p10), %v1593_v4  ;;  %624 = vmatprep.mubr.bf16.mxu1 (!%p215_p10), %v1593_v4  ;;  %v422_v11 = vpack.c.bf16 (!%p215_p10), %v407_v6, %v406_v5  ;;  %v409_v13 = vld [vmem:[%s1930_s0 + $0x18] sm:$0xff] (!%p215_p10)  ;;  %v410_v15 = vld [vmem:[%s1930_s0 + $0x20] sm:$0xff] (!%p215_p10)  ;;  %v411_v16 = vld [vmem:[%s1930_s0 + $0x28] sm:$0xff] (!%p215_p10) }
  0x1e   : > { %s223_s9 = scalar_lea.vmem (!%p215_p10), [#allocation3], %s1412_s4  ;;  %v423_v14 = vpack.c.bf16 (!%p215_p10), %v409_v13, %v408_v12  ;;  %v424_v17 = vpack.c.bf16 (!%p215_p10), %v411_v16, %v410_v15  ;;  %v412_v18 = vld [vmem:[%s1930_s0 + $0x30] sm:$0xff] (!%p215_p10)  ;;  %v413_v19 = vld [vmem:[%s1930_s0 + $0x38] sm:$0xff] (!%p215_p10)  ;;  %v414_v21 = vld [vmem:[%s1930_s0 + $0x40] sm:$0xff] (!%p215_p10)  ;;  %s1414_s28 = sshll.u32 (!%p215_p10), %s1583_s14, 2  ;;  %v903_v34 = vshrl.u32 (!%p215_p10), %v902_v33, 7 }
  0x1f   : > { %v1547_v7 = vld [vmem:[%s223_s9 + $0x4] ss:$16 sps:$4 sm:$0xff] (!%p215_p10)   ;;  %v1549_v8 = vld [vmem:[%s223_s9 + $0xc] ss:$16 sps:$4 sm:$0xff] (!%p215_p10)   ;;  %v1551_v9 = vld [vmem:[%s223_s9] ss:$16 sps:$4 sm:$0xff] (!%p215_p10)   ;;  %v425_v20 = vpack.c.bf16 (!%p215_p10), %v413_v19, %v412_v18 }
  0x20   : > { %479 = vmatprep.subr.bf16.mxu0 (!%p215_p10), %v1547_v7  ;;  %v1552_v10 = vld [vmem:[%s223_s9 + $0x8] ss:$16 sps:$4 sm:$0xff] (!%p215_p10)   ;;  %592 = vmatprep.subr.bf16.mxu1 (!%p215_p10), %v1549_v8  ;;  %v416_v24 = vld [vmem:[%s1930_s0 + $0x50] sm:$0xff] (!%p215_p10)  ;;  %v418_v27 = vld [vmem:[%s1930_s0 + $0x60] sm:$0xff] (!%p215_p10)  ;;  %p267_p11 = scmp.lt.s32.totalorder (!%p215_p10), %s1414_s28, 7  ;;  %v904_v35 = vsub.s32 (!%p215_p10), 0, %v903_v34 }
  0x21   : > { %480 = vmatpush1.bf16.msra.mxu0 (!%p215_p10), %v1551_v9  ;;  %593 = vmatpush1.bf16.msra.mxu1 (!%p215_p10), %v1552_v10  ;;  %v415_v22 = vld [vmem:[%s1930_s0 + $0x48] sm:$0xff] (!%p215_p10)  ;;  %v417_v25 = vld [vmem:[%s1930_s0 + $0x58] sm:$0xff] (!%p215_p10)  ;;  %v420_v30 = vld [vmem:[%s1930_s0 + $0x70] sm:$0xff] (!%p215_p10)  ;;  %v912_v36 = vsub.s32 (!%p215_p10), 2, %v903_v34  ;;  %v908_v38 = vsub.s32 (!%p215_p10), 1, %v903_v34  ;;  %v916_v39 = vsub.s32 (!%p215_p10), 3, %v903_v34 }
  0x22   : > { %v426_v23 = vpack.c.bf16 (!%p215_p10), %v415_v22, %v414_v21  ;;  %v427_v26 = vpack.c.bf16 (!%p215_p10), %v417_v25, %v416_v24  ;;  %v419_v28 = vld [vmem:[%s1930_s0 + $0x68] sm:$0xff] (!%p215_p10)  ;;  %v421_v31 = vld [vmem:[%s1930_s0 + $0x78] sm:$0xff] (!%p215_p10)  ;;  %s1413_s6 = sshll.u32 (!%p215_p10), %s221_s30, 8 }
  0x23   : > { %v428_v29 = vpack.c.bf16 (!%p215_p10), %v419_v28, %v418_v27  ;;  %v429_v32 = vpack.c.bf16 (!%p215_p10), %v421_v31, %v420_v30  ;;  %s1753_s12 = scalar_lea.vmem (!%p215_p10), [#allocation4], %s1413_s6 }
  0x24   : > { %1419 = vmatmul.mubr.msk.bf16.vlgmr.msra.gmra.mrb[0].mxu0 %vm454_vm0, %v422_v11  ;;  %1427 = vmatmul.mubr.msk.bf16.vlgmr.msra.gmra.mrb[0].mxu1 %vm454_vm0, %v422_v11  ;;  %s1942_s28 = smov (!%p267_p11, %s1414_s28), 7  ;;  %s1505_s30 = sshll.u32 (%p1649_p6), %s1583_s14, 4 }
  0x25   : > { %521 = vmatprep.mubr.bf16.mxu0 %v1593_v4  ;;  %634 = vmatprep.mubr.bf16.mxu1 %v1593_v4  ;;  %s269_s5 = scalar_lea.vmem %s1932_s2, %s1942_s28  ;;  %s1852_s9 = scalar_lea.vmem (%p1649_p6), %s1933_s3, %s1505_s30 }
  0x26   : > { %v900_v37 = vld [vmem:[%s269_s5] sm:$0xf] }
  0x27   : > { %v1735_v40 = vrot.slane %v900_v37, %v904_v35  ;;  %v1737_v41 = vrot.slane %v900_v37, %v912_v36  ;;  %v1739_v42 = vrot.slane %v900_v37, %v908_v38  ;;  %v1741_v43 = vrot.slane %v900_v37, %v916_v39 }
  0x2c   : > { %1420 = vmatmul.mubr.msk.bf16.gmra.mrb[4].mxu0 %vm454_vm0, %v423_v14  ;;  %1428 = vmatmul.mubr.msk.bf16.gmra.mrb[4].mxu1 %vm454_vm0, %v423_v14 }
  0x2d   : > { %531 = vmatprep.mubr.bf16.mxu0 %v1593_v4  ;;  %644 = vmatprep.mubr.bf16.mxu1 %v1593_v4 }
  0x34   : > { %1421 = vmatmul.mubr.msk.bf16.gmra.mrb[8].mxu0 %vm454_vm0, %v424_v17  ;;  %1429 = vmatmul.mubr.msk.bf16.gmra.mrb[8].mxu1 %vm454_vm0, %v424_v17 }
  0x35   : > { %541 = vmatprep.mubr.bf16.mxu0 %v1593_v4  ;;  %654 = vmatprep.mubr.bf16.mxu1 %v1593_v4 }
  0x3c   : > { %1422 = vmatmul.mubr.msk.bf16.gmra.mrb[12].mxu0 %vm454_vm0, %v425_v20  ;;  %1430 = vmatmul.mubr.msk.bf16.gmra.mrb[12].mxu1 %vm454_vm0, %v425_v20 }
  0x3d   : > { %551 = vmatprep.mubr.bf16.mxu0 %v1593_v4  ;;  %664 = vmatprep.mubr.bf16.mxu1 %v1593_v4 }
  0x44   : > { %1423 = vmatmul.mubr.msk.bf16.gmra.mrb[16].mxu0 %vm454_vm0, %v426_v23  ;;  %1431 = vmatmul.mubr.msk.bf16.gmra.mrb[16].mxu1 %vm454_vm0, %v426_v23 }
  0x45   : > { %561 = vmatprep.mubr.bf16.mxu0 %v1593_v4  ;;  %674 = vmatprep.mubr.bf16.mxu1 %v1593_v4 }
  0x4c   : > { %1424 = vmatmul.mubr.msk.bf16.gmra.mrb[20].mxu0 %vm454_vm0, %v427_v26  ;;  %1432 = vmatmul.mubr.msk.bf16.gmra.mrb[20].mxu1 %vm454_vm0, %v427_v26 }
  0x4d   : > { %571 = vmatprep.mubr.bf16.mxu0 %v1593_v4  ;;  %684 = vmatprep.mubr.bf16.mxu1 %v1593_v4 }
  0x54   : > { %1425 = vmatmul.mubr.msk.bf16.gmra.mrb[24].mxu0 %vm454_vm0, %v428_v29  ;;  %1433 = vmatmul.mubr.msk.bf16.gmra.mrb[24].mxu1 %vm454_vm0, %v428_v29 }
  0x55   : > { %581 = vmatprep.mubr.bf16.mxu0 %v1593_v4  ;;  %694 = vmatprep.mubr.bf16.mxu1 %v1593_v4 }
  0x5c   : > { %1426 = vmatmul.mubr.msk.bf16.gmra.mrb[28].mxu0 %vm454_vm0, %v429_v32  ;;  %1434 = vmatmul.mubr.msk.bf16.gmra.mrb[28].mxu1 %vm454_vm0, %v429_v32 }
  0xf7   : > { %v513_v44 = vpop.f32.mrb[0].mxu0  ;;  %v626_v45 = vpop.f32.mrb[0].mxu1 }
  0xf8   : > { %v922_v46 = vadd.f32 %v1735_v40, %v513_v44  ;;  %v924_v47 = vadd.f32 %v1737_v41, %v626_v45  ;;  %v515_v48 = vpop.f32.mrb[1].mxu0  ;;  %v628_v49 = vpop.f32.mrb[1].mxu1 }
  0xf9   : > { %v923_v50 = vadd.f32 %v1739_v42, %v515_v48  ;;  %v925_v51 = vadd.f32 %v1741_v43, %v628_v49  ;;  %v517_v52 = vpop.f32.mrb[2].mxu0  ;;  %v630_v53 = vpop.f32.mrb[2].mxu1 }
  0xfa   : > { %v926_v54 = vadd.f32 %v1735_v40, %v517_v52  ;;  %v928_v55 = vadd.f32 %v1737_v41, %v630_v53  ;;  %v519_v56 = vpop.f32.mrb[3].mxu0  ;;  %v632_v57 = vpop.f32.mrb[3].mxu1 }
  0xfb   : > { %v1473_v58 = vpack.c.bf16 %v923_v50, %v922_v46  ;;  %v1474_v59 = vpack.c.bf16 %v925_v51, %v924_v47  ;;  %v927_v60 = vadd.f32 %v1739_v42, %v519_v56  ;;  %v929_v61 = vadd.f32 %v1741_v43, %v632_v57 }
  0xfd   : > { %1178 = vst [vmem:[%s1753_s12] sm:$0xff] %v1473_v58  ;;  %1179 = vst [vmem:[%s1753_s12 + $0x8] sm:$0xff] %v1474_v59  ;;  %v1475_v62 = vpack.c.bf16 %v927_v60, %v926_v54  ;;  %v1476_v63 = vpack.c.bf16 %v929_v61, %v928_v55 }
  0xff   : > { %1180 = vst [vmem:[%s1753_s12 + $0x10] sm:$0xff] %v1475_v62  ;;  %1181 = vst [vmem:[%s1753_s12 + $0x18] sm:$0xff] %v1476_v63  ;;  %v523_v0 = vpop.f32.mrb[4].mxu0  ;;  %v636_v1 = vpop.f32.mrb[4].mxu1 }
 0x100   : > { %v930_v2 = vadd.f32 %v1735_v40, %v523_v0  ;;  %v932_v3 = vadd.f32 %v1737_v41, %v636_v1  ;;  %v525_v4 = vpop.f32.mrb[5].mxu0  ;;  %v638_v5 = vpop.f32.mrb[5].mxu1 }
 0x101   : > { %v931_v6 = vadd.f32 %v1739_v42, %v525_v4  ;;  %v933_v7 = vadd.f32 %v1741_v43, %v638_v5  ;;  %v527_v8 = vpop.f32.mrb[6].mxu0  ;;  %v640_v9 = vpop.f32.mrb[6].mxu1 }
 0x102   : > { %v934_v10 = vadd.f32 %v1735_v40, %v527_v8  ;;  %v936_v11 = vadd.f32 %v1737_v41, %v640_v9  ;;  %v529_v12 = vpop.f32.mrb[7].mxu0  ;;  %v642_v13 = vpop.f32.mrb[7].mxu1 }
 0x103   : > { %v1477_v14 = vpack.c.bf16 %v931_v6, %v930_v2  ;;  %v1478_v15 = vpack.c.bf16 %v933_v7, %v932_v3  ;;  %v935_v16 = vadd.f32 %v1739_v42, %v529_v12  ;;  %v937_v17 = vadd.f32 %v1741_v43, %v642_v13 }
 0x105   : > { %1182 = vst [vmem:[%s1753_s12 + $0x20] sm:$0xff] %v1477_v14  ;;  %1183 = vst [vmem:[%s1753_s12 + $0x28] sm:$0xff] %v1478_v15  ;;  %v1479_v18 = vpack.c.bf16 %v935_v16, %v934_v10  ;;  %v1480_v19 = vpack.c.bf16 %v937_v17, %v936_v11 }
 0x107   : > { %1184 = vst [vmem:[%s1753_s12 + $0x30] sm:$0xff] %v1479_v18  ;;  %1185 = vst [vmem:[%s1753_s12 + $0x38] sm:$0xff] %v1480_v19  ;;  %v533_v20 = vpop.f32.mrb[8].mxu0  ;;  %v646_v21 = vpop.f32.mrb[8].mxu1 }
 0x108   : > { %v938_v22 = vadd.f32 %v1735_v40, %v533_v20  ;;  %v940_v23 = vadd.f32 %v1737_v41, %v646_v21  ;;  %v535_v24 = vpop.f32.mrb[9].mxu0  ;;  %v648_v25 = vpop.f32.mrb[9].mxu1 }
 0x109   : > { %v939_v26 = vadd.f32 %v1739_v42, %v535_v24  ;;  %v941_v27 = vadd.f32 %v1741_v43, %v648_v25  ;;  %v537_v28 = vpop.f32.mrb[10].mxu0  ;;  %v650_v29 = vpop.f32.mrb[10].mxu1 }
 0x10a   : > { %v942_v30 = vadd.f32 %v1735_v40, %v537_v28  ;;  %v944_v31 = vadd.f32 %v1737_v41, %v650_v29  ;;  %v539_v32 = vpop.f32.mrb[11].mxu0  ;;  %v652_v33 = vpop.f32.mrb[11].mxu1 }
 0x10b   : > { %v1481_v34 = vpack.c.bf16 %v939_v26, %v938_v22  ;;  %v1482_v35 = vpack.c.bf16 %v941_v27, %v940_v23  ;;  %v943_v36 = vadd.f32 %v1739_v42, %v539_v32  ;;  %v945_v37 = vadd.f32 %v1741_v43, %v652_v33 }
 0x10d   : > { %1186 = vst [vmem:[%s1753_s12 + $0x40] sm:$0xff] %v1481_v34  ;;  %1187 = vst [vmem:[%s1753_s12 + $0x48] sm:$0xff] %v1482_v35  ;;  %v1483_v38 = vpack.c.bf16 %v943_v36, %v942_v30  ;;  %v1484_v39 = vpack.c.bf16 %v945_v37, %v944_v31 }
 0x10f   : > { %1188 = vst [vmem:[%s1753_s12 + $0x50] sm:$0xff] %v1483_v38  ;;  %1189 = vst [vmem:[%s1753_s12 + $0x58] sm:$0xff] %v1484_v39  ;;  %v543_v44 = vpop.f32.mrb[12].mxu0  ;;  %v656_v45 = vpop.f32.mrb[12].mxu1 }
 0x110   : > { %v946_v46 = vadd.f32 %v1735_v40, %v543_v44  ;;  %v948_v47 = vadd.f32 %v1737_v41, %v656_v45  ;;  %v545_v48 = vpop.f32.mrb[13].mxu0  ;;  %v658_v49 = vpop.f32.mrb[13].mxu1 }
 0x111   : > { %v947_v50 = vadd.f32 %v1739_v42, %v545_v48  ;;  %v949_v51 = vadd.f32 %v1741_v43, %v658_v49  ;;  %v547_v52 = vpop.f32.mrb[14].mxu0  ;;  %v660_v53 = vpop.f32.mrb[14].mxu1 }
 0x112   : > { %v950_v54 = vadd.f32 %v1735_v40, %v547_v52  ;;  %v952_v55 = vadd.f32 %v1737_v41, %v660_v53  ;;  %v549_v56 = vpop.f32.mrb[15].mxu0  ;;  %v662_v57 = vpop.f32.mrb[15].mxu1 }
 0x113   : > { %v1485_v58 = vpack.c.bf16 %v947_v50, %v946_v46  ;;  %v1486_v59 = vpack.c.bf16 %v949_v51, %v948_v47  ;;  %v951_v60 = vadd.f32 %v1739_v42, %v549_v56  ;;  %v953_v61 = vadd.f32 %v1741_v43, %v662_v57 }
 0x115   : > { %1190 = vst [vmem:[%s1753_s12 + $0x60] sm:$0xff] %v1485_v58  ;;  %1191 = vst [vmem:[%s1753_s12 + $0x68] sm:$0xff] %v1486_v59  ;;  %v1487_v62 = vpack.c.bf16 %v951_v60, %v950_v54  ;;  %v1488_v63 = vpack.c.bf16 %v953_v61, %v952_v55 }
 0x117   : > { %1192 = vst [vmem:[%s1753_s12 + $0x70] sm:$0xff] %v1487_v62  ;;  %1193 = vst [vmem:[%s1753_s12 + $0x78] sm:$0xff] %v1488_v63  ;;  %v553_v0 = vpop.f32.mrb[16].mxu0  ;;  %v666_v1 = vpop.f32.mrb[16].mxu1 }
 0x118   : > { %v954_v2 = vadd.f32 %v1735_v40, %v553_v0  ;;  %v956_v3 = vadd.f32 %v1737_v41, %v666_v1  ;;  %v555_v4 = vpop.f32.mrb[17].mxu0  ;;  %v668_v5 = vpop.f32.mrb[17].mxu1 }
 0x119   : > { %v955_v6 = vadd.f32 %v1739_v42, %v555_v4  ;;  %v957_v7 = vadd.f32 %v1741_v43, %v668_v5  ;;  %v557_v8 = vpop.f32.mrb[18].mxu0  ;;  %v670_v9 = vpop.f32.mrb[18].mxu1 }
 0x11a   : > { %v958_v10 = vadd.f32 %v1735_v40, %v557_v8  ;;  %v960_v11 = vadd.f32 %v1737_v41, %v670_v9  ;;  %v559_v12 = vpop.f32.mrb[19].mxu0  ;;  %v672_v13 = vpop.f32.mrb[19].mxu1 }
 0x11b   : > { %v1489_v14 = vpack.c.bf16 %v955_v6, %v954_v2  ;;  %v1490_v15 = vpack.c.bf16 %v957_v7, %v956_v3  ;;  %v959_v16 = vadd.f32 %v1739_v42, %v559_v12  ;;  %v961_v17 = vadd.f32 %v1741_v43, %v672_v13 }
 0x11d   : > { %1194 = vst [vmem:[%s1753_s12 + $0x80] sm:$0xff] %v1489_v14  ;;  %1195 = vst [vmem:[%s1753_s12 + $0x88] sm:$0xff] %v1490_v15  ;;  %v1491_v18 = vpack.c.bf16 %v959_v16, %v958_v10  ;;  %v1492_v19 = vpack.c.bf16 %v961_v17, %v960_v11 }
 0x11f   : > { %1196 = vst [vmem:[%s1753_s12 + $0x90] sm:$0xff] %v1491_v18  ;;  %1197 = vst [vmem:[%s1753_s12 + $0x98] sm:$0xff] %v1492_v19  ;;  %v563_v20 = vpop.f32.mrb[20].mxu0  ;;  %v676_v21 = vpop.f32.mrb[20].mxu1 }
 0x120   : > { %v962_v22 = vadd.f32 %v1735_v40, %v563_v20  ;;  %v964_v23 = vadd.f32 %v1737_v41, %v676_v21  ;;  %v565_v24 = vpop.f32.mrb[21].mxu0  ;;  %v678_v25 = vpop.f32.mrb[21].mxu1  ;;  %v1243_v20 = vld [vmem:[%s1753_s12 + $0x20] sm:$0xff] (%p1649_p6)  ;;  %v1245_v21 = vld [vmem:[%s1753_s12 + $0x28] sm:$0xff] (%p1649_p6) }
 0x121   : > { %v963_v26 = vadd.f32 %v1739_v42, %v565_v24  ;;  %v965_v27 = vadd.f32 %v1741_v43, %v678_v25  ;;  %v567_v28 = vpop.f32.mrb[22].mxu0  ;;  %v680_v29 = vpop.f32.mrb[22].mxu1  ;;  %1244 = vst [vmem:[%s1852_s9 + $0x40] sm:$0xff] (%p1649_p6), %v1243_v20  ;;  %1246 = vst [vmem:[%s1852_s9 + $0x48] sm:$0xff] (%p1649_p6), %v1245_v21  ;;  %v1251_v24 = vld [vmem:[%s1753_s12 + $0x40] sm:$0xff] (%p1649_p6)  ;;  %v1253_v25 = vld [vmem:[%s1753_s12 + $0x48] sm:$0xff] (%p1649_p6) }
 0x122   : > { %v966_v30 = vadd.f32 %v1735_v40, %v567_v28  ;;  %v968_v31 = vadd.f32 %v1737_v41, %v680_v29  ;;  %v569_v32 = vpop.f32.mrb[23].mxu0  ;;  %v682_v33 = vpop.f32.mrb[23].mxu1  ;;  %1252 = vst [vmem:[%s1852_s9 + $0x80] sm:$0xff] (%p1649_p6), %v1251_v24  ;;  %1254 = vst [vmem:[%s1852_s9 + $0x88] sm:$0xff] (%p1649_p6), %v1253_v25  ;;  %v1259_v28 = vld [vmem:[%s1753_s12 + $0x60] sm:$0xff] (%p1649_p6)  ;;  %v1261_v29 = vld [vmem:[%s1753_s12 + $0x68] sm:$0xff] (%p1649_p6) }
 0x123   : > { %v1493_v34 = vpack.c.bf16 %v963_v26, %v962_v22  ;;  %v1494_v35 = vpack.c.bf16 %v965_v27, %v964_v23  ;;  %v967_v36 = vadd.f32 %v1739_v42, %v569_v32  ;;  %v969_v37 = vadd.f32 %v1741_v43, %v682_v33  ;;  %v1247_v22 = vld [vmem:[%s1753_s12 + $0x30] sm:$0xff] (%p1649_p6)  ;;  %v1249_v23 = vld [vmem:[%s1753_s12 + $0x38] sm:$0xff] (%p1649_p6)  ;;  %1260 = vst [vmem:[%s1852_s9 + $0xc0] sm:$0xff] (%p1649_p6), %v1259_v28 }
 0x124   : > { %1248 = vst [vmem:[%s1852_s9 + $0x60] sm:$0xff] (%p1649_p6), %v1247_v22  ;;  %1250 = vst [vmem:[%s1852_s9 + $0x68] sm:$0xff] (%p1649_p6), %v1249_v23  ;;  %v1255_v26 = vld [vmem:[%s1753_s12 + $0x50] sm:$0xff] (%p1649_p6)  ;;  %v1257_v27 = vld [vmem:[%s1753_s12 + $0x58] sm:$0xff] (%p1649_p6) }
 0x125   : > { %1198 = vst [vmem:[%s1753_s12 + $0xa0] sm:$0xff] %v1493_v34  ;;  %1199 = vst [vmem:[%s1753_s12 + $0xa8] sm:$0xff] %v1494_v35  ;;  %v1495_v38 = vpack.c.bf16 %v967_v36, %v966_v30  ;;  %v1496_v39 = vpack.c.bf16 %v969_v37, %v968_v31  ;;  %v1263_v30 = vld [vmem:[%s1753_s12 + $0x70] sm:$0xff] (%p1649_p6)  ;;  %v1265_v31 = vld [vmem:[%s1753_s12 + $0x78] sm:$0xff] (%p1649_p6) }
 0x126   : > { %1256 = vst [vmem:[%s1852_s9 + $0xa0] sm:$0xff] (%p1649_p6), %v1255_v26  ;;  %1258 = vst [vmem:[%s1852_s9 + $0xa8] sm:$0xff] (%p1649_p6), %v1257_v27  ;;  %v1267_v32 = vld [vmem:[%s1753_s12 + $0x80] sm:$0xff] (%p1649_p6)  ;;  %v1269_v33 = vld [vmem:[%s1753_s12 + $0x88] sm:$0xff] (%p1649_p6) }
 0x127   : > { %1200 = vst [vmem:[%s1753_s12 + $0xb0] sm:$0xff] %v1495_v38  ;;  %1201 = vst [vmem:[%s1753_s12 + $0xb8] sm:$0xff] %v1496_v39  ;;  %v573_v44 = vpop.f32.mrb[24].mxu0  ;;  %v686_v45 = vpop.f32.mrb[24].mxu1  ;;  %v1271_v34 = vld [vmem:[%s1753_s12 + $0x90] sm:$0xff] (%p1649_p6)  ;;  %v1273_v35 = vld [vmem:[%s1753_s12 + $0x98] sm:$0xff] (%p1649_p6) }
 0x128   : > { %v970_v46 = vadd.f32 %v1735_v40, %v573_v44  ;;  %v972_v47 = vadd.f32 %v1737_v41, %v686_v45  ;;  %v575_v48 = vpop.f32.mrb[25].mxu0  ;;  %v688_v49 = vpop.f32.mrb[25].mxu1  ;;  %1262 = vst [vmem:[%s1852_s9 + $0xc8] sm:$0xff] (%p1649_p6), %v1261_v29  ;;  %1264 = vst [vmem:[%s1852_s9 + $0xe0] sm:$0xff] (%p1649_p6), %v1263_v30 }
 0x129   : > { %v971_v50 = vadd.f32 %v1739_v42, %v575_v48  ;;  %v973_v51 = vadd.f32 %v1741_v43, %v688_v49  ;;  %v577_v52 = vpop.f32.mrb[26].mxu0  ;;  %v690_v53 = vpop.f32.mrb[26].mxu1  ;;  %1266 = vst [vmem:[%s1852_s9 + $0xe8] sm:$0xff] (%p1649_p6), %v1265_v31  ;;  %1268 = vst [vmem:[%s1852_s9 + $0x100] sm:$0xff] (%p1649_p6), %v1267_v32 }
 0x12a   : > { %v974_v54 = vadd.f32 %v1735_v40, %v577_v52  ;;  %v976_v55 = vadd.f32 %v1737_v41, %v690_v53  ;;  %v579_v56 = vpop.f32.mrb[27].mxu0  ;;  %v692_v57 = vpop.f32.mrb[27].mxu1  ;;  %1270 = vst [vmem:[%s1852_s9 + $0x108] sm:$0xff] (%p1649_p6), %v1269_v33  ;;  %1272 = vst [vmem:[%s1852_s9 + $0x120] sm:$0xff] (%p1649_p6), %v1271_v34 }
 0x12b   : > { %v1497_v58 = vpack.c.bf16 %v971_v50, %v970_v46  ;;  %v1498_v59 = vpack.c.bf16 %v973_v51, %v972_v47  ;;  %v975_v60 = vadd.f32 %v1739_v42, %v579_v56  ;;  %v977_v61 = vadd.f32 %v1741_v43, %v692_v57  ;;  %1274 = vst [vmem:[%s1852_s9 + $0x128] sm:$0xff] (%p1649_p6), %v1273_v35 }
 0x12c   : > { %v1275_v36 = vld [vmem:[%s1753_s12 + $0xa0] sm:$0xff] (%p1649_p6)  ;;  %v1277_v37 = vld [vmem:[%s1753_s12 + $0xa8] sm:$0xff] (%p1649_p6) }
 0x12d   : > { %1202 = vst [vmem:[%s1753_s12 + $0xc0] sm:$0xff] %v1497_v58  ;;  %1203 = vst [vmem:[%s1753_s12 + $0xc8] sm:$0xff] %v1498_v59  ;;  %v1499_v62 = vpack.c.bf16 %v975_v60, %v974_v54  ;;  %v1500_v63 = vpack.c.bf16 %v977_v61, %v976_v55 }
 0x12e   : > { %1276 = vst [vmem:[%s1852_s9 + $0x140] sm:$0xff] (%p1649_p6), %v1275_v36  ;;  %v1279_v38 = vld [vmem:[%s1753_s12 + $0xb0] sm:$0xff] (%p1649_p6)  ;;  %v1281_v39 = vld [vmem:[%s1753_s12 + $0xb8] sm:$0xff] (%p1649_p6)  ;;  %1278 = vst [vmem:[%s1852_s9 + $0x148] sm:$0xff] (%p1649_p6), %v1277_v37 }
 0x12f   : > { %1204 = vst [vmem:[%s1753_s12 + $0xd0] sm:$0xff] %v1499_v62  ;;  %1205 = vst [vmem:[%s1753_s12 + $0xd8] sm:$0xff] %v1500_v63  ;;  %v583_v0 = vpop.f32.mrb[28].mxu0  ;;  %v696_v1 = vpop.f32.mrb[28].mxu1 }
 0x130   : > { %v978_v2 = vadd.f32 %v1735_v40, %v583_v0  ;;  %v980_v3 = vadd.f32 %v1737_v41, %v696_v1  ;;  %v585_v4 = vpop.f32.mrb[29].mxu0  ;;  %v698_v5 = vpop.f32.mrb[29].mxu1  ;;  %1280 = vst [vmem:[%s1852_s9 + $0x160] sm:$0xff] (%p1649_p6), %v1279_v38  ;;  %1282 = vst [vmem:[%s1852_s9 + $0x168] sm:$0xff] (%p1649_p6), %v1281_v39 }
 0x131   : > { %v979_v6 = vadd.f32 %v1739_v42, %v585_v4  ;;  %v981_v7 = vadd.f32 %v1741_v43, %v698_v5  ;;  %v587_v8 = vpop.f32.mrb[30].mxu0  ;;  %v700_v9 = vpop.f32.mrb[30].mxu1  ;;  %1216 = sbr.rel (!%p1649_p6) target bundleno = 320 (0x140), region = 67 }
 0x132   : > { %v982_v10 = vadd.f32 %v1735_v40, %v587_v8  ;;  %v984_v11 = vadd.f32 %v1737_v41, %v700_v9  ;;  %v589_v12 = vpop.f32.mrb[31].mxu0  ;;  %v702_v13 = vpop.f32.mrb[31].mxu1  ;;  %v1235_v40 = vld [vmem:[%s1753_s12] sm:$0xff] (%p1649_p6)  ;;  %v1237_v41 = vld [vmem:[%s1753_s12 + $0x8] sm:$0xff] (%p1649_p6) }
 0x133   : > { %v1501_v14 = vpack.c.bf16 %v979_v6, %v978_v2  ;;  %v1502_v15 = vpack.c.bf16 %v981_v7, %v980_v3  ;;  %v983_v16 = vadd.f32 %v1739_v42, %v589_v12  ;;  %v985_v17 = vadd.f32 %v1741_v43, %v702_v13  ;;  %v1239_v42 = vld [vmem:[%s1753_s12 + $0x10] sm:$0xff] (%p1649_p6)  ;;  %v1241_v43 = vld [vmem:[%s1753_s12 + $0x18] sm:$0xff] (%p1649_p6)  ;;  %1236 = vst [vmem:[%s1852_s9] sm:$0xff] (%p1649_p6), %v1235_v40 }
 0x134   : > { %1238 = vst [vmem:[%s1852_s9 + $0x8] sm:$0xff] (%p1649_p6), %v1237_v41  ;;  %1240 = vst [vmem:[%s1852_s9 + $0x20] sm:$0xff] (%p1649_p6), %v1239_v42  ;;  %v1283_v44 = vld [vmem:[%s1753_s12 + $0xc0] sm:$0xff] (%p1649_p6)  ;;  %v1285_v45 = vld [vmem:[%s1753_s12 + $0xc8] sm:$0xff] (%p1649_p6) }
 0x135   : > { %1206 = vst [vmem:[%s1753_s12 + $0xe0] sm:$0xff] %v1501_v14  ;;  %1207 = vst [vmem:[%s1753_s12 + $0xe8] sm:$0xff] %v1502_v15  ;;  %v1503_v18 = vpack.c.bf16 %v983_v16, %v982_v10  ;;  %v1504_v19 = vpack.c.bf16 %v985_v17, %v984_v11 }
 0x136   : > { %1242 = vst [vmem:[%s1852_s9 + $0x28] sm:$0xff] (%p1649_p6), %v1241_v43  ;;  %v1287_v46 = vld [vmem:[%s1753_s12 + $0xd0] sm:$0xff] (%p1649_p6)  ;;  %1284 = vst [vmem:[%s1852_s9 + $0x180] sm:$0xff] (%p1649_p6), %v1283_v44  ;;  %v1289_v47 = vld [vmem:[%s1753_s12 + $0xd8] sm:$0xff] (%p1649_p6) }
 0x137   : > { %1208 = vst [vmem:[%s1753_s12 + $0xf0] sm:$0xff] %v1503_v18  ;;  %1209 = vst [vmem:[%s1753_s12 + $0xf8] sm:$0xff] %v1504_v19 }
 0x138   : > { %1286 = vst [vmem:[%s1852_s9 + $0x188] sm:$0xff] %v1285_v45  ;;  %1288 = vst [vmem:[%s1852_s9 + $0x1a0] sm:$0xff] %v1287_v46 }
 0x139   : > { %1290 = vst [vmem:[%s1852_s9 + $0x1a8] sm:$0xff] %v1289_v47 }
 0x13c   : > { %v1291_v48 = vld [vmem:[%s1753_s12 + $0xe0] sm:$0xff]  ;;  %v1293_v49 = vld [vmem:[%s1753_s12 + $0xe8] sm:$0xff] }
 0x13d   : > { %1292 = vst [vmem:[%s1852_s9 + $0x1c0] sm:$0xff] %v1291_v48  ;;  %1294 = vst [vmem:[%s1852_s9 + $0x1c8] sm:$0xff] %v1293_v49 }
 0x13e   : > { %v1295_v50 = vld [vmem:[%s1753_s12 + $0xf0] sm:$0xff]  ;;  %v1297_v51 = vld [vmem:[%s1753_s12 + $0xf8] sm:$0xff] }
 0x13f   : > { %1296 = vst [vmem:[%s1852_s9 + $0x1e0] sm:$0xff] %v1295_v50  ;;  %1298 = vst [vmem:[%s1852_s9 + $0x1e8] sm:$0xff] %v1297_v51 }
 0x140 PF: > { %s13_s16 = sadd.s32 1, %s1591_s16   ;;  %s1935_s12 = smov %s1579_s13 }
 0x141   : > { %p10_p12 = scmp.ge.s32.totalorder %s13_s16, 4   ;;  %s1936_s13 = smov %s1654_s22 }
 0x142   : > { %s1937_s14 = smov %s1587_s15  ;;  %s1938_s15 = smov %s1940_s17 }
 0x143   :  { %12 = sbr.rel (!%p10_p12) target bundleno = 3 (0x3), region = 127 }

// kernel: lstm_encoder_forward.6
= control target key start
LH: loop header
LB: loop body
LE: loop exit
PB: predicated region body
PF: predicated region fallthrough
CT: control target
= control target key end

     0   :  { %s2323_s12 = smov 0   ;;  %s2325_s13 = smov 0   ;;  %s2821_s0 = inlined_call_operand.vmem [shape: bf16[128,256], index: 0, kind: input, shape index: {}]   ;;  %s2822_s1 = inlined_call_operand.vmem [shape: bf16[256,1024], index: 1, kind: input, shape index: {}]   ;;  %s2823_s2 = inlined_call_operand.vmem [shape: f32[1,1024], index: 2, kind: input, shape index: {}]   ;;  %s2824_s3 = inlined_call_operand.vmem [shape: bf16[128,1024], index: 3, kind: output, shape index: {}]  }
   0x1   :  { %s2327_s14 = smov 0   ;;  %s2329_s15 = smov 0  }
   0x2   :  { %s2331_s16 = smov 0  }
   0x3 LB: > { %s28_s17 = sadd.s32 1, %s2297_s15  ;;  %s1940_s18 = sadd.s32 4294967295, %s2301_s16   ;;  %s2301_s16 = sphi %s2331_s16, %s13_s16   ;;  %s2297_s15 = sphi %s2329_s15, %s2829_s15   ;;  %s2293_s14 = sphi %s2327_s14, %s2828_s14   ;;  %s2289_s13 = sphi %s2325_s13, %s2827_s13   ;;  %s2285_s12 = sphi %s2323_s12, %s2826_s12  }
   0x4   : > { %p30_p0 = scmp.ge.s32.totalorder %s28_s17, 2  ;;  %p76_p1 = scmp.ne.s32.totalorder %s2289_s13, %s2285_s12 }
   0x5   : > { %p77_p2 = scmp.eq.s32.totalorder %s2301_s16, 0  ;;  %p134_p4 = scmp.eq.s32.totalorder %s1940_s18, 1 }
   0x6   : > { %s2831_s17 = smov (%p30_p0, %s28_s17), 0  ;;  %s69_s20 = sadd.s32 1, %s2289_s13 }
   0x7   : > { %p78_p3 = por %p77_p2, %p76_p1  ;;  %s65_s19 = ssub.s32 %s2297_s15, %s2831_s17 }
   0x8   : > { %p67_p5 = scmp.eq.s32.totalorder %s65_s19, 0  ;;  %p2358_p6 = por %p134_p4, %p76_p1 }
   0x9   : > { %p1944_p7 = scmp.ge.s32.totalorder %s2301_s16, 2 }
   0xa   : > { %s2363_s22 = scalar_select %p67_p5, %s2289_s13, %s69_s20  }
   0xb   : > { %171 = sbr.rel (%p1944_p7) target bundleno = 54 (0x36), region = 20 }
  0x12   : > { %174 = sbr.rel (!%p78_p3) target bundleno = 54 (0x36), region = 24  ;;  %s176_s23 = sand.u32 (%p78_p3), 1, %s2289_s13  }
  0x13   : > { %s2069_s24 = sshll.u32 (%p78_p3), %s2297_s15, 4  ;;  %s1945_s25 = sshll.u32 (%p78_p3), %s176_s23, 9 }
  0x14   : > { %s2371_s28 = scalar_lea.vmem (%p78_p3), %s2822_s1, %s2069_s24  ;;  %s2376_s29 = scalar_lea.vmem (%p78_p3), [#allocation3], %s1945_s25 }
  0x15   : > { %v197_v0 = vld [vmem:[%s2371_s28] sm:$0xff] (%p78_p3)  ;;  %v199_v1 = vld [vmem:[%s2371_s28 + $0x8] sm:$0xff] (%p78_p3) }
  0x16   : > { %v201_v2 = vld [vmem:[%s2371_s28 + $0x20] sm:$0xff] (%p78_p3)  ;;  %198 = vst [vmem:[%s2376_s29] sm:$0xff] (%p78_p3), %v197_v0  ;;  %200 = vst [vmem:[%s2376_s29 + $0x8] sm:$0xff] (%p78_p3), %v199_v1  ;;  %v203_v3 = vld [vmem:[%s2371_s28 + $0x28] sm:$0xff] (%p78_p3) }
  0x17   : > { %202 = vst [vmem:[%s2376_s29 + $0x10] sm:$0xff] (%p78_p3), %v201_v2  ;;  %v205_v4 = vld [vmem:[%s2371_s28 + $0x40] sm:$0xff] (%p78_p3)  ;;  %v207_v5 = vld [vmem:[%s2371_s28 + $0x48] sm:$0xff] (%p78_p3)  ;;  %204 = vst [vmem:[%s2376_s29 + $0x18] sm:$0xff] (%p78_p3), %v203_v3 }
  0x18   : > { %206 = vst [vmem:[%s2376_s29 + $0x20] sm:$0xff] (%p78_p3), %v205_v4  ;;  %208 = vst [vmem:[%s2376_s29 + $0x28] sm:$0xff] (%p78_p3), %v207_v5  ;;  %v209_v6 = vld [vmem:[%s2371_s28 + $0x60] sm:$0xff] (%p78_p3)  ;;  %v211_v7 = vld [vmem:[%s2371_s28 + $0x68] sm:$0xff] (%p78_p3) }
  0x19   : > { %v213_v8 = vld [vmem:[%s2371_s28 + $0x80] sm:$0xff]  ;;  %210 = vst [vmem:[%s2376_s29 + $0x30] sm:$0xff] %v209_v6  ;;  %212 = vst [vmem:[%s2376_s29 + $0x38] sm:$0xff] %v211_v7  ;;  %v215_v9 = vld [vmem:[%s2371_s28 + $0x88] sm:$0xff] }
  0x1a   : > { %214 = vst [vmem:[%s2376_s29 + $0x40] sm:$0xff] %v213_v8  ;;  %v217_v10 = vld [vmem:[%s2371_s28 + $0xa0] sm:$0xff]  ;;  %v219_v11 = vld [vmem:[%s2371_s28 + $0xa8] sm:$0xff]  ;;  %216 = vst [vmem:[%s2376_s29 + $0x48] sm:$0xff] %v215_v9 }
  0x1b   : > { %218 = vst [vmem:[%s2376_s29 + $0x50] sm:$0xff] %v217_v10  ;;  %220 = vst [vmem:[%s2376_s29 + $0x58] sm:$0xff] %v219_v11  ;;  %v221_v12 = vld [vmem:[%s2371_s28 + $0xc0] sm:$0xff]  ;;  %v223_v13 = vld [vmem:[%s2371_s28 + $0xc8] sm:$0xff] }
  0x1c   : > { %v225_v14 = vld [vmem:[%s2371_s28 + $0xe0] sm:$0xff]  ;;  %222 = vst [vmem:[%s2376_s29 + $0x60] sm:$0xff] %v221_v12  ;;  %224 = vst [vmem:[%s2376_s29 + $0x68] sm:$0xff] %v223_v13  ;;  %v227_v15 = vld [vmem:[%s2371_s28 + $0xe8] sm:$0xff] }
  0x1d   : > { %226 = vst [vmem:[%s2376_s29 + $0x70] sm:$0xff] %v225_v14  ;;  %v229_v16 = vld [vmem:[%s2371_s28 + $0x100] sm:$0xff]  ;;  %v231_v17 = vld [vmem:[%s2371_s28 + $0x108] sm:$0xff]  ;;  %228 = vst [vmem:[%s2376_s29 + $0x78] sm:$0xff] %v227_v15 }
  0x1e   : > { %230 = vst [vmem:[%s2376_s29 + $0x80] sm:$0xff] %v229_v16  ;;  %232 = vst [vmem:[%s2376_s29 + $0x88] sm:$0xff] %v231_v17  ;;  %v233_v18 = vld [vmem:[%s2371_s28 + $0x120] sm:$0xff]  ;;  %v235_v19 = vld [vmem:[%s2371_s28 + $0x128] sm:$0xff] }
  0x1f   : > { %v237_v20 = vld [vmem:[%s2371_s28 + $0x140] sm:$0xff]  ;;  %234 = vst [vmem:[%s2376_s29 + $0x90] sm:$0xff] %v233_v18  ;;  %236 = vst [vmem:[%s2376_s29 + $0x98] sm:$0xff] %v235_v19  ;;  %v239_v21 = vld [vmem:[%s2371_s28 + $0x148] sm:$0xff] }
  0x20   : > { %238 = vst [vmem:[%s2376_s29 + $0xa0] sm:$0xff] %v237_v20  ;;  %v241_v22 = vld [vmem:[%s2371_s28 + $0x160] sm:$0xff]  ;;  %v243_v23 = vld [vmem:[%s2371_s28 + $0x168] sm:$0xff]  ;;  %240 = vst [vmem:[%s2376_s29 + $0xa8] sm:$0xff] %v239_v21 }
  0x21   : > { %242 = vst [vmem:[%s2376_s29 + $0xb0] sm:$0xff] %v241_v22  ;;  %244 = vst [vmem:[%s2376_s29 + $0xb8] sm:$0xff] %v243_v23  ;;  %v245_v24 = vld [vmem:[%s2371_s28 + $0x180] sm:$0xff]  ;;  %v247_v25 = vld [vmem:[%s2371_s28 + $0x188] sm:$0xff] }
  0x22   : > { %v249_v26 = vld [vmem:[%s2371_s28 + $0x1a0] sm:$0xff]  ;;  %246 = vst [vmem:[%s2376_s29 + $0xc0] sm:$0xff] %v245_v24  ;;  %248 = vst [vmem:[%s2376_s29 + $0xc8] sm:$0xff] %v247_v25  ;;  %v251_v27 = vld [vmem:[%s2371_s28 + $0x1a8] sm:$0xff] }
  0x23   : > { %250 = vst [vmem:[%s2376_s29 + $0xd0] sm:$0xff] %v249_v26  ;;  %v253_v28 = vld [vmem:[%s2371_s28 + $0x1c0] sm:$0xff]  ;;  %v255_v29 = vld [vmem:[%s2371_s28 + $0x1c8] sm:$0xff]  ;;  %252 = vst [vmem:[%s2376_s29 + $0xd8] sm:$0xff] %v251_v27 }
  0x24   : > { %254 = vst [vmem:[%s2376_s29 + $0xe0] sm:$0xff] %v253_v28  ;;  %256 = vst [vmem:[%s2376_s29 + $0xe8] sm:$0xff] %v255_v29  ;;  %v257_v30 = vld [vmem:[%s2371_s28 + $0x1e0] sm:$0xff]  ;;  %v259_v31 = vld [vmem:[%s2371_s28 + $0x1e8] sm:$0xff] }
  0x25   : > { %v261_v32 = vld [vmem:[%s2371_s28 + $0x200] sm:$0xff]  ;;  %258 = vst [vmem:[%s2376_s29 + $0xf0] sm:$0xff] %v257_v30  ;;  %260 = vst [vmem:[%s2376_s29 + $0xf8] sm:$0xff] %v259_v31  ;;  %v263_v33 = vld [vmem:[%s2371_s28 + $0x208] sm:$0xff] }
  0x26   : > { %262 = vst [vmem:[%s2376_s29 + $0x100] sm:$0xff] %v261_v32  ;;  %v265_v34 = vld [vmem:[%s2371_s28 + $0x220] sm:$0xff]  ;;  %v267_v35 = vld [vmem:[%s2371_s28 + $0x228] sm:$0xff]  ;;  %264 = vst [vmem:[%s2376_s29 + $0x108] sm:$0xff] %v263_v33 }
  0x27   : > { %266 = vst [vmem:[%s2376_s29 + $0x110] sm:$0xff] %v265_v34  ;;  %268 = vst [vmem:[%s2376_s29 + $0x118] sm:$0xff] %v267_v35  ;;  %v269_v36 = vld [vmem:[%s2371_s28 + $0x240] sm:$0xff]  ;;  %v271_v37 = vld [vmem:[%s2371_s28 + $0x248] sm:$0xff] }
  0x28   : > { %v273_v38 = vld [vmem:[%s2371_s28 + $0x260] sm:$0xff]  ;;  %270 = vst [vmem:[%s2376_s29 + $0x120] sm:$0xff] %v269_v36  ;;  %272 = vst [vmem:[%s2376_s29 + $0x128] sm:$0xff] %v271_v37  ;;  %v275_v39 = vld [vmem:[%s2371_s28 + $0x268] sm:$0xff] }
  0x29   : > { %274 = vst [vmem:[%s2376_s29 + $0x130] sm:$0xff] %v273_v38  ;;  %v277_v40 = vld [vmem:[%s2371_s28 + $0x280] sm:$0xff]  ;;  %v279_v41 = vld [vmem:[%s2371_s28 + $0x288] sm:$0xff]  ;;  %276 = vst [vmem:[%s2376_s29 + $0x138] sm:$0xff] %v275_v39 }
  0x2a   : > { %278 = vst [vmem:[%s2376_s29 + $0x140] sm:$0xff] %v277_v40  ;;  %280 = vst [vmem:[%s2376_s29 + $0x148] sm:$0xff] %v279_v41  ;;  %v281_v42 = vld [vmem:[%s2371_s28 + $0x2a0] sm:$0xff]  ;;  %v283_v43 = vld [vmem:[%s2371_s28 + $0x2a8] sm:$0xff] }
  0x2b   : > { %v285_v44 = vld [vmem:[%s2371_s28 + $0x2c0] sm:$0xff]  ;;  %282 = vst [vmem:[%s2376_s29 + $0x150] sm:$0xff] %v281_v42  ;;  %284 = vst [vmem:[%s2376_s29 + $0x158] sm:$0xff] %v283_v43  ;;  %v287_v45 = vld [vmem:[%s2371_s28 + $0x2c8] sm:$0xff] }
  0x2c   : > { %286 = vst [vmem:[%s2376_s29 + $0x160] sm:$0xff] %v285_v44  ;;  %v289_v46 = vld [vmem:[%s2371_s28 + $0x2e0] sm:$0xff]  ;;  %v291_v47 = vld [vmem:[%s2371_s28 + $0x2e8] sm:$0xff]  ;;  %288 = vst [vmem:[%s2376_s29 + $0x168] sm:$0xff] %v287_v45 }
  0x2d   : > { %290 = vst [vmem:[%s2376_s29 + $0x170] sm:$0xff] %v289_v46  ;;  %292 = vst [vmem:[%s2376_s29 + $0x178] sm:$0xff] %v291_v47  ;;  %v293_v48 = vld [vmem:[%s2371_s28 + $0x300] sm:$0xff]  ;;  %v295_v49 = vld [vmem:[%s2371_s28 + $0x308] sm:$0xff] }
  0x2e   : > { %v297_v50 = vld [vmem:[%s2371_s28 + $0x320] sm:$0xff]  ;;  %294 = vst [vmem:[%s2376_s29 + $0x180] sm:$0xff] %v293_v48  ;;  %296 = vst [vmem:[%s2376_s29 + $0x188] sm:$0xff] %v295_v49  ;;  %v299_v51 = vld [vmem:[%s2371_s28 + $0x328] sm:$0xff] }
  0x2f   : > { %298 = vst [vmem:[%s2376_s29 + $0x190] sm:$0xff] %v297_v50  ;;  %v301_v52 = vld [vmem:[%s2371_s28 + $0x340] sm:$0xff]  ;;  %v303_v53 = vld [vmem:[%s2371_s28 + $0x348] sm:$0xff]  ;;  %300 = vst [vmem:[%s2376_s29 + $0x198] sm:$0xff] %v299_v51 }
  0x30   : > { %302 = vst [vmem:[%s2376_s29 + $0x1a0] sm:$0xff] %v301_v52  ;;  %304 = vst [vmem:[%s2376_s29 + $0x1a8] sm:$0xff] %v303_v53  ;;  %v305_v54 = vld [vmem:[%s2371_s28 + $0x360] sm:$0xff]  ;;  %v307_v55 = vld [vmem:[%s2371_s28 + $0x368] sm:$0xff] }
  0x31   : > { %v309_v56 = vld [vmem:[%s2371_s28 + $0x380] sm:$0xff]  ;;  %306 = vst [vmem:[%s2376_s29 + $0x1b0] sm:$0xff] %v305_v54  ;;  %308 = vst [vmem:[%s2376_s29 + $0x1b8] sm:$0xff] %v307_v55  ;;  %v311_v57 = vld [vmem:[%s2371_s28 + $0x388] sm:$0xff] }
  0x32   : > { %310 = vst [vmem:[%s2376_s29 + $0x1c0] sm:$0xff] %v309_v56  ;;  %v313_v58 = vld [vmem:[%s2371_s28 + $0x3a0] sm:$0xff]  ;;  %v315_v59 = vld [vmem:[%s2371_s28 + $0x3a8] sm:$0xff]  ;;  %312 = vst [vmem:[%s2376_s29 + $0x1c8] sm:$0xff] %v311_v57 }
  0x33   : > { %314 = vst [vmem:[%s2376_s29 + $0x1d0] sm:$0xff] %v313_v58  ;;  %316 = vst [vmem:[%s2376_s29 + $0x1d8] sm:$0xff] %v315_v59  ;;  %v317_v60 = vld [vmem:[%s2371_s28 + $0x3c0] sm:$0xff]  ;;  %v319_v61 = vld [vmem:[%s2371_s28 + $0x3c8] sm:$0xff] }
  0x34   : > { %v321_v62 = vld [vmem:[%s2371_s28 + $0x3e0] sm:$0xff]  ;;  %318 = vst [vmem:[%s2376_s29 + $0x1e0] sm:$0xff] %v317_v60  ;;  %320 = vst [vmem:[%s2376_s29 + $0x1e8] sm:$0xff] %v319_v61  ;;  %v323_v63 = vld [vmem:[%s2371_s28 + $0x3e8] sm:$0xff] }
  0x35   : > { %322 = vst [vmem:[%s2376_s29 + $0x1f0] sm:$0xff] %v321_v62  ;;  %324 = vst [vmem:[%s2376_s29 + $0x1f8] sm:$0xff] %v323_v63 }
  0x36 PF: > { %p1948_p8 = scmp.ge.s32.totalorder %s2301_s16, 1  ;;  %p337_p9 = scmp.lt.s32.totalorder %s2301_s16, 3 }
  0x38   : > { %p338_p10 = pnand %p1948_p8, %p337_p9 }
  0x39   : > { %s344_s30 = sand.u32 (!%p338_p10), 1, %s2285_s12   ;;  %v2241_v0 = vld [vmem:[%s2821_s0 + $0x4] ss:$8 sps:$4 sm:$0xff] (!%p338_p10)   ;;  %s1951_s28 = sshll.u32 (!%p338_p10), %s2293_s14, 2 }
  0x3a   : > { %341 = sbr.rel (%p338_p10) target bundleno = 409 (0x199), region = 51  ;;  %s1949_s4 = sshll.u32 (!%p338_p10), %s344_s30, 9  ;;  %1045 = vmatprep.mubr.bf16.mxu0 (!%p338_p10), %v2241_v0  ;;  %1158 = vmatprep.mubr.bf16.mxu1 (!%p338_p10), %v2241_v0 }
  0x3b   : > { %s2511_s7 = scalar_lea.vmem (!%p338_p10), [#allocation3], %s1949_s4  ;;  %p395_p11 = scmp.lt.s32.totalorder (!%p338_p10), %s1951_s28, 7 }
  0x3c   : > { %v2143_v1 = vld [vmem:[%s2511_s7 + $0x4] ss:$16 sps:$4 sm:$0xff] (!%p338_p10)   ;;  %v2145_v2 = vld [vmem:[%s2511_s7 + $0xc] ss:$16 sps:$4 sm:$0xff] (!%p338_p10)   ;;  %v2147_v3 = vld [vmem:[%s2511_s7] ss:$16 sps:$4 sm:$0xff] (!%p338_p10)  }
  0x3d   : > { %1013 = vmatprep.subr.bf16.mxu0 (!%p338_p10), %v2143_v1  ;;  %v2148_v4 = vld [vmem:[%s2511_s7 + $0x8] ss:$16 sps:$4 sm:$0xff] (!%p338_p10)   ;;  %1126 = vmatprep.subr.bf16.mxu1 (!%p338_p10), %v2145_v2  ;;  %v2149_v5 = vld [vmem:[%s2511_s7 + $0x24] ss:$16 sps:$4 sm:$0xff] (!%p338_p10)   ;;  %v2151_v6 = vld [vmem:[%s2511_s7 + $0x2c] ss:$16 sps:$4 sm:$0xff] (!%p338_p10)  }
  0x3e   : > { %1014 = vmatpush1.bf16.msra.mxu0 (!%p338_p10), %v2147_v3  ;;  %1127 = vmatpush1.bf16.msra.mxu1 (!%p338_p10), %v2148_v4  ;;  %v2153_v7 = vld [vmem:[%s2511_s7 + $0x20] ss:$16 sps:$4 sm:$0xff] (!%p338_p10)   ;;  %v2154_v8 = vld [vmem:[%s2511_s7 + $0x28] ss:$16 sps:$4 sm:$0xff] (!%p338_p10)   ;;  %v2155_v9 = vld [vmem:[%s2511_s7 + $0x44] ss:$16 sps:$4 sm:$0xff] (!%p338_p10)  }
  0x3f   : > { %1015 = vmatprep.subr.bf16.mxu0 (!%p338_p10), %v2149_v5  ;;  %1128 = vmatprep.subr.bf16.mxu1 (!%p338_p10), %v2151_v6  ;;  %v2157_v10 = vld [vmem:[%s2511_s7 + $0x4c] ss:$16 sps:$4 sm:$0xff] (!%p338_p10)   ;;  %v2159_v11 = vld [vmem:[%s2511_s7 + $0x40] ss:$16 sps:$4 sm:$0xff] (!%p338_p10)   ;;  %v2160_v12 = vld [vmem:[%s2511_s7 + $0x48] ss:$16 sps:$4 sm:$0xff] (!%p338_p10)  }
  0x40   : > { %v2161_v13 = vld [vmem:[%s2511_s7 + $0x64] ss:$16 sps:$4 sm:$0xff] (!%p338_p10)   ;;  %v2163_v14 = vld [vmem:[%s2511_s7 + $0x6c] ss:$16 sps:$4 sm:$0xff] (!%p338_p10)   ;;  %v2165_v15 = vld [vmem:[%s2511_s7 + $0x60] ss:$16 sps:$4 sm:$0xff] (!%p338_p10)  }
  0x41   : > { %v2166_v16 = vld [vmem:[%s2511_s7 + $0x68] ss:$16 sps:$4 sm:$0xff]   ;;  %v2167_v17 = vld [vmem:[%s2511_s7 + $0x84] ss:$16 sps:$4 sm:$0xff]   ;;  %v2169_v18 = vld [vmem:[%s2511_s7 + $0x8c] ss:$16 sps:$4 sm:$0xff]  }
  0x42   : > { %1016 = vmatpush1.bf16.msra.mxu0 %v2153_v7  ;;  %1129 = vmatpush1.bf16.msra.mxu1 %v2154_v8  ;;  %v2171_v19 = vld [vmem:[%s2511_s7 + $0x80] ss:$16 sps:$4 sm:$0xff]   ;;  %v2172_v20 = vld [vmem:[%s2511_s7 + $0x88] ss:$16 sps:$4 sm:$0xff]   ;;  %v2173_v21 = vld [vmem:[%s2511_s7 + $0xa4] ss:$16 sps:$4 sm:$0xff]  }
  0x43   : > { %1017 = vmatprep.subr.bf16.mxu0 %v2155_v9  ;;  %1130 = vmatprep.subr.bf16.mxu1 %v2157_v10  ;;  %v2175_v22 = vld [vmem:[%s2511_s7 + $0xac] ss:$16 sps:$4 sm:$0xff]   ;;  %v2177_v23 = vld [vmem:[%s2511_s7 + $0xa0] ss:$16 sps:$4 sm:$0xff]   ;;  %v2178_v24 = vld [vmem:[%s2511_s7 + $0xa8] ss:$16 sps:$4 sm:$0xff]  }
  0x44   : > { %v2179_v25 = vld [vmem:[%s2511_s7 + $0xc4] ss:$16 sps:$4 sm:$0xff]   ;;  %v2181_v26 = vld [vmem:[%s2511_s7 + $0xcc] ss:$16 sps:$4 sm:$0xff]   ;;  %v2183_v27 = vld [vmem:[%s2511_s7 + $0xc0] ss:$16 sps:$4 sm:$0xff]  }
  0x45   : > { %v2184_v28 = vld [vmem:[%s2511_s7 + $0xc8] ss:$16 sps:$4 sm:$0xff]   ;;  %v2185_v29 = vld [vmem:[%s2511_s7 + $0xe4] ss:$16 sps:$4 sm:$0xff]   ;;  %v2187_v30 = vld [vmem:[%s2511_s7 + $0xec] ss:$16 sps:$4 sm:$0xff]  }
  0x46   : > { %1018 = vmatpush1.bf16.msra.mxu0 %v2159_v11  ;;  %1131 = vmatpush1.bf16.msra.mxu1 %v2160_v12  ;;  %v2189_v31 = vld [vmem:[%s2511_s7 + $0xe0] ss:$16 sps:$4 sm:$0xff]   ;;  %v2190_v32 = vld [vmem:[%s2511_s7 + $0xe8] ss:$16 sps:$4 sm:$0xff]   ;;  %v2191_v33 = vld [vmem:[%s2511_s7 + $0x104] ss:$16 sps:$4 sm:$0xff]  }
  0x47   : > { %1019 = vmatprep.subr.bf16.mxu0 %v2161_v13  ;;  %1132 = vmatprep.subr.bf16.mxu1 %v2163_v14  ;;  %v2193_v34 = vld [vmem:[%s2511_s7 + $0x10c] ss:$16 sps:$4 sm:$0xff]   ;;  %v2195_v35 = vld [vmem:[%s2511_s7 + $0x100] ss:$16 sps:$4 sm:$0xff]   ;;  %v2196_v36 = vld [vmem:[%s2511_s7 + $0x108] ss:$16 sps:$4 sm:$0xff]  }
  0x48   : > { %v2197_v37 = vld [vmem:[%s2511_s7 + $0x124] ss:$16 sps:$4 sm:$0xff]   ;;  %v2199_v38 = vld [vmem:[%s2511_s7 + $0x12c] ss:$16 sps:$4 sm:$0xff]   ;;  %v2201_v39 = vld [vmem:[%s2511_s7 + $0x120] ss:$16 sps:$4 sm:$0xff]  }
  0x49   : > { %v2202_v40 = vld [vmem:[%s2511_s7 + $0x128] ss:$16 sps:$4 sm:$0xff]   ;;  %v2203_v41 = vld [vmem:[%s2511_s7 + $0x144] ss:$16 sps:$4 sm:$0xff]   ;;  %v2205_v42 = vld [vmem:[%s2511_s7 + $0x14c] ss:$16 sps:$4 sm:$0xff]  }
  0x4a   : > { %1020 = vmatpush1.bf16.msra.mxu0 %v2165_v15  ;;  %1133 = vmatpush1.bf16.msra.mxu1 %v2166_v16  ;;  %v2207_v43 = vld [vmem:[%s2511_s7 + $0x140] ss:$16 sps:$4 sm:$0xff]   ;;  %v2208_v44 = vld [vmem:[%s2511_s7 + $0x148] ss:$16 sps:$4 sm:$0xff]   ;;  %v2209_v45 = vld [vmem:[%s2511_s7 + $0x164] ss:$16 sps:$4 sm:$0xff]   ;;  %v1436_v16 = vlaneseq }
  0x4b   : > { %1021 = vmatprep.subr.bf16.mxu0 %v2167_v17  ;;  %1134 = vmatprep.subr.bf16.mxu1 %v2169_v18  ;;  %v2211_v46 = vld [vmem:[%s2511_s7 + $0x16c] ss:$16 sps:$4 sm:$0xff]   ;;  %v2213_v47 = vld [vmem:[%s2511_s7 + $0x160] ss:$16 sps:$4 sm:$0xff]   ;;  %v2214_v48 = vld [vmem:[%s2511_s7 + $0x168] ss:$16 sps:$4 sm:$0xff]  }
  0x4c   : > { %v2215_v49 = vld [vmem:[%s2511_s7 + $0x184] ss:$16 sps:$4 sm:$0xff]   ;;  %v2217_v50 = vld [vmem:[%s2511_s7 + $0x18c] ss:$16 sps:$4 sm:$0xff]   ;;  %v2219_v51 = vld [vmem:[%s2511_s7 + $0x180] ss:$16 sps:$4 sm:$0xff]  }
  0x4d   : > { %v2220_v52 = vld [vmem:[%s2511_s7 + $0x188] ss:$16 sps:$4 sm:$0xff]   ;;  %v2221_v53 = vld [vmem:[%s2511_s7 + $0x1a4] ss:$16 sps:$4 sm:$0xff]   ;;  %v2223_v54 = vld [vmem:[%s2511_s7 + $0x1ac] ss:$16 sps:$4 sm:$0xff]  }
  0x4e   : > { %1022 = vmatpush1.bf16.msra.mxu0 %v2171_v19  ;;  %1135 = vmatpush1.bf16.msra.mxu1 %v2172_v20  ;;  %v2225_v55 = vld [vmem:[%s2511_s7 + $0x1a0] ss:$16 sps:$4 sm:$0xff]   ;;  %v2226_v56 = vld [vmem:[%s2511_s7 + $0x1a8] ss:$16 sps:$4 sm:$0xff]   ;;  %v2227_v57 = vld [vmem:[%s2511_s7 + $0x1c4] ss:$16 sps:$4 sm:$0xff]  }
  0x4f   : > { %1023 = vmatprep.subr.bf16.mxu0 %v2173_v21  ;;  %1136 = vmatprep.subr.bf16.mxu1 %v2175_v22  ;;  %v2229_v58 = vld [vmem:[%s2511_s7 + $0x1cc] ss:$16 sps:$4 sm:$0xff]   ;;  %v2231_v59 = vld [vmem:[%s2511_s7 + $0x1c0] ss:$16 sps:$4 sm:$0xff]   ;;  %v2232_v60 = vld [vmem:[%s2511_s7 + $0x1c8] ss:$16 sps:$4 sm:$0xff]  }
  0x50   : > { %v2233_v61 = vld [vmem:[%s2511_s7 + $0x1e4] ss:$16 sps:$4 sm:$0xff]   ;;  %v2235_v62 = vld [vmem:[%s2511_s7 + $0x1ec] ss:$16 sps:$4 sm:$0xff]   ;;  %v2237_v63 = vld [vmem:[%s2511_s7 + $0x1e0] ss:$16 sps:$4 sm:$0xff]  }
  0x51   : > { %v2238_v0 = vld [vmem:[%s2511_s7 + $0x1e8] ss:$16 sps:$4 sm:$0xff]   ;;  %v2242_v2 = vld [vmem:[%s2821_s0 + $0x14] ss:$8 sps:$4 sm:$0xff]   ;;  %v2245_v4 = vld [vmem:[%s2821_s0 + $0x24] ss:$8 sps:$4 sm:$0xff]  }
  0x52   : > { %1024 = vmatpush1.bf16.msra.mxu0 %v2177_v23  ;;  %1137 = vmatpush1.bf16.msra.mxu1 %v2178_v24  ;;  %v2239_v1 = vld [vmem:[%s2821_s0] ss:$8 sps:$4 sm:$0xff]   ;;  %v2244_v3 = vld [vmem:[%s2821_s0 + $0x10] ss:$8 sps:$4 sm:$0xff]   ;;  %v2248_v6 = vld [vmem:[%s2821_s0 + $0x34] ss:$8 sps:$4 sm:$0xff]  }
  0x53   : > { %1025 = vmatprep.subr.bf16.mxu0 %v2179_v25  ;;  %1138 = vmatprep.subr.bf16.mxu1 %v2181_v26  ;;  %v2247_v5 = vld [vmem:[%s2821_s0 + $0x20] ss:$8 sps:$4 sm:$0xff]   ;;  %v2250_v7 = vld [vmem:[%s2821_s0 + $0x30] ss:$8 sps:$4 sm:$0xff]   ;;  %v2251_v8 = vld [vmem:[%s2821_s0 + $0x44] ss:$8 sps:$4 sm:$0xff]  }
  0x54   : > { %v2253_v9 = vld [vmem:[%s2821_s0 + $0x40] ss:$8 sps:$4 sm:$0xff]   ;;  %v2254_v10 = vld [vmem:[%s2821_s0 + $0x54] ss:$8 sps:$4 sm:$0xff]   ;;  %v2256_v11 = vld [vmem:[%s2821_s0 + $0x50] ss:$8 sps:$4 sm:$0xff]  }
  0x55   : > { %v2257_v12 = vld [vmem:[%s2821_s0 + $0x64] ss:$8 sps:$4 sm:$0xff]   ;;  %v2259_v13 = vld [vmem:[%s2821_s0 + $0x60] ss:$8 sps:$4 sm:$0xff]   ;;  %v2260_v14 = vld [vmem:[%s2821_s0 + $0x74] ss:$8 sps:$4 sm:$0xff]  }
  0x56   : > { %1026 = vmatpush1.bf16.msra.mxu0 %v2183_v27  ;;  %1139 = vmatpush1.bf16.msra.mxu1 %v2184_v28  ;;  %v2262_v15 = vld [vmem:[%s2821_s0 + $0x70] ss:$8 sps:$4 sm:$0xff]   ;;  %s2833_s28 = smov (!%p395_p11, %s1951_s28), 7  ;;  %v1437_v17 = vshrl.u32 %v1436_v16, 7  ;;  %s1950_s6 = sshll.u32 %s344_s30, 8 }
  0x57   : > { %1027 = vmatprep.subr.bf16.mxu0 %v2185_v29  ;;  %1140 = vmatprep.subr.bf16.mxu1 %v2187_v30  ;;  %s397_s5 = scalar_lea.vmem %s2823_s2, %s2833_s28  ;;  %s2644_s12 = scalar_lea.vmem [#allocation4], %s1950_s6 }
  0x58   : > { %v1438_v18 = vsub.s32 0, %v1437_v17  ;;  %v1446_v19 = vsub.s32 2, %v1437_v17  ;;  %v1434_v20 = vld [vmem:[%s397_s5] sm:$0xf]  ;;  %v1442_v21 = vsub.s32 1, %v1437_v17  ;;  %v1450_v22 = vsub.s32 3, %v1437_v17 }
  0x59   : > { %s2102_s30 = sshll.u32 (%p2358_p6), %s2293_s14, 4 }
  0x5a   : > { %1028 = vmatpush1.bf16.msra.mxu0 %v2189_v31  ;;  %1141 = vmatpush1.bf16.msra.mxu1 %v2190_v32  ;;  %v2626_v23 = vrot.slane %v1434_v20, %v1438_v18  ;;  %v2628_v24 = vrot.slane %v1434_v20, %v1446_v19  ;;  %v2630_v25 = vrot.slane %v1434_v20, %v1442_v21  ;;  %s2743_s9 = scalar_lea.vmem (%p2358_p6), %s2824_s3, %s2102_s30 }
  0x5b   : > { %1029 = vmatprep.subr.bf16.mxu0 %v2191_v33  ;;  %1142 = vmatprep.subr.bf16.mxu1 %v2193_v34  ;;  %v2632_v26 = vrot.slane %v1434_v20, %v1450_v22 }
  0x5e   : > { %1030 = vmatpush1.bf16.msra.mxu0 %v2195_v35  ;;  %1143 = vmatpush1.bf16.msra.mxu1 %v2196_v36 }
  0x5f   : > { %1031 = vmatprep.subr.bf16.mxu0 %v2197_v37  ;;  %1144 = vmatprep.subr.bf16.mxu1 %v2199_v38 }
  0x62   : > { %1032 = vmatpush1.bf16.msra.mxu0 %v2201_v39  ;;  %1145 = vmatpush1.bf16.msra.mxu1 %v2202_v40 }
  0x63   : > { %1033 = vmatprep.subr.bf16.mxu0 %v2203_v41  ;;  %1146 = vmatprep.subr.bf16.mxu1 %v2205_v42 }
  0x66   : > { %1034 = vmatpush1.bf16.msra.mxu0 %v2207_v43  ;;  %1147 = vmatpush1.bf16.msra.mxu1 %v2208_v44 }
  0x67   : > { %1035 = vmatprep.subr.bf16.mxu0 %v2209_v45  ;;  %1148 = vmatprep.subr.bf16.mxu1 %v2211_v46 }
  0x6a   : > { %1036 = vmatpush1.bf16.msra.mxu0 %v2213_v47  ;;  %1149 = vmatpush1.bf16.msra.mxu1 %v2214_v48 }
  0x6b   : > { %1037 = vmatprep.subr.bf16.mxu0 %v2215_v49  ;;  %1150 = vmatprep.subr.bf16.mxu1 %v2217_v50 }
  0x6e   : > { %1038 = vmatpush1.bf16.msra.mxu0 %v2219_v51  ;;  %1151 = vmatpush1.bf16.msra.mxu1 %v2220_v52 }
  0x6f   : > { %1039 = vmatprep.subr.bf16.mxu0 %v2221_v53  ;;  %1152 = vmatprep.subr.bf16.mxu1 %v2223_v54 }
  0x72   : > { %1040 = vmatpush1.bf16.msra.mxu0 %v2225_v55  ;;  %1153 = vmatpush1.bf16.msra.mxu1 %v2226_v56 }
  0x73   : > { %1041 = vmatprep.subr.bf16.mxu0 %v2227_v57  ;;  %1154 = vmatprep.subr.bf16.mxu1 %v2229_v58 }
  0x76   : > { %1042 = vmatpush1.bf16.msra.mxu0 %v2231_v59  ;;  %1155 = vmatpush1.bf16.msra.mxu1 %v2232_v60 }
  0x77   : > { %1043 = vmatprep.subr.bf16.mxu0 %v2233_v61  ;;  %1156 = vmatprep.subr.bf16.mxu1 %v2235_v62 }
  0x7a   : > { %1044 = vmatpush1.bf16.msra.mxu0 %v2237_v63  ;;  %1157 = vmatpush1.bf16.msra.mxu1 %v2238_v0 }
  0x7d   : > { %1046 = vmatmul.mubr.bf16.vlgmr.msra.gmra.mrb[0].mxu0 %v2239_v1  ;;  %1159 = vmatmul.mubr.bf16.vlgmr.msra.gmra.mrb[0].mxu1 %v2239_v1 }
  0x7e   : > { %1055 = vmatprep.mubr.bf16.mxu0 %v2242_v2  ;;  %1168 = vmatprep.mubr.bf16.mxu1 %v2242_v2 }
  0x85   : > { %1056 = vmatmul.mubr.bf16.gmra.mrb[4].mxu0 %v2244_v3  ;;  %1169 = vmatmul.mubr.bf16.gmra.mrb[4].mxu1 %v2244_v3 }
  0x86   : > { %1065 = vmatprep.mubr.bf16.mxu0 %v2245_v4  ;;  %1178 = vmatprep.mubr.bf16.mxu1 %v2245_v4 }
  0x8d   : > { %1066 = vmatmul.mubr.bf16.gmra.mrb[8].mxu0 %v2247_v5  ;;  %1179 = vmatmul.mubr.bf16.gmra.mrb[8].mxu1 %v2247_v5 }
  0x8e   : > { %1075 = vmatprep.mubr.bf16.mxu0 %v2248_v6  ;;  %1188 = vmatprep.mubr.bf16.mxu1 %v2248_v6 }
  0x95   : > { %1076 = vmatmul.mubr.bf16.gmra.mrb[12].mxu0 %v2250_v7  ;;  %1189 = vmatmul.mubr.bf16.gmra.mrb[12].mxu1 %v2250_v7 }
  0x96   : > { %1085 = vmatprep.mubr.bf16.mxu0 %v2251_v8  ;;  %1198 = vmatprep.mubr.bf16.mxu1 %v2251_v8 }
  0x9d   : > { %1086 = vmatmul.mubr.bf16.gmra.mrb[16].mxu0 %v2253_v9  ;;  %1199 = vmatmul.mubr.bf16.gmra.mrb[16].mxu1 %v2253_v9 }
  0x9e   : > { %1095 = vmatprep.mubr.bf16.mxu0 %v2254_v10  ;;  %1208 = vmatprep.mubr.bf16.mxu1 %v2254_v10 }
  0xa5   : > { %1096 = vmatmul.mubr.bf16.gmra.mrb[20].mxu0 %v2256_v11  ;;  %1209 = vmatmul.mubr.bf16.gmra.mrb[20].mxu1 %v2256_v11 }
  0xa6   : > { %1105 = vmatprep.mubr.bf16.mxu0 %v2257_v12  ;;  %1218 = vmatprep.mubr.bf16.mxu1 %v2257_v12 }
  0xad   : > { %1106 = vmatmul.mubr.bf16.gmra.mrb[24].mxu0 %v2259_v13  ;;  %1219 = vmatmul.mubr.bf16.gmra.mrb[24].mxu1 %v2259_v13 }
  0xae   : > { %1115 = vmatprep.mubr.bf16.mxu0 %v2260_v14  ;;  %1228 = vmatprep.mubr.bf16.mxu1 %v2260_v14 }
  0xb5   : > { %1116 = vmatmul.mubr.bf16.gmra.mrb[28].mxu0 %v2262_v15  ;;  %1229 = vmatmul.mubr.bf16.gmra.mrb[28].mxu1 %v2262_v15 }
 0x150   : > { %v1047_v27 = vpop.f32.mrb[0].mxu0  ;;  %v1160_v28 = vpop.f32.mrb[0].mxu1 }
 0x151   : > { %v1456_v29 = vadd.f32 %v2626_v23, %v1047_v27  ;;  %v1458_v30 = vadd.f32 %v2628_v24, %v1160_v28  ;;  %v1049_v31 = vpop.f32.mrb[1].mxu0  ;;  %v1162_v32 = vpop.f32.mrb[1].mxu1 }
 0x152   : > { %v1457_v33 = vadd.f32 %v2630_v25, %v1049_v31  ;;  %v1459_v34 = vadd.f32 %v2632_v26, %v1162_v32  ;;  %v1051_v35 = vpop.f32.mrb[2].mxu0  ;;  %v1164_v36 = vpop.f32.mrb[2].mxu1 }
 0x153   : > { %v1460_v37 = vadd.f32 %v2626_v23, %v1051_v35  ;;  %v1462_v38 = vadd.f32 %v2628_v24, %v1164_v36  ;;  %v1053_v39 = vpop.f32.mrb[3].mxu0  ;;  %v1166_v40 = vpop.f32.mrb[3].mxu1 }
 0x154   : > { %v2070_v41 = vpack.c.bf16 %v1457_v33, %v1456_v29  ;;  %v2071_v42 = vpack.c.bf16 %v1459_v34, %v1458_v30  ;;  %v1461_v43 = vadd.f32 %v2630_v25, %v1053_v39  ;;  %v1463_v44 = vadd.f32 %v2632_v26, %v1166_v40 }
 0x156   : > { %1712 = vst [vmem:[%s2644_s12] sm:$0xff] %v2070_v41  ;;  %1713 = vst [vmem:[%s2644_s12 + $0x8] sm:$0xff] %v2071_v42  ;;  %v2072_v45 = vpack.c.bf16 %v1461_v43, %v1460_v37  ;;  %v2073_v46 = vpack.c.bf16 %v1463_v44, %v1462_v38 }
 0x158   : > { %1714 = vst [vmem:[%s2644_s12 + $0x10] sm:$0xff] %v2072_v45  ;;  %1715 = vst [vmem:[%s2644_s12 + $0x18] sm:$0xff] %v2073_v46  ;;  %v1057_v47 = vpop.f32.mrb[4].mxu0  ;;  %v1170_v48 = vpop.f32.mrb[4].mxu1 }
 0x159   : > { %v1464_v49 = vadd.f32 %v2626_v23, %v1057_v47  ;;  %v1466_v50 = vadd.f32 %v2628_v24, %v1170_v48  ;;  %v1059_v51 = vpop.f32.mrb[5].mxu0  ;;  %v1172_v52 = vpop.f32.mrb[5].mxu1 }
 0x15a   : > { %v1465_v53 = vadd.f32 %v2630_v25, %v1059_v51  ;;  %v1467_v54 = vadd.f32 %v2632_v26, %v1172_v52  ;;  %v1061_v55 = vpop.f32.mrb[6].mxu0  ;;  %v1174_v56 = vpop.f32.mrb[6].mxu1 }
 0x15b   : > { %v1468_v57 = vadd.f32 %v2626_v23, %v1061_v55  ;;  %v1470_v58 = vadd.f32 %v2628_v24, %v1174_v56  ;;  %v1063_v59 = vpop.f32.mrb[7].mxu0  ;;  %v1176_v60 = vpop.f32.mrb[7].mxu1 }
 0x15c   : > { %v2074_v61 = vpack.c.bf16 %v1465_v53, %v1464_v49  ;;  %v2075_v62 = vpack.c.bf16 %v1467_v54, %v1466_v50  ;;  %v1469_v63 = vadd.f32 %v2630_v25, %v1063_v59  ;;  %v1471_v0 = vadd.f32 %v2632_v26, %v1176_v60 }
 0x15e   : > { %1716 = vst [vmem:[%s2644_s12 + $0x20] sm:$0xff] %v2074_v61  ;;  %1717 = vst [vmem:[%s2644_s12 + $0x28] sm:$0xff] %v2075_v62  ;;  %v2076_v1 = vpack.c.bf16 %v1469_v63, %v1468_v57  ;;  %v2077_v2 = vpack.c.bf16 %v1471_v0, %v1470_v58 }
 0x160   : > { %1718 = vst [vmem:[%s2644_s12 + $0x30] sm:$0xff] %v2076_v1  ;;  %1719 = vst [vmem:[%s2644_s12 + $0x38] sm:$0xff] %v2077_v2  ;;  %v1067_v3 = vpop.f32.mrb[8].mxu0  ;;  %v1180_v4 = vpop.f32.mrb[8].mxu1 }
 0x161   : > { %v1472_v5 = vadd.f32 %v2626_v23, %v1067_v3  ;;  %v1474_v6 = vadd.f32 %v2628_v24, %v1180_v4  ;;  %v1069_v7 = vpop.f32.mrb[9].mxu0  ;;  %v1182_v8 = vpop.f32.mrb[9].mxu1 }
 0x162   : > { %v1473_v9 = vadd.f32 %v2630_v25, %v1069_v7  ;;  %v1475_v10 = vadd.f32 %v2632_v26, %v1182_v8  ;;  %v1071_v11 = vpop.f32.mrb[10].mxu0  ;;  %v1184_v12 = vpop.f32.mrb[10].mxu1 }
 0x163   : > { %v1476_v13 = vadd.f32 %v2626_v23, %v1071_v11  ;;  %v1478_v14 = vadd.f32 %v2628_v24, %v1184_v12  ;;  %v1073_v15 = vpop.f32.mrb[11].mxu0  ;;  %v1186_v16 = vpop.f32.mrb[11].mxu1 }
 0x164   : > { %v2078_v17 = vpack.c.bf16 %v1473_v9, %v1472_v5  ;;  %v2079_v18 = vpack.c.bf16 %v1475_v10, %v1474_v6  ;;  %v1477_v19 = vadd.f32 %v2630_v25, %v1073_v15  ;;  %v1479_v20 = vadd.f32 %v2632_v26, %v1186_v16 }
 0x166   : > { %1720 = vst [vmem:[%s2644_s12 + $0x40] sm:$0xff] %v2078_v17  ;;  %1721 = vst [vmem:[%s2644_s12 + $0x48] sm:$0xff] %v2079_v18  ;;  %v2080_v21 = vpack.c.bf16 %v1477_v19, %v1476_v13  ;;  %v2081_v22 = vpack.c.bf16 %v1479_v20, %v1478_v14 }
 0x168   : > { %1722 = vst [vmem:[%s2644_s12 + $0x50] sm:$0xff] %v2080_v21  ;;  %1723 = vst [vmem:[%s2644_s12 + $0x58] sm:$0xff] %v2081_v22  ;;  %v1077_v27 = vpop.f32.mrb[12].mxu0  ;;  %v1190_v28 = vpop.f32.mrb[12].mxu1 }
 0x169   : > { %v1480_v29 = vadd.f32 %v2626_v23, %v1077_v27  ;;  %v1482_v30 = vadd.f32 %v2628_v24, %v1190_v28  ;;  %v1079_v31 = vpop.f32.mrb[13].mxu0  ;;  %v1192_v32 = vpop.f32.mrb[13].mxu1 }
 0x16a   : > { %v1481_v33 = vadd.f32 %v2630_v25, %v1079_v31  ;;  %v1483_v34 = vadd.f32 %v2632_v26, %v1192_v32  ;;  %v1081_v35 = vpop.f32.mrb[14].mxu0  ;;  %v1194_v36 = vpop.f32.mrb[14].mxu1 }
 0x16b   : > { %v1484_v37 = vadd.f32 %v2626_v23, %v1081_v35  ;;  %v1486_v38 = vadd.f32 %v2628_v24, %v1194_v36  ;;  %v1083_v39 = vpop.f32.mrb[15].mxu0  ;;  %v1196_v40 = vpop.f32.mrb[15].mxu1 }
 0x16c   : > { %v2082_v41 = vpack.c.bf16 %v1481_v33, %v1480_v29  ;;  %v2083_v42 = vpack.c.bf16 %v1483_v34, %v1482_v30  ;;  %v1485_v43 = vadd.f32 %v2630_v25, %v1083_v39  ;;  %v1487_v44 = vadd.f32 %v2632_v26, %v1196_v40 }
 0x16e   : > { %1724 = vst [vmem:[%s2644_s12 + $0x60] sm:$0xff] %v2082_v41  ;;  %1725 = vst [vmem:[%s2644_s12 + $0x68] sm:$0xff] %v2083_v42  ;;  %v2084_v45 = vpack.c.bf16 %v1485_v43, %v1484_v37  ;;  %v2085_v46 = vpack.c.bf16 %v1487_v44, %v1486_v38 }
 0x170   : > { %1726 = vst [vmem:[%s2644_s12 + $0x70] sm:$0xff] %v2084_v45  ;;  %1727 = vst [vmem:[%s2644_s12 + $0x78] sm:$0xff] %v2085_v46  ;;  %v1087_v47 = vpop.f32.mrb[16].mxu0  ;;  %v1200_v48 = vpop.f32.mrb[16].mxu1 }
 0x171   : > { %v1488_v49 = vadd.f32 %v2626_v23, %v1087_v47  ;;  %v1490_v50 = vadd.f32 %v2628_v24, %v1200_v48  ;;  %v1089_v51 = vpop.f32.mrb[17].mxu0  ;;  %v1202_v52 = vpop.f32.mrb[17].mxu1 }
 0x172   : > { %v1489_v53 = vadd.f32 %v2630_v25, %v1089_v51  ;;  %v1491_v54 = vadd.f32 %v2632_v26, %v1202_v52  ;;  %v1091_v55 = vpop.f32.mrb[18].mxu0  ;;  %v1204_v56 = vpop.f32.mrb[18].mxu1 }
 0x173   : > { %v1492_v57 = vadd.f32 %v2626_v23, %v1091_v55  ;;  %v1494_v58 = vadd.f32 %v2628_v24, %v1204_v56  ;;  %v1093_v59 = vpop.f32.mrb[19].mxu0  ;;  %v1206_v60 = vpop.f32.mrb[19].mxu1 }
 0x174   : > { %v2086_v61 = vpack.c.bf16 %v1489_v53, %v1488_v49  ;;  %v2087_v62 = vpack.c.bf16 %v1491_v54, %v1490_v50  ;;  %v1493_v63 = vadd.f32 %v2630_v25, %v1093_v59  ;;  %v1495_v0 = vadd.f32 %v2632_v26, %v1206_v60 }
 0x176   : > { %1728 = vst [vmem:[%s2644_s12 + $0x80] sm:$0xff] %v2086_v61  ;;  %1729 = vst [vmem:[%s2644_s12 + $0x88] sm:$0xff] %v2087_v62  ;;  %v2088_v1 = vpack.c.bf16 %v1493_v63, %v1492_v57  ;;  %v2089_v2 = vpack.c.bf16 %v1495_v0, %v1494_v58 }
 0x178   : > { %1730 = vst [vmem:[%s2644_s12 + $0x90] sm:$0xff] %v2088_v1  ;;  %1731 = vst [vmem:[%s2644_s12 + $0x98] sm:$0xff] %v2089_v2  ;;  %v1097_v3 = vpop.f32.mrb[20].mxu0  ;;  %v1210_v4 = vpop.f32.mrb[20].mxu1 }
 0x179   : > { %v1496_v5 = vadd.f32 %v2626_v23, %v1097_v3  ;;  %v1498_v6 = vadd.f32 %v2628_v24, %v1210_v4  ;;  %v1099_v7 = vpop.f32.mrb[21].mxu0  ;;  %v1212_v8 = vpop.f32.mrb[21].mxu1  ;;  %v1777_v3 = vld [vmem:[%s2644_s12 + $0x20] sm:$0xff] (%p2358_p6)  ;;  %v1779_v4 = vld [vmem:[%s2644_s12 + $0x28] sm:$0xff] (%p2358_p6) }
 0x17a   : > { %v1497_v9 = vadd.f32 %v2630_v25, %v1099_v7  ;;  %v1499_v10 = vadd.f32 %v2632_v26, %v1212_v8  ;;  %v1101_v11 = vpop.f32.mrb[22].mxu0  ;;  %v1214_v12 = vpop.f32.mrb[22].mxu1  ;;  %1778 = vst [vmem:[%s2743_s9 + $0x40] sm:$0xff] (%p2358_p6), %v1777_v3  ;;  %1780 = vst [vmem:[%s2743_s9 + $0x48] sm:$0xff] (%p2358_p6), %v1779_v4  ;;  %v1785_v7 = vld [vmem:[%s2644_s12 + $0x40] sm:$0xff] (%p2358_p6)  ;;  %v1787_v8 = vld [vmem:[%s2644_s12 + $0x48] sm:$0xff] (%p2358_p6) }
 0x17b   : > { %v1500_v13 = vadd.f32 %v2626_v23, %v1101_v11  ;;  %v1502_v14 = vadd.f32 %v2628_v24, %v1214_v12  ;;  %v1103_v15 = vpop.f32.mrb[23].mxu0  ;;  %v1216_v16 = vpop.f32.mrb[23].mxu1  ;;  %1786 = vst [vmem:[%s2743_s9 + $0x80] sm:$0xff] (%p2358_p6), %v1785_v7  ;;  %1788 = vst [vmem:[%s2743_s9 + $0x88] sm:$0xff] (%p2358_p6), %v1787_v8  ;;  %v1793_v11 = vld [vmem:[%s2644_s12 + $0x60] sm:$0xff] (%p2358_p6)  ;;  %v1795_v12 = vld [vmem:[%s2644_s12 + $0x68] sm:$0xff] (%p2358_p6) }
 0x17c   : > { %v2090_v17 = vpack.c.bf16 %v1497_v9, %v1496_v5  ;;  %v2091_v18 = vpack.c.bf16 %v1499_v10, %v1498_v6  ;;  %v1501_v19 = vadd.f32 %v2630_v25, %v1103_v15  ;;  %v1503_v20 = vadd.f32 %v2632_v26, %v1216_v16  ;;  %v1781_v5 = vld [vmem:[%s2644_s12 + $0x30] sm:$0xff] (%p2358_p6)  ;;  %v1783_v6 = vld [vmem:[%s2644_s12 + $0x38] sm:$0xff] (%p2358_p6)  ;;  %1794 = vst [vmem:[%s2743_s9 + $0xc0] sm:$0xff] (%p2358_p6), %v1793_v11 }
 0x17d   : > { %1782 = vst [vmem:[%s2743_s9 + $0x60] sm:$0xff] (%p2358_p6), %v1781_v5  ;;  %1784 = vst [vmem:[%s2743_s9 + $0x68] sm:$0xff] (%p2358_p6), %v1783_v6  ;;  %v1789_v9 = vld [vmem:[%s2644_s12 + $0x50] sm:$0xff] (%p2358_p6)  ;;  %v1791_v10 = vld [vmem:[%s2644_s12 + $0x58] sm:$0xff] (%p2358_p6) }
 0x17e   : > { %1732 = vst [vmem:[%s2644_s12 + $0xa0] sm:$0xff] %v2090_v17  ;;  %1733 = vst [vmem:[%s2644_s12 + $0xa8] sm:$0xff] %v2091_v18  ;;  %v2092_v21 = vpack.c.bf16 %v1501_v19, %v1500_v13  ;;  %v2093_v22 = vpack.c.bf16 %v1503_v20, %v1502_v14  ;;  %v1797_v13 = vld [vmem:[%s2644_s12 + $0x70] sm:$0xff] (%p2358_p6)  ;;  %v1799_v14 = vld [vmem:[%s2644_s12 + $0x78] sm:$0xff] (%p2358_p6) }
 0x17f   : > { %1790 = vst [vmem:[%s2743_s9 + $0xa0] sm:$0xff] (%p2358_p6), %v1789_v9  ;;  %1792 = vst [vmem:[%s2743_s9 + $0xa8] sm:$0xff] (%p2358_p6), %v1791_v10  ;;  %v1801_v15 = vld [vmem:[%s2644_s12 + $0x80] sm:$0xff] (%p2358_p6)  ;;  %v1803_v16 = vld [vmem:[%s2644_s12 + $0x88] sm:$0xff] (%p2358_p6) }
 0x180   : > { %1734 = vst [vmem:[%s2644_s12 + $0xb0] sm:$0xff] %v2092_v21  ;;  %1735 = vst [vmem:[%s2644_s12 + $0xb8] sm:$0xff] %v2093_v22  ;;  %v1107_v27 = vpop.f32.mrb[24].mxu0  ;;  %v1220_v28 = vpop.f32.mrb[24].mxu1  ;;  %v1805_v17 = vld [vmem:[%s2644_s12 + $0x90] sm:$0xff] (%p2358_p6)  ;;  %v1807_v18 = vld [vmem:[%s2644_s12 + $0x98] sm:$0xff] (%p2358_p6) }
 0x181   : > { %v1504_v29 = vadd.f32 %v2626_v23, %v1107_v27  ;;  %v1506_v30 = vadd.f32 %v2628_v24, %v1220_v28  ;;  %v1109_v31 = vpop.f32.mrb[25].mxu0  ;;  %v1222_v32 = vpop.f32.mrb[25].mxu1  ;;  %1796 = vst [vmem:[%s2743_s9 + $0xc8] sm:$0xff] (%p2358_p6), %v1795_v12  ;;  %1798 = vst [vmem:[%s2743_s9 + $0xe0] sm:$0xff] (%p2358_p6), %v1797_v13 }
 0x182   : > { %v1505_v33 = vadd.f32 %v2630_v25, %v1109_v31  ;;  %v1507_v34 = vadd.f32 %v2632_v26, %v1222_v32  ;;  %v1111_v35 = vpop.f32.mrb[26].mxu0  ;;  %v1224_v36 = vpop.f32.mrb[26].mxu1  ;;  %1800 = vst [vmem:[%s2743_s9 + $0xe8] sm:$0xff] (%p2358_p6), %v1799_v14  ;;  %1802 = vst [vmem:[%s2743_s9 + $0x100] sm:$0xff] (%p2358_p6), %v1801_v15 }
 0x183   : > { %v1508_v37 = vadd.f32 %v2626_v23, %v1111_v35  ;;  %v1510_v38 = vadd.f32 %v2628_v24, %v1224_v36  ;;  %v1113_v39 = vpop.f32.mrb[27].mxu0  ;;  %v1226_v40 = vpop.f32.mrb[27].mxu1  ;;  %1804 = vst [vmem:[%s2743_s9 + $0x108] sm:$0xff] (%p2358_p6), %v1803_v16  ;;  %1806 = vst [vmem:[%s2743_s9 + $0x120] sm:$0xff] (%p2358_p6), %v1805_v17 }
 0x184   : > { %v2094_v41 = vpack.c.bf16 %v1505_v33, %v1504_v29  ;;  %v2095_v42 = vpack.c.bf16 %v1507_v34, %v1506_v30  ;;  %v1509_v43 = vadd.f32 %v2630_v25, %v1113_v39  ;;  %v1511_v44 = vadd.f32 %v2632_v26, %v1226_v40  ;;  %1808 = vst [vmem:[%s2743_s9 + $0x128] sm:$0xff] (%p2358_p6), %v1807_v18 }
 0x185   : > { %v1809_v19 = vld [vmem:[%s2644_s12 + $0xa0] sm:$0xff] (%p2358_p6)  ;;  %v1811_v20 = vld [vmem:[%s2644_s12 + $0xa8] sm:$0xff] (%p2358_p6) }
 0x186   : > { %1736 = vst [vmem:[%s2644_s12 + $0xc0] sm:$0xff] %v2094_v41  ;;  %1737 = vst [vmem:[%s2644_s12 + $0xc8] sm:$0xff] %v2095_v42  ;;  %v2096_v45 = vpack.c.bf16 %v1509_v43, %v1508_v37  ;;  %v2097_v46 = vpack.c.bf16 %v1511_v44, %v1510_v38 }
 0x187   : > { %1810 = vst [vmem:[%s2743_s9 + $0x140] sm:$0xff] (%p2358_p6), %v1809_v19  ;;  %v1813_v21 = vld [vmem:[%s2644_s12 + $0xb0] sm:$0xff] (%p2358_p6)  ;;  %v1815_v22 = vld [vmem:[%s2644_s12 + $0xb8] sm:$0xff] (%p2358_p6)  ;;  %1812 = vst [vmem:[%s2743_s9 + $0x148] sm:$0xff] (%p2358_p6), %v1811_v20 }
 0x188   : > { %1738 = vst [vmem:[%s2644_s12 + $0xd0] sm:$0xff] %v2096_v45  ;;  %1739 = vst [vmem:[%s2644_s12 + $0xd8] sm:$0xff] %v2097_v46  ;;  %v1117_v47 = vpop.f32.mrb[28].mxu0  ;;  %v1230_v48 = vpop.f32.mrb[28].mxu1 }
 0x189   : > { %v1512_v49 = vadd.f32 %v2626_v23, %v1117_v47  ;;  %v1514_v50 = vadd.f32 %v2628_v24, %v1230_v48  ;;  %v1119_v51 = vpop.f32.mrb[29].mxu0  ;;  %v1232_v52 = vpop.f32.mrb[29].mxu1  ;;  %1814 = vst [vmem:[%s2743_s9 + $0x160] sm:$0xff] (%p2358_p6), %v1813_v21  ;;  %1816 = vst [vmem:[%s2743_s9 + $0x168] sm:$0xff] (%p2358_p6), %v1815_v22 }
 0x18a   : > { %v1513_v53 = vadd.f32 %v2630_v25, %v1119_v51  ;;  %v1515_v54 = vadd.f32 %v2632_v26, %v1232_v52  ;;  %v1121_v55 = vpop.f32.mrb[30].mxu0  ;;  %v1234_v56 = vpop.f32.mrb[30].mxu1  ;;  %1750 = sbr.rel (!%p2358_p6) target bundleno = 409 (0x199), region = 67 }
 0x18b   : > { %v1516_v57 = vadd.f32 %v2626_v23, %v1121_v55  ;;  %v1518_v58 = vadd.f32 %v2628_v24, %v1234_v56  ;;  %v1123_v59 = vpop.f32.mrb[31].mxu0  ;;  %v1236_v60 = vpop.f32.mrb[31].mxu1  ;;  %v1769_v23 = vld [vmem:[%s2644_s12] sm:$0xff] (%p2358_p6)  ;;  %v1771_v24 = vld [vmem:[%s2644_s12 + $0x8] sm:$0xff] (%p2358_p6) }
 0x18c   : > { %v2098_v61 = vpack.c.bf16 %v1513_v53, %v1512_v49  ;;  %v2099_v62 = vpack.c.bf16 %v1515_v54, %v1514_v50  ;;  %v1517_v63 = vadd.f32 %v2630_v25, %v1123_v59  ;;  %v1519_v0 = vadd.f32 %v2632_v26, %v1236_v60  ;;  %v1773_v25 = vld [vmem:[%s2644_s12 + $0x10] sm:$0xff] (%p2358_p6)  ;;  %v1775_v26 = vld [vmem:[%s2644_s12 + $0x18] sm:$0xff] (%p2358_p6)  ;;  %1770 = vst [vmem:[%s2743_s9] sm:$0xff] (%p2358_p6), %v1769_v23 }
 0x18d   : > { %1772 = vst [vmem:[%s2743_s9 + $0x8] sm:$0xff] (%p2358_p6), %v1771_v24  ;;  %1774 = vst [vmem:[%s2743_s9 + $0x20] sm:$0xff] (%p2358_p6), %v1773_v25  ;;  %v1817_v27 = vld [vmem:[%s2644_s12 + $0xc0] sm:$0xff] (%p2358_p6)  ;;  %v1819_v28 = vld [vmem:[%s2644_s12 + $0xc8] sm:$0xff] (%p2358_p6) }
 0x18e   : > { %1740 = vst [vmem:[%s2644_s12 + $0xe0] sm:$0xff] %v2098_v61  ;;  %1741 = vst [vmem:[%s2644_s12 + $0xe8] sm:$0xff] %v2099_v62  ;;  %v2100_v1 = vpack.c.bf16 %v1517_v63, %v1516_v57  ;;  %v2101_v2 = vpack.c.bf16 %v1519_v0, %v1518_v58 }
 0x18f   : > { %1776 = vst [vmem:[%s2743_s9 + $0x28] sm:$0xff] (%p2358_p6), %v1775_v26  ;;  %v1821_v29 = vld [vmem:[%s2644_s12 + $0xd0] sm:$0xff] (%p2358_p6)  ;;  %1818 = vst [vmem:[%s2743_s9 + $0x180] sm:$0xff] (%p2358_p6), %v1817_v27  ;;  %v1823_v30 = vld [vmem:[%s2644_s12 + $0xd8] sm:$0xff] (%p2358_p6) }
 0x190   : > { %1742 = vst [vmem:[%s2644_s12 + $0xf0] sm:$0xff] %v2100_v1  ;;  %1743 = vst [vmem:[%s2644_s12 + $0xf8] sm:$0xff] %v2101_v2 }
 0x191   : > { %1820 = vst [vmem:[%s2743_s9 + $0x188] sm:$0xff] %v1819_v28  ;;  %1822 = vst [vmem:[%s2743_s9 + $0x1a0] sm:$0xff] %v1821_v29 }
 0x192   : > { %1824 = vst [vmem:[%s2743_s9 + $0x1a8] sm:$0xff] %v1823_v30 }
 0x195   : > { %v1825_v31 = vld [vmem:[%s2644_s12 + $0xe0] sm:$0xff]  ;;  %v1827_v32 = vld [vmem:[%s2644_s12 + $0xe8] sm:$0xff] }
 0x196   : > { %1826 = vst [vmem:[%s2743_s9 + $0x1c0] sm:$0xff] %v1825_v31  ;;  %1828 = vst [vmem:[%s2743_s9 + $0x1c8] sm:$0xff] %v1827_v32 }
 0x197   : > { %v1829_v33 = vld [vmem:[%s2644_s12 + $0xf0] sm:$0xff]  ;;  %v1831_v34 = vld [vmem:[%s2644_s12 + $0xf8] sm:$0xff] }
 0x198   : > { %1830 = vst [vmem:[%s2743_s9 + $0x1e0] sm:$0xff] %v1829_v33  ;;  %1832 = vst [vmem:[%s2743_s9 + $0x1e8] sm:$0xff] %v1831_v34 }
 0x199 PF: > { %s13_s16 = sadd.s32 1, %s2301_s16   ;;  %s2826_s12 = smov %s2289_s13 }
 0x19a   : > { %p10_p12 = scmp.ge.s32.totalorder %s13_s16, 4   ;;  %s2827_s13 = smov %s2363_s22 }
 0x19b   : > { %s2828_s14 = smov %s2297_s15  ;;  %s2829_s15 = smov %s2831_s17 }
 0x19c   :  { %12 = sbr.rel (!%p10_p12) target bundleno = 3 (0x3), region = 127 }

// kernel: lstm_encoder_forward.7
= control target key start
LH: loop header
LB: loop body
LE: loop exit
PB: predicated region body
PF: predicated region fallthrough
CT: control target
= control target key end

     0   :  { %s1278_s9 = smov 0   ;;  %s1280_s10 = smov 0   ;;  %s1721_s0 = inlined_call_operand.vmem [shape: bf16[64,2,1024], index: 0, kind: input, shape index: {}]   ;;  %s1722_s1 = inlined_call_operand.vmem [shape: bf16[2,128,512], index: 1, kind: input, shape index: {}]   ;;  %s1723_s2 = inlined_call_operand.vmem [shape: f32[64,2,256], index: 2, kind: output, shape index: {}]  }
   0x1   :  { %s1282_s11 = smov 0   ;;  %s1284_s12 = smov 0  }
   0x2   :  { %s1286_s13 = smov 0   ;;  %s1288_s14 = smov 0  }
   0x3   :  { %s1290_s15 = smov 0  }
   0x4 LB: > { %s21_s16 = sadd.s32 1, %s1238_s13  ;;  %s24_s17 = sadd.s32 1, %s1242_s14  ;;  %s1246_s15 = sphi %s1290_s15, %s12_s15   ;;  %s1242_s14 = sphi %s1288_s14, %s1732_s14   ;;  %s1238_s13 = sphi %s1286_s13, %s1731_s13   ;;  %s1234_s12 = sphi %s1284_s12, %s1730_s12   ;;  %s1230_s11 = sphi %s1282_s11, %s1729_s11   ;;  %s1226_s10 = sphi %s1280_s10, %s1728_s10   ;;  %s1222_s9 = sphi %s1278_s9, %s1727_s9  }
   0x5   : > { %p22_p0 = scmp.ge.s32.totalorder %s21_s16, 2  ;;  %s1014_s18 = sadd.s32 4294967295, %s1246_s15  }
   0x6   : > { %s1016_s19 = sshll.u32 %s1238_s13, 1  ;;  %p48_p2 = scmp.ne.s32.totalorder %s1226_s10, %s1222_s9 }
   0x7   : > { %s1734_s16 = smov (%p22_p0, %s21_s16), 0  ;;  %s1736_s17 = smov (!%p22_p0, %s24_s17), %s1242_s14 }
   0x8   : > { %s29_s20 = ssub.s32 1, %s1016_s19  ;;  %s1017_s21 = sshll.u32 %s1734_s16, 1 }
   0x9   : > { %p26_p1 = scmp.ge.s32.totalorder %s1736_s17, 2  ;;  %s30_s22 = smul.u32 %s1242_s14, %s29_s20 }
   0xa   : > { %s33_s23 = ssub.s32 1, %s1017_s21  ;;  %p49_p3 = scmp.eq.s32.totalorder %s1246_s15, 0 }
   0xb   : > { %s1738_s17 = smov (%p26_p1, %s1736_s17), 0  ;;  %s31_s24 = sadd.s32 %s1238_s13, %s30_s22 }
   0xc   : > { %s34_s25 = smul.u32 %s33_s23, %s1738_s17  ;;  %s37_s26 = ssub.s32 %s1242_s14, %s1738_s17 }
   0xd   : > { %p50_p4 = por %p49_p3, %p48_p2  ;;  %p114_p5 = scmp.eq.s32.totalorder %s1014_s18, 3 }
   0xe   : > { %s35_s27 = sadd.s32 %s34_s25, %s1734_s16  ;;  %s41_s3 = sadd.s32 1, %s1226_s10 }
   0xf   : > { %s36_s28 = ssub.s32 %s31_s24, %s35_s27  ;;  %p1332_p6 = por %p114_p5, %p48_p2 }
  0x10   : > { %s38_s30 = sor.u32 %s37_s26, %s36_s28  ;;  %p1021_p8 = scmp.ge.s32.totalorder %s1246_s15, 4 }
  0x11   : > { %p39_p7 = scmp.eq.s32.totalorder %s38_s30, 0 }
  0x12   : > { %136 = sbr.rel (%p1021_p8) target bundleno = 52 (0x34), region = 16 }
  0x13   : > { %s1338_s4 = scalar_select %p39_p7, %s1226_s10, %s41_s3  }
  0x19   : > { %139 = sbr.rel (!%p50_p4) target bundleno = 52 (0x34), region = 20  ;;  %s141_s5 = sand.u32 (%p50_p4), 1, %s1226_s10  }
  0x1a   : > { %s1025_s6 = sshll.u32 (%p50_p4), %s1242_s14, 2  ;;  %s1022_s7 = sshll.u32 (%p50_p4), %s141_s5, 7 }
  0x1b   : > { %s1078_s8 = sshll.u32 (%p50_p4), %s31_s24, 8  ;;  %s1351_s22 = scalar_lea.vmem (%p50_p4), [#allocation4], %s1022_s7 }
  0x1c   : > { %s151_s18 = sadd.s32 (%p50_p4), %s1078_s8, %s1025_s6 }
  0x1d   : > { %s1346_s21 = scalar_lea.vmem (%p50_p4), %s1721_s0, %s151_s18 }
  0x1e   : > { %v168_v0 = vld [vmem:[%s1346_s21] sm:$0xf] (%p50_p4)  ;;  %v170_v1 = vld [vmem:[%s1346_s21 + $0x8] sm:$0xf] (%p50_p4)  ;;  %v172_v2 = vld [vmem:[%s1346_s21 + $0x10] sm:$0xf] (%p50_p4) }
  0x1f   : > { %169 = vst [vmem:[%s1351_s22] sm:$0xf] (%p50_p4), %v168_v0  ;;  %171 = vst [vmem:[%s1351_s22 + $0x4] sm:$0xf] (%p50_p4), %v170_v1  ;;  %v174_v3 = vld [vmem:[%s1346_s21 + $0x18] sm:$0xf] (%p50_p4) }
  0x20   : > { %173 = vst [vmem:[%s1351_s22 + $0x8] sm:$0xf] %v172_v2  ;;  %v176_v4 = vld [vmem:[%s1346_s21 + $0x20] sm:$0xf]  ;;  %v178_v5 = vld [vmem:[%s1346_s21 + $0x28] sm:$0xf] }
  0x21   : > { %175 = vst [vmem:[%s1351_s22 + $0xc] sm:$0xf] %v174_v3  ;;  %177 = vst [vmem:[%s1351_s22 + $0x10] sm:$0xf] %v176_v4  ;;  %v180_v6 = vld [vmem:[%s1346_s21 + $0x30] sm:$0xf] }
  0x22   : > { %179 = vst [vmem:[%s1351_s22 + $0x14] sm:$0xf] %v178_v5  ;;  %v182_v7 = vld [vmem:[%s1346_s21 + $0x38] sm:$0xf]  ;;  %v184_v8 = vld [vmem:[%s1346_s21 + $0x40] sm:$0xf] }
  0x23   : > { %181 = vst [vmem:[%s1351_s22 + $0x18] sm:$0xf] %v180_v6  ;;  %183 = vst [vmem:[%s1351_s22 + $0x1c] sm:$0xf] %v182_v7  ;;  %v186_v9 = vld [vmem:[%s1346_s21 + $0x48] sm:$0xf] }
  0x24   : > { %185 = vst [vmem:[%s1351_s22 + $0x20] sm:$0xf] %v184_v8  ;;  %v188_v10 = vld [vmem:[%s1346_s21 + $0x50] sm:$0xf]  ;;  %v190_v11 = vld [vmem:[%s1346_s21 + $0x58] sm:$0xf] }
  0x25   : > { %187 = vst [vmem:[%s1351_s22 + $0x24] sm:$0xf] %v186_v9  ;;  %189 = vst [vmem:[%s1351_s22 + $0x28] sm:$0xf] %v188_v10  ;;  %v192_v12 = vld [vmem:[%s1346_s21 + $0x60] sm:$0xf] }
  0x26   : > { %191 = vst [vmem:[%s1351_s22 + $0x2c] sm:$0xf] %v190_v11  ;;  %v194_v13 = vld [vmem:[%s1346_s21 + $0x68] sm:$0xf]  ;;  %v196_v14 = vld [vmem:[%s1346_s21 + $0x70] sm:$0xf] }
  0x27   : > { %193 = vst [vmem:[%s1351_s22 + $0x30] sm:$0xf] %v192_v12  ;;  %195 = vst [vmem:[%s1351_s22 + $0x34] sm:$0xf] %v194_v13  ;;  %v198_v15 = vld [vmem:[%s1346_s21 + $0x78] sm:$0xf] }
  0x28   : > { %197 = vst [vmem:[%s1351_s22 + $0x38] sm:$0xf] %v196_v14  ;;  %v200_v16 = vld [vmem:[%s1346_s21 + $0x80] sm:$0xf]  ;;  %v202_v17 = vld [vmem:[%s1346_s21 + $0x88] sm:$0xf] }
  0x29   : > { %199 = vst [vmem:[%s1351_s22 + $0x3c] sm:$0xf] %v198_v15  ;;  %201 = vst [vmem:[%s1351_s22 + $0x40] sm:$0xf] %v200_v16  ;;  %v204_v18 = vld [vmem:[%s1346_s21 + $0x90] sm:$0xf] }
  0x2a   : > { %203 = vst [vmem:[%s1351_s22 + $0x44] sm:$0xf] %v202_v17  ;;  %v206_v19 = vld [vmem:[%s1346_s21 + $0x98] sm:$0xf]  ;;  %v208_v20 = vld [vmem:[%s1346_s21 + $0xa0] sm:$0xf] }
  0x2b   : > { %205 = vst [vmem:[%s1351_s22 + $0x48] sm:$0xf] %v204_v18  ;;  %207 = vst [vmem:[%s1351_s22 + $0x4c] sm:$0xf] %v206_v19  ;;  %v210_v21 = vld [vmem:[%s1346_s21 + $0xa8] sm:$0xf] }
  0x2c   : > { %209 = vst [vmem:[%s1351_s22 + $0x50] sm:$0xf] %v208_v20  ;;  %v212_v22 = vld [vmem:[%s1346_s21 + $0xb0] sm:$0xf]  ;;  %v214_v23 = vld [vmem:[%s1346_s21 + $0xb8] sm:$0xf] }
  0x2d   : > { %211 = vst [vmem:[%s1351_s22 + $0x54] sm:$0xf] %v210_v21  ;;  %213 = vst [vmem:[%s1351_s22 + $0x58] sm:$0xf] %v212_v22  ;;  %v216_v24 = vld [vmem:[%s1346_s21 + $0xc0] sm:$0xf] }
  0x2e   : > { %215 = vst [vmem:[%s1351_s22 + $0x5c] sm:$0xf] %v214_v23  ;;  %v218_v25 = vld [vmem:[%s1346_s21 + $0xc8] sm:$0xf]  ;;  %v220_v26 = vld [vmem:[%s1346_s21 + $0xd0] sm:$0xf] }
  0x2f   : > { %217 = vst [vmem:[%s1351_s22 + $0x60] sm:$0xf] %v216_v24  ;;  %219 = vst [vmem:[%s1351_s22 + $0x64] sm:$0xf] %v218_v25  ;;  %v222_v27 = vld [vmem:[%s1346_s21 + $0xd8] sm:$0xf] }
  0x30   : > { %221 = vst [vmem:[%s1351_s22 + $0x68] sm:$0xf] %v220_v26  ;;  %v224_v28 = vld [vmem:[%s1346_s21 + $0xe0] sm:$0xf]  ;;  %v226_v29 = vld [vmem:[%s1346_s21 + $0xe8] sm:$0xf] }
  0x31   : > { %223 = vst [vmem:[%s1351_s22 + $0x6c] sm:$0xf] %v222_v27  ;;  %225 = vst [vmem:[%s1351_s22 + $0x70] sm:$0xf] %v224_v28  ;;  %v228_v30 = vld [vmem:[%s1346_s21 + $0xf0] sm:$0xf] }
  0x32   : > { %227 = vst [vmem:[%s1351_s22 + $0x74] sm:$0xf] %v226_v29  ;;  %v230_v31 = vld [vmem:[%s1346_s21 + $0xf8] sm:$0xf]  ;;  %229 = vst [vmem:[%s1351_s22 + $0x78] sm:$0xf] %v228_v30 }
  0x33   : > { %231 = vst [vmem:[%s1351_s22 + $0x7c] sm:$0xf] %v230_v31 }
  0x34 PF: > { %p1027_p9 = scmp.ge.s32.totalorder %s1246_s15, 1  ;;  %p325_p10 = scmp.lt.s32.totalorder %s1246_s15, 5 }
  0x36   : > { %p326_p11 = pnand %p1027_p9, %p325_p10 }
  0x37   : > { %s332_s23 = sand.u32 (!%p326_p11), 1, %s1222_s9   ;;  %p363_p12 = scmp.lt.s32.totalorder (!%p326_p11), %s1234_s12, 1 }
  0x38   : > { %329 = sbr.rel (%p326_p11) target bundleno = 414 (0x19e), region = 65  ;;  %s1418_s24 = sshll.u32 (!%p326_p11), %s332_s23, 7 }
  0x39   : > { %s1029_s25 = sshll.u32 (!%p326_p11), %s332_s23, 6  ;;  %s334_s5 = scalar_lea.vmem (!%p326_p11), [#allocation4], %s1418_s24 }
  0x3a   : > { %s1427_s6 = scalar_lea.vmem (!%p326_p11), [#allocation5], %s1029_s25  ;;  %p1032_p13 = scmp.ne.s32.totalorder (!%p326_p11), %s1230_s11, 0 }
  0x3f   : > { %s364_s26 = scalar_select %p363_p12, %s1234_s12, 1 }
  0x40   : > { %377 = sbr.rel (%p1032_p13) target bundleno = 71 (0x47), region = 73  ;;  %v1260_v32 = vmov (!%p1032_p13), 0.0  }
  0x41   : > { %s1079_s27 = sshll.u32 %s364_s26, 8  ;;  %378 = vst [vmem:[#allocation2] sm:$0x3] (!%p1032_p13), %v1260_v32  ;;  %379 = vst [vmem:[#allocation3] sm:$0x3] (!%p1032_p13), %v1260_v32 }
  0x42   : > { %s1424_s3 = scalar_lea.vmem %s1722_s1, %s1079_s27 }
  0x47 PF: > { %v1431_v33 = vld [vmem:[%s1424_s3] sm:$0xff]  ;;  %v1434_v34 = vld [vmem:[%s1424_s3 + $0x8] sm:$0xff]  ;;  %v1437_v35 = vld [vmem:[%s1424_s3 + $0x10] sm:$0xff]  ;;  %s1530_s9 = smov 0  }
  0x48   : > { %v1440_v36 = vld [vmem:[%s1424_s3 + $0x18] sm:$0xff]  ;;  %v1443_v37 = vld [vmem:[%s1424_s3 + $0x20] sm:$0xff]  ;;  %v1446_v38 = vld [vmem:[%s1424_s3 + $0x28] sm:$0xff] }
  0x49   : > { %v1449_v39 = vld [vmem:[%s1424_s3 + $0x30] sm:$0xff]  ;;  %v1452_v40 = vld [vmem:[%s1424_s3 + $0x38] sm:$0xff]  ;;  %v1455_v41 = vld [vmem:[%s1424_s3 + $0x40] sm:$0xff] }
  0x4a   : > { %v1458_v42 = vld [vmem:[%s1424_s3 + $0x48] sm:$0xff]  ;;  %v1461_v43 = vld [vmem:[%s1424_s3 + $0x50] sm:$0xff]  ;;  %v1464_v44 = vld [vmem:[%s1424_s3 + $0x58] sm:$0xff] }
  0x4b   : > { %v1467_v45 = vld [vmem:[%s1424_s3 + $0x60] sm:$0xff]  ;;  %v1470_v46 = vld [vmem:[%s1424_s3 + $0x68] sm:$0xff]  ;;  %v1473_v47 = vld [vmem:[%s1424_s3 + $0x70] sm:$0xff] }
  0x4c   : > { %v1476_v48 = vld [vmem:[%s1424_s3 + $0x78] sm:$0xff]  ;;  %v1479_v49 = vld [vmem:[%s1424_s3 + $0x80] sm:$0xff]  ;;  %v1482_v50 = vld [vmem:[%s1424_s3 + $0x88] sm:$0xff] }
  0x4d   : > { %v1485_v51 = vld [vmem:[%s1424_s3 + $0x90] sm:$0xff]  ;;  %v1488_v52 = vld [vmem:[%s1424_s3 + $0x98] sm:$0xff]  ;;  %v1491_v53 = vld [vmem:[%s1424_s3 + $0xa0] sm:$0xff] }
  0x4e   : > { %v1494_v54 = vld [vmem:[%s1424_s3 + $0xa8] sm:$0xff]  ;;  %v1497_v55 = vld [vmem:[%s1424_s3 + $0xb0] sm:$0xff]  ;;  %v1500_v56 = vld [vmem:[%s1424_s3 + $0xb8] sm:$0xff] }
  0x4f   : > { %v1503_v57 = vld [vmem:[%s1424_s3 + $0xc0] sm:$0xff]  ;;  %v1506_v58 = vld [vmem:[%s1424_s3 + $0xc8] sm:$0xff]  ;;  %v1509_v59 = vld [vmem:[%s1424_s3 + $0xd0] sm:$0xff] }
  0x50   : > { %v1512_v60 = vld [vmem:[%s1424_s3 + $0xd8] sm:$0xff]  ;;  %v1515_v61 = vld [vmem:[%s1424_s3 + $0xe0] sm:$0xff]  ;;  %v1518_v62 = vld [vmem:[%s1424_s3 + $0xe8] sm:$0xff] }
  0x51   : > { %v1521_v63 = vld [vmem:[%s1424_s3 + $0xf0] sm:$0xff]  ;;  %v1524_v0 = vld [vmem:[%s1424_s3 + $0xf8] sm:$0xff]  ;;  %v412_v1 = vld [vmem:[#allocation2] sm:$0x3]  }
  0x52   : > { %v413_v2 = vld [vmem:[#allocation3] sm:$0x3]  }
  0x53 LB: >> { %v1036_v3 = vcombine.high %v1431_v33, %v1437_v35  ;;  %v1038_v4 = vcombine.high %v1434_v34, %v1440_v36  ;;  %v1035_v5 = vcombine.low %v1431_v33, %v1437_v35  ;;  %v1037_v6 = vcombine.low %v1434_v34, %v1440_v36  ;;  %s1033_s7 = sshll.u32 %s1258_s9, 1  ;;  %s1258_s9 = sphi %s1530_s9, %s419_s9   ;;  %v1254_v1 = vphi %v412_v1, %v1726_v1   ;;  %v1250_v2 = vphi %v413_v2, %v1725_v2  }
  0x54   : >> { %v1040_v7 = vcombine.high %v1443_v37, %v1449_v39  ;;  %v1042_v8 = vcombine.high %v1446_v38, %v1452_v40  ;;  %v1039_v9 = vcombine.low %v1443_v37, %v1449_v39  ;;  %v1041_v10 = vcombine.low %v1446_v38, %v1452_v40  ;;  %s423_s8 = ssub.s32 31, %s1033_s7 }
  0x55   : >> { %591 = vmatprep.subr.bf16.mxu0 %v1036_v3  ;;  %632 = vmatprep.subr.bf16.mxu1 %v1038_v4  ;;  %v1044_v11 = vcombine.high %v1455_v41, %v1461_v43  ;;  %v1046_v12 = vcombine.high %v1458_v42, %v1464_v44  ;;  %v1261_v13 = vmov 0   ;;  %v1043_v14 = vcombine.low %v1455_v41, %v1461_v43  ;;  %s424_s18 = smul.u32 %s1234_s12, %s423_s8 }
  0x56   : >> { %592 = vmatpush1.bf16.msra.mxu0 %v1035_v5  ;;  %633 = vmatpush1.bf16.msra.mxu1 %v1037_v6  ;;  %v1045_v15 = vcombine.low %v1458_v42, %v1464_v44  ;;  %v1048_v16 = vcombine.high %v1467_v45, %v1473_v47  ;;  %v1050_v17 = vcombine.high %v1470_v46, %v1476_v48 }
  0x57   : >> { %593 = vmatprep.subr.bf16.mxu0 %v1040_v7  ;;  %634 = vmatprep.subr.bf16.mxu1 %v1042_v8  ;;  %v1047_v18 = vcombine.low %v1467_v45, %v1473_v47  ;;  %v1049_v19 = vcombine.low %v1470_v46, %v1476_v48  ;;  %v1052_v20 = vcombine.high %v1479_v49, %v1485_v51  ;;  %v1262_v7 = vmov 1983009808   ;;  %s1610_s19 = sadd.s32 %s1258_s9, %s424_s18  ;;  %s419_s9 = sadd.s32 1, %s1258_s9  }
  0x58   : >> { %623 = vmatprep.mubr.bf16.mxu0 %v1261_v13  ;;  %664 = vmatprep.mubr.bf16.mxu1 %v1261_v13  ;;  %v1054_v21 = vcombine.high %v1482_v50, %v1488_v52  ;;  %v1051_v22 = vcombine.low %v1479_v49, %v1485_v51  ;;  %v1053_v23 = vcombine.low %v1482_v50, %v1488_v52  ;;  %v680_v8 = vunpack.c.l.s4 %v1262_v7  ;;  %s1034_s20 = sshll.u32 %s1610_s19, 2  ;;  %s1070_s22 = sshll.u32 %s1610_s19, 1 }
  0x59   : >> { %v1056_v24 = vcombine.high %v1491_v53, %v1497_v55  ;;  %v1058_v25 = vcombine.high %v1494_v54, %v1500_v56  ;;  %v1055_v26 = vcombine.low %v1491_v53, %v1497_v55  ;;  %v1057_v27 = vcombine.low %v1494_v54, %v1500_v56  ;;  %s427_s21 = scalar_lea.vmem %s334_s5, %s1034_s20 [#allocation4]  ;;  %s728_s23 = scalar_lea.vmem %s1427_s6, %s1070_s22 [#allocation5] }
  0x5a   : >> { %594 = vmatpush1.bf16.msra.mxu0 %v1039_v9  ;;  %635 = vmatpush1.bf16.msra.mxu1 %v1041_v10  ;;  %v1060_v28 = vcombine.high %v1503_v57, %v1509_v59  ;;  %v1062_v29 = vcombine.high %v1506_v58, %v1512_v60  ;;  %v1059_v30 = vcombine.low %v1503_v57, %v1509_v59  ;;  %v682_v9 = vlaneseq  ;;  %p416_p0 = scmp.ge.s32.totalorder %s419_s9, 32  }
  0x5b   : >> { %595 = vmatprep.subr.bf16.mxu0 %v1044_v11  ;;  %636 = vmatprep.subr.bf16.mxu1 %v1046_v12  ;;  %v1061_v31 = vcombine.low %v1506_v58, %v1512_v60  ;;  %v1064_v32 = vcombine.high %v1515_v61, %v1521_v63  ;;  %v1066_v3 = vcombine.high %v1518_v62, %v1524_v0  ;;  %v681_v10 = vunpack.c.0.s8 %v680_v8 }
  0x5c   : >> { %v1063_v4 = vcombine.low %v1515_v61, %v1521_v63  ;;  %v1065_v5 = vcombine.low %v1518_v62, %v1524_v0  ;;  %v430_v6 = vpack.c.bf16 %v1254_v1, %v1254_v1  ;;  %v683_v11 = vshrl.u32 %v682_v9, 7 }
  0x5e   : >> { %596 = vmatpush1.bf16.msra.mxu0 %v1043_v14  ;;  %637 = vmatpush1.bf16.msra.mxu1 %v1045_v15  ;;  %v684_v13 = vsub.s32 %v681_v10, %v683_v11  ;;  %v428_v15 = vld [vmem:[%s427_s21] sm:$0xf] }
  0x5f   : >> { %597 = vmatprep.subr.bf16.mxu0 %v1048_v16  ;;  %638 = vmatprep.subr.bf16.mxu1 %v1050_v17 }
  0x62   : >> { %598 = vmatpush1.bf16.msra.mxu0 %v1047_v18  ;;  %639 = vmatpush1.bf16.msra.mxu1 %v1049_v19 }
  0x63   : >> { %599 = vmatprep.subr.bf16.mxu0 %v1052_v20  ;;  %640 = vmatprep.subr.bf16.mxu1 %v1054_v21 }
  0x66   : >> { %600 = vmatpush1.bf16.msra.mxu0 %v1051_v22  ;;  %641 = vmatpush1.bf16.msra.mxu1 %v1053_v23 }
  0x67   : >> { %601 = vmatprep.subr.bf16.mxu0 %v1056_v24  ;;  %642 = vmatprep.subr.bf16.mxu1 %v1058_v25  ;;  %v429_v24 = vunpack.c.l.bf16 %v428_v15 }
  0x6a   : >> { %602 = vmatpush1.bf16.msra.mxu0 %v1055_v26  ;;  %643 = vmatpush1.bf16.msra.mxu1 %v1057_v27 }
  0x6b   : >> { %603 = vmatprep.subr.bf16.mxu0 %v1060_v28  ;;  %644 = vmatprep.subr.bf16.mxu1 %v1062_v29 }
  0x6e   : >> { %604 = vmatpush1.bf16.msra.mxu0 %v1059_v30  ;;  %645 = vmatpush1.bf16.msra.mxu1 %v1061_v31 }
  0x6f   : >> { %605 = vmatprep.subr.bf16.mxu0 %v1064_v32  ;;  %646 = vmatprep.subr.bf16.mxu1 %v1066_v3 }
  0x72   : >> { %606 = vmatpush1.bf16.msra.mxu0 %v1063_v4  ;;  %647 = vmatpush1.bf16.msra.mxu1 %v1065_v5 }
  0x75   : >> { %624 = vmatmul.mubr.bf16.vlgmr.msra.gmra.mrb[0].mxu0 %v430_v6  ;;  %665 = vmatmul.mubr.bf16.vlgmr.msra.gmra.mrb[0].mxu1 %v430_v6 }
 0x148   : >> { %v625_v12 = vpop.f32.mrb[0].mxu0  ;;  %v666_v1 = vpop.f32.mrb[0].mxu1 }
 0x149   : >> { %v627_v14 = vpop.f32.mrb[1].mxu0  ;;  %v668_v16 = vpop.f32.mrb[1].mxu1 }
 0x14a   : >> { %v677_v17 = vcombine.low %v625_v12, %v627_v14  ;;  %v678_v18 = vcombine.low %v666_v1, %v668_v16  ;;  %v629_v19 = vpop.f32.mrb[2].mxu0  ;;  %v670_v20 = vpop.f32.mrb[2].mxu1 }
 0x14b   : >> { %v630_v21 = vpop.f32.mrb[3].mxu0  ;;  %v671_v22 = vpop.f32.mrb[3].mxu1 }
 0x14c   : >> { %v685_v23 = vrot.slane %v677_v17, %v684_v13  ;;  %v692_v25 = vrot.slane %v678_v18, %v684_v13 }
 0x14e   : >> { %v693_v26 = vcombine.low %v685_v23, %v692_v25 }
 0x150   : >> { %v695_v27 = vadd.f32 %v693_v26, %v429_v24 }
 0x152   : >> { %v1067_v28 = vmul.f32 -1.442695, %v695_v27  ;;  %v703_v29 = vrot.slane %v695_v27, 2  ;;  %v714_v31 = vrot.slane %v695_v27, 6  ;;  %v711_v4 = vrot.slane %v695_v27, 4 }
 0x154   : >> { %1164 = vpow2.f32 %v1067_v28  ;;  %v1068_v30 = vmul.f32 -1.442695, %v703_v29  ;;  %v1069_v32 = vmul.f32 -1.442695, %v714_v31 }
 0x156   : >> { %1166 = vpow2.f32 %v1068_v30 }
 0x157   : >> { %1168 = vpow2.f32 %v1069_v32 }
 0x15e   : >> { %v1165_v3 = vpop.eup %1164 }
 0x15f   : >> { %v699_v5 = vadd.f32 1.0, %v1165_v3 }
 0x160   : >> { %v1167_v6 = vpop.eup %1166 }
 0x161   : >> { %1170 = vrcp.f32 %v699_v5  ;;  %v708_v7 = vadd.f32 1.0, %v1167_v6  ;;  %v1169_v8 = vpop.eup %1168 }
 0x162   : >> { %1172 = vtanh.f32 %v711_v4  ;;  %v719_v12 = vadd.f32 1.0, %v1169_v8 }
 0x163   : >> { %1174 = vrcp.f32 %v708_v7 }
 0x164   : >> { %1176 = vrcp.f32 %v719_v12 }
 0x16b   : >> { %v1171_v9 = vpop.eup %1170 }
 0x16c   : >> { %v1173_v10 = vpop.eup %1172 }
 0x16d   : >> { %v1175_v11 = vpop.eup %1174  ;;  %v723_v13 = vmul.f32 %v1173_v10, %v1171_v9 }
 0x16e   : >> { %v722_v1 = vmul.f32 %v1250_v2, %v1175_v11  ;;  %v1177_v15 = vpop.eup %1176 }
 0x170   : >> { %v724_v14 = vadd.f32 %v723_v13, %v722_v1  }
 0x172   : >> { %1178 = vtanh.f32 %v724_v14  ;;  %v1725_v2 = vmov %v724_v14  ;;  %731 = vst [vmem:[#allocation3] sm:$0x3] (%p416_p0), %v724_v14 }
 0x179   : > { %418 = sbr.rel (!%p416_p0) target bundleno = 83 (0x53), region = 161 }
 0x17c   : >> { %v1179_v16 = vpop.eup %1178 }
 0x17d   : >> { %v726_v17 = vmul.f32 %v1179_v16, %v1177_v15  }
 0x17f   : >> { %729 = vst [vmem:[%s728_s23] sm:$0x3] %v726_v17  ;;  %v1726_v1 = vmov %v726_v17  ;;  %730 = vst [vmem:[#allocation2] sm:$0x3] (%p416_p0), %v726_v17 }
 0x180   : > { %738 = sbr.rel (!%p1332_p6) target bundleno = 414 (0x19e), region = 84  ;;  %s1072_s24 = sshll.u32 (%p1332_p6), %s1230_s11, 1 }
 0x181   : > { %s740_s25 = ssub.s32 (%p1332_p6), 1, %s1072_s24 }
 0x182   : > { %s741_s29 = smul.u32 (%p1332_p6), %s1234_s12, %s740_s25 }
 0x184   : > { %s742_s26 = sadd.s32 (%p1332_p6), %s1230_s11, %s741_s29 }
 0x185   : > { %s1080_s11 = sshll.u32 (%p1332_p6), %s742_s26, 6 }
 0x186   : > { %v763_v33 = vld [vmem:[%s1427_s6] sm:$0x3] (%p1332_p6)  ;;  %v765_v34 = vld [vmem:[%s1427_s6 + $0x2] sm:$0x3] (%p1332_p6)  ;;  %v767_v35 = vld [vmem:[%s1427_s6 + $0x4] sm:$0x3] (%p1332_p6)  ;;  %s745_s27 = sadd.s32 (%p1332_p6), %s1234_s12, %s1080_s11 }
 0x187   : > { %v769_v36 = vld [vmem:[%s1427_s6 + $0x6] sm:$0x3]  ;;  %v771_v37 = vld [vmem:[%s1427_s6 + $0x8] sm:$0x3]  ;;  %v773_v38 = vld [vmem:[%s1427_s6 + $0xa] sm:$0x3] }
 0x188   : > { %v775_v39 = vld [vmem:[%s1427_s6 + $0xc] sm:$0x3]  ;;  %v777_v40 = vld [vmem:[%s1427_s6 + $0xe] sm:$0x3]  ;;  %v779_v41 = vld [vmem:[%s1427_s6 + $0x10] sm:$0x3] }
 0x189   : > { %v781_v42 = vld [vmem:[%s1427_s6 + $0x12] sm:$0x3]  ;;  %v783_v43 = vld [vmem:[%s1427_s6 + $0x14] sm:$0x3]  ;;  %v785_v44 = vld [vmem:[%s1427_s6 + $0x16] sm:$0x3] }
 0x18a   : > { %v787_v45 = vld [vmem:[%s1427_s6 + $0x18] sm:$0x3]  ;;  %v789_v46 = vld [vmem:[%s1427_s6 + $0x1a] sm:$0x3]  ;;  %v791_v47 = vld [vmem:[%s1427_s6 + $0x1c] sm:$0x3] }
 0x18b   : > { %v793_v48 = vld [vmem:[%s1427_s6 + $0x1e] sm:$0x3]  ;;  %v795_v49 = vld [vmem:[%s1427_s6 + $0x20] sm:$0x3]  ;;  %v797_v50 = vld [vmem:[%s1427_s6 + $0x22] sm:$0x3] }
 0x18c   : > { %s1075_s28 = sshll.u32 %s745_s27, 1  ;;  %v799_v51 = vld [vmem:[%s1427_s6 + $0x24] sm:$0x3]  ;;  %v801_v52 = vld [vmem:[%s1427_s6 + $0x26] sm:$0x3] }
 0x18d   : > { %s1654_s5 = scalar_lea.vmem %s1723_s2, %s1075_s28  ;;  %v803_v53 = vld [vmem:[%s1427_s6 + $0x28] sm:$0x3]  ;;  %v805_v54 = vld [vmem:[%s1427_s6 + $0x2a] sm:$0x3]  ;;  %v807_v55 = vld [vmem:[%s1427_s6 + $0x2c] sm:$0x3] }
 0x18e   : > { %764 = vst [vmem:[%s1654_s5] sm:$0x3] %v763_v33  ;;  %766 = vst [vmem:[%s1654_s5 + $0x4] sm:$0x3] %v765_v34  ;;  %v809_v56 = vld [vmem:[%s1427_s6 + $0x2e] sm:$0x3] }
 0x18f   : > { %768 = vst [vmem:[%s1654_s5 + $0x8] sm:$0x3] %v767_v35  ;;  %770 = vst [vmem:[%s1654_s5 + $0xc] sm:$0x3] %v769_v36  ;;  %v811_v57 = vld [vmem:[%s1427_s6 + $0x30] sm:$0x3] }
 0x190   : > { %772 = vst [vmem:[%s1654_s5 + $0x10] sm:$0x3] %v771_v37  ;;  %774 = vst [vmem:[%s1654_s5 + $0x14] sm:$0x3] %v773_v38  ;;  %v813_v58 = vld [vmem:[%s1427_s6 + $0x32] sm:$0x3] }
 0x191   : > { %776 = vst [vmem:[%s1654_s5 + $0x18] sm:$0x3] %v775_v39  ;;  %778 = vst [vmem:[%s1654_s5 + $0x1c] sm:$0x3] %v777_v40  ;;  %v815_v59 = vld [vmem:[%s1427_s6 + $0x34] sm:$0x3] }
 0x192   : > { %780 = vst [vmem:[%s1654_s5 + $0x20] sm:$0x3] %v779_v41  ;;  %782 = vst [vmem:[%s1654_s5 + $0x24] sm:$0x3] %v781_v42  ;;  %v817_v60 = vld [vmem:[%s1427_s6 + $0x36] sm:$0x3] }
 0x193   : > { %784 = vst [vmem:[%s1654_s5 + $0x28] sm:$0x3] %v783_v43  ;;  %786 = vst [vmem:[%s1654_s5 + $0x2c] sm:$0x3] %v785_v44  ;;  %v819_v61 = vld [vmem:[%s1427_s6 + $0x38] sm:$0x3] }
 0x194   : > { %788 = vst [vmem:[%s1654_s5 + $0x30] sm:$0x3] %v787_v45  ;;  %790 = vst [vmem:[%s1654_s5 + $0x34] sm:$0x3] %v789_v46  ;;  %v821_v62 = vld [vmem:[%s1427_s6 + $0x3a] sm:$0x3] }
 0x195   : > { %792 = vst [vmem:[%s1654_s5 + $0x38] sm:$0x3] %v791_v47  ;;  %794 = vst [vmem:[%s1654_s5 + $0x3c] sm:$0x3] %v793_v48  ;;  %v823_v63 = vld [vmem:[%s1427_s6 + $0x3c] sm:$0x3] }
 0x196   : > { %796 = vst [vmem:[%s1654_s5 + $0x40] sm:$0x3] %v795_v49  ;;  %798 = vst [vmem:[%s1654_s5 + $0x44] sm:$0x3] %v797_v50  ;;  %v825_v0 = vld [vmem:[%s1427_s6 + $0x3e] sm:$0x3] }
 0x197   : > { %800 = vst [vmem:[%s1654_s5 + $0x48] sm:$0x3] %v799_v51  ;;  %802 = vst [vmem:[%s1654_s5 + $0x4c] sm:$0x3] %v801_v52 }
 0x198   : > { %804 = vst [vmem:[%s1654_s5 + $0x50] sm:$0x3] %v803_v53  ;;  %806 = vst [vmem:[%s1654_s5 + $0x54] sm:$0x3] %v805_v54 }
 0x199   : > { %808 = vst [vmem:[%s1654_s5 + $0x58] sm:$0x3] %v807_v55  ;;  %810 = vst [vmem:[%s1654_s5 + $0x5c] sm:$0x3] %v809_v56 }
 0x19a   : > { %812 = vst [vmem:[%s1654_s5 + $0x60] sm:$0x3] %v811_v57  ;;  %814 = vst [vmem:[%s1654_s5 + $0x64] sm:$0x3] %v813_v58 }
 0x19b   : > { %816 = vst [vmem:[%s1654_s5 + $0x68] sm:$0x3] %v815_v59  ;;  %818 = vst [vmem:[%s1654_s5 + $0x6c] sm:$0x3] %v817_v60 }
 0x19c   : > { %820 = vst [vmem:[%s1654_s5 + $0x70] sm:$0x3] %v819_v61  ;;  %822 = vst [vmem:[%s1654_s5 + $0x74] sm:$0x3] %v821_v62 }
 0x19d   : > { %824 = vst [vmem:[%s1654_s5 + $0x78] sm:$0x3] %v823_v63  ;;  %826 = vst [vmem:[%s1654_s5 + $0x7c] sm:$0x3] %v825_v0 }
 0x19e PF: > { %s12_s15 = sadd.s32 1, %s1246_s15   ;;  %s1727_s9 = smov %s1226_s10 }
 0x19f   : > { %p9_p1 = scmp.ge.s32.totalorder %s12_s15, 6   ;;  %s1728_s10 = smov %s1338_s4 }
 0x1a0   : > { %s1729_s11 = smov %s1238_s13  ;;  %s1730_s12 = smov %s1242_s14 }
 0x1a1   : > { %s1731_s13 = smov %s1734_s16  ;;  %s1732_s14 = smov %s1738_s17 }
 0x1a2   :  { %11 = sbr.rel (!%p9_p1) target bundleno = 4 (0x4), region = 172 }

</bundles_post_ra>
